<compile_context>
chip_gen: v7x
topology: tpu7x:2x2x1
jax: 0.10.0
libtpu: 0.0.40
codegen_flags: <defaults>
</compile_context>

<pallas_src>
import jax
import jax.numpy as jnp
from jax.experimental import pallas as pl
from jax.experimental.pallas import tpu as pltpu


# ----------------------------------------------------------------------------
# Helpers
# ----------------------------------------------------------------------------
def _round_up(x, m):
    return ((x + m - 1) // m) * m


def _vmem_capacity_bytes():
    """Physical per-core VMEM (128 MiB v5e/v6e, 64 MiB v7x); conservative fallback."""
    try:
        info = pltpu.get_tpu_info()
        cap = getattr(info, "vmem_capacity_bytes", None)
        if cap:
            return int(cap)
    except Exception:
        pass
    return 64 * 1024 * 1024   # assume the smallest (v7x per-core) VMEM


def _choose_t_chunk(T, Bp_tile, C, Hp, L, vmem_budget, target=128):
    """Largest time-chunk (<= target) whose per-chunk VMEM footprint fits the
    budget, then balanced across ceil(T / t_chunk) chunks so padded tail work
    is minimal (no degenerate t_chunk==1 for awkward / prime T)."""
    # Bytes that scale with t_chunk: double-buffered x + out slabs, GX scratch.
    per_t = 4 * Bp_tile * (2 * C + 2 * Hp + 3 * Hp)
    # Roughly t_chunk-independent: packed weights (double-buffered), h0/hfin, h_sc.
    fixed = 2 * 4 * L * (Hp * 3 * Hp + Hp * 2 * Hp + Hp * Hp + 3 * Hp) \
        + 5 * 4 * L * Bp_tile * Hp
    avail = max(vmem_budget - fixed, per_t)
    tmax = max(1, min(target, avail // per_t))
    n_chunks = -(-T // tmax)
    tc = -(-T // n_chunks)                # balanced chunk size, <= tmax
    if tc >= 8:
        tc = min(_round_up(tc, 8), tmax)  # tidy sublane-group / unroll multiple
    return max(1, tc)


# ----------------------------------------------------------------------------
# Kernel
# ----------------------------------------------------------------------------
def make_multilayer_gru_kernel(num_layers, t_chunk, hidden_p, seq_len, needs_mask,
                               unroll):
    Hp = hidden_p

    def kernel(*refs):
        # refs = x, h0, (wx, wh, whh, b) * L, out, hfin, gx_sc, h_sc
        x_ref = refs[0]
        h0_ref = refs[1]
        w_refs = refs[2:2 + 4 * num_layers]
        out_ref = refs[2 + 4 * num_layers]
        hfin_ref = refs[3 + 4 * num_layers]
        gx_sc = refs[4 + 4 * num_layers]
        h_sc = refs[5 + 4 * num_layers]
        layer_w = [tuple(w_refs[4 * l:4 * l + 4]) for l in range(num_layers)]

        t = pl.program_id(1)                      # time-chunk index (sequential)
        bp = out_ref.shape[1]

        @pl.when(t == 0)
        def _():                                   # reset carry per batch block
            h_sc[...] = h0_ref[...]

        t_base = t * t_chunk

        for l, (wx_ref, wh_ref, whh_ref, b_ref) in enumerate(layer_w):
            # --- hoisted input-side gate matmul over the WHOLE chunk ---------
            # GX = x @ [W_r|W_z|W_h]_x + [b_r|b_z|b_h] for every t in the chunk.
            inp = x_ref[...] if l == 0 else out_ref[...]
            f = inp.shape[-1]
            inp2d = inp.reshape(t_chunk * bp, f).astype(wx_ref.dtype)
            gx = jnp.dot(inp2d, wx_ref[...],
                         preferred_element_type=jnp.float32) + b_ref[...]
            gx_sc[...] = gx.reshape(t_chunk, bp, 3 * Hp)

            # Hidden-side weights loaded once per chunk.
            wh = wh_ref[...]
            whh = whh_ref[...]
            w_dt = wh.dtype

            def step(i, h):
                gxi = gx_sc[i]                                        # (bp, 3*Hp)
                gh = jnp.dot(h.astype(w_dt), wh,
                             preferred_element_type=jnp.float32)      # (bp, 2*Hp)
                rz = jax.nn.sigmoid(gxi[:, :2 * Hp] + gh)             # one EUP launch
                r = rz[:, :Hp]
                z = rz[:, Hp:]
                hc = jnp.tanh(
                    jnp.dot((r * h).astype(w_dt), whh,
                            preferred_element_type=jnp.float32)
                    + gxi[:, 2 * Hp:])
                h_new = (1.0 - z) * h + z * hc
                if needs_mask:
                    # Padded tail timesteps must not advance the carry.
                    h_new = jnp.where(t_base + i < seq_len, h_new, h)
                out_ref[i] = h_new        # lane-dense (bp, Hp) store; also the
                return h_new              # next layer's chunk input

            h_last = jax.lax.fori_loop(0, t_chunk, step, h_sc[l], unroll=unroll)
            h_sc[l] = h_last

        @pl.when(t == pl.num_programs(1) - 1)
        def _():
            hfin_ref[...] = h_sc[...]

    return kernel


# ----------------------------------------------------------------------------
# Parameter init (matches GRUCell.init_weights_and_biases)
# ----------------------------------------------------------------------------
def init_gru_cell_params(key, in_features, hidden_size):
    """xavier-uniform W_{z,r,h} of shape (in_features + H, H); b_z=0, b_r=1, b_h=0."""
    kz, kr, kh = jax.random.split(key, 3)
    fan_in = in_features + hidden_size
    fan_out = hidden_size
    bound = (6.0 / (fan_in + fan_out)) ** 0.5

    def xavier(k):
        return jax.random.uniform(k, (fan_in, fan_out), jnp.float32, -bound, bound)

    return dict(
        W_z=xavier(kz), W_r=xavier(kr), W_h=xavier(kh),
        b_z=jnp.zeros((hidden_size,), jnp.float32),
        b_r=jnp.ones((hidden_size,), jnp.float32),
        b_h=jnp.zeros((hidden_size,), jnp.float32),
    )


def init_multi_layer_gru(key, conv_out_features, hidden_size, num_layers):
    keys = jax.random.split(key, num_layers)
    params = [init_gru_cell_params(keys[0], conv_out_features, hidden_size)]
    for i in range(1, num_layers):
        params.append(init_gru_cell_params(keys[i], hidden_size, hidden_size))
    return params


def _pack_layer(p, H, Hp, in_rows, in_rows_padded, matmul_dtype):
    """torch does cat((hidden, x)): rows [:H] multiply h, rows [H:] multiply x.
    Every gate block is zero-padded to Hp lanes (and recurrent rows to Hp) so
    gate slices and the recurrent matmuls are vreg-aligned; the zero pads keep
    pad lanes inert through the recurrence."""
    def pad_x(w):    # (in_rows, H) -> (in_rows_padded, Hp)
        return jnp.pad(w, ((0, in_rows_padded - in_rows), (0, Hp - H)))

    def pad_h(w):    # (H, H) -> (Hp, Hp)
        return jnp.pad(w, ((0, Hp - H), (0, Hp - H)))

    def pad_b(b):    # (H,) -> (Hp,)
        return jnp.pad(b, (0, Hp - H))

    wx = jnp.concatenate([pad_x(p["W_r"][H:]), pad_x(p["W_z"][H:]),
                          pad_x(p["W_h"][H:])], axis=1)             # (Fp, 3*Hp)
    wh = jnp.concatenate([pad_h(p["W_r"][:H]), pad_h(p["W_z"][:H])],
                         axis=1)                                    # (Hp, 2*Hp)
    whh = pad_h(p["W_h"][:H])                                       # (Hp, Hp)
    b = jnp.concatenate([pad_b(p["b_r"]), pad_b(p["b_z"]),
                         pad_b(p["b_h"])]).reshape(1, 3 * Hp)       # (1, 3*Hp)
    return (wx.astype(matmul_dtype), wh.astype(matmul_dtype),
            whh.astype(matmul_dtype), b.astype(jnp.float32))


# ----------------------------------------------------------------------------
# Forward (matches MultiLayerGRU.forward)
# ----------------------------------------------------------------------------
def multi_layer_gru_forward(x_bct, layer_params, hidden_size, hidden_states=None,
                            matmul_dtype=jnp.float32):
    """x_bct: (B, C=conv_out_features, T).
    Returns (outputs (B, T, H), [per-layer final hidden (B, H)]).
    matmul_dtype=jnp.bfloat16 halves weight/act bytes on v6e/v7x (hidden carry
    and all elementwise math stay f32); default f32 matches the torch module."""
    B, C, T = x_bct.shape
    L = len(layer_params)
    H = hidden_size
    Hp = _round_up(H, 128)                       # lane-aligned gate/hidden width

    x_tbc = jnp.transpose(x_bct, (2, 0, 1)).astype(jnp.float32)   # (T, B, C)

    # Pad batch to a multiple of 8 sublanes (pad rows stay exactly zero).
    Bp = max(8, _round_up(B, 8))
    if Bp != B:
        x_tbc = jnp.pad(x_tbc, ((0, 0), (0, Bp - B), (0, 0)))

    # Leading 'parallel' batch axis: lets v7x's 2nd TensorCore take half the
    # batch. Only split once there are >= 16 padded rows (still >= 8 per tile).
    n_b = 2 if (Bp >= 16 and Bp % 16 == 0) else 1
    Bp_tile = Bp // n_b

    if hidden_states is None:
        h0 = jnp.zeros((L, Bp, Hp), jnp.float32)
    else:
        h0 = jnp.stack(
            [jnp.pad(h.astype(jnp.float32), ((0, Bp - B), (0, Hp - H)))
             for h in hidden_states])

    # VMEM-aware chunking; pad T up to n_chunks * t_chunk (no t_chunk==1 cliff).
    vmem_cap = _vmem_capacity_bytes()
    vmem_limit = int(vmem_cap * 0.8)
    t_chunk = _choose_t_chunk(T, Bp_tile, C, Hp, L, int(vmem_cap * 0.6))
    n_chunks = -(-T // t_chunk)
    Tp = n_chunks * t_chunk
    if Tp != T:
        x_tbc = jnp.pad(x_tbc, ((0, Tp - T), (0, 0), (0, 0)))

    flat_w = []
    weight_specs = []
    for li, p in enumerate(layer_params):
        in_rows = C if li == 0 else H
        in_rows_padded = C if li == 0 else Hp
        wx, wh, whh, b = _pack_layer(p, H, Hp, in_rows, in_rows_padded,
                                     matmul_dtype)
        flat_w += [wx, wh, whh, b]
        # Grid-invariant blocks: DMA'd once, never re-fetched by the pipeline.
        # TODO(synk): pipeline_mode=pl.Buffered(1) here would halve the weight
        # VMEM footprint at production H*L; left at the default buffering until
        # single-buffered blocks are verified on all targeted generations.
        weight_specs += [pl.BlockSpec(w.shape, lambda b_, t_: (0, 0))
                         for w in (wx, wh, whh, b)]

    unroll = max(1, min(8, t_chunk))
    kernel = make_multilayer_gru_kernel(L, t_chunk, Hp, T, Tp != T, unroll)

    out_tbh, hfin = pl.pallas_call(
        kernel,
        out_shape=(jax.ShapeDtypeStruct((Tp, Bp, Hp), jnp.float32),
                   jax.ShapeDtypeStruct((L, Bp, Hp), jnp.float32)),
        grid_spec=pltpu.PrefetchScalarGridSpec(
            num_scalar_prefetch=0,
            grid=(n_b, n_chunks),
            in_specs=[
                pl.BlockSpec((t_chunk, Bp_tile, C), lambda b_, t_: (t_, b_, 0)),
                pl.BlockSpec((L, Bp_tile, Hp), lambda b_, t_: (0, b_, 0)),
            ] + weight_specs,
            out_specs=[
                pl.BlockSpec((t_chunk, Bp_tile, Hp), lambda b_, t_: (t_, b_, 0)),
                pl.BlockSpec((L, Bp_tile, Hp), lambda b_, t_: (0, b_, 0)),
            ],
            scratch_shapes=[
                pltpu.VMEM((t_chunk, Bp_tile, 3 * Hp), jnp.float32),  # GX chunk
                pltpu.VMEM((L, Bp_tile, Hp), jnp.float32),            # hidden carry
            ],
        ),
        compiler_params=pltpu.CompilerParams(
            dimension_semantics=("parallel", "arbitrary"),  # batch ∥, time seq
            vmem_limit_bytes=vmem_limit),
    )(x_tbc, h0, *flat_w)

    out_bth = jnp.transpose(out_tbh[:T, :B, :H], (1, 0, 2))
    finals = [hfin[l, :B, :H] for l in range(L)]
    return out_bth, finals


# ----------------------------------------------------------------------------
# Pure-JAX reference mirroring the PyTorch loop (for verification)
# ----------------------------------------------------------------------------
def _reference_forward(x_bct, layer_params, hidden_size):
    B, _, T = x_bct.shape
    current = jnp.transpose(x_bct, (0, 2, 1)).astype(jnp.float32)  # (B, T, C)
    finals = []
    for p in layer_params:
        h = jnp.zeros((B, hidden_size), jnp.float32)
        outs = []
        for t in range(T):
            xt = current[:, t, :]
            cat = jnp.concatenate([h, xt], axis=1)
            r = jax.nn.sigmoid(cat @ p["W_r"] + p["b_r"])
            z = jax.nn.sigmoid(cat @ p["W_z"] + p["b_z"])
            cat2 = jnp.concatenate([r * h, xt], axis=1)
            hc = jnp.tanh(cat2 @ p["W_h"] + p["b_h"])
            h = (1.0 - z) * h + z * hc
            outs.append(h)
        current = jnp.stack(outs, axis=1)
        finals.append(h)
    return current, finals


if __name__ == "__main__":
    # batch=2, conv_out_features=16, seq=8, hidden=32, num_layers=2
    B, C, T = 2, 16, 8
    H, L = 32, 2

    key = jax.random.PRNGKey(0)
    kx, kp = jax.random.split(key)
    x = jax.random.normal(kx, (B, C, T), dtype=jnp.float32)
    params = init_multi_layer_gru(kp, conv_out_features=C, hidden_size=H,
                                  num_layers=L)

    out_seq, finals = multi_layer_gru_forward(x, params, H)
    out_seq = jax.block_until_ready(out_seq)
    finals = [jax.block_until_ready(h) for h in finals]

    ref_seq, ref_finals = _reference_forward(x, params, H)
    assert out_seq.shape == (B, T, H)
    assert all(h.shape == (B, H) for h in finals)
    assert jnp.allclose(out_seq, ref_seq, atol=1e-4, rtol=1e-4), \
        float(jnp.max(jnp.abs(out_seq - ref_seq)))
    for h, hr in zip(finals, ref_finals):
        assert jnp.allclose(h, hr, atol=1e-4, rtol=1e-4)

    print("KERNEL_OK")
</pallas_src>

<mosaic_0001>
module attributes {stable_mosaic.version = 11 : i64} {
  func.func @kernel(%arg0: i32, %arg1: i32, %arg2: memref<8x8x16xf32, #tpu.memory_space<vmem>>, %arg3: memref<2x8x128xf32, #tpu.memory_space<vmem>>, %arg4: memref<16x384xf32, #tpu.memory_space<vmem>>, %arg5: memref<128x256xf32, #tpu.memory_space<vmem>>, %arg6: memref<128x128xf32, #tpu.memory_space<vmem>>, %arg7: memref<1x384xf32, #tpu.memory_space<vmem>>, %arg8: memref<128x384xf32, #tpu.memory_space<vmem>>, %arg9: memref<128x256xf32, #tpu.memory_space<vmem>>, %arg10: memref<128x128xf32, #tpu.memory_space<vmem>>, %arg11: memref<1x384xf32, #tpu.memory_space<vmem>>, %arg12: memref<8x8x128xf32, #tpu.memory_space<vmem>>, %arg13: memref<2x8x128xf32, #tpu.memory_space<vmem>>, %arg14: memref<8x8x384xf32, #tpu.memory_space<vmem>>, %arg15: memref<2x8x128xf32, #tpu.memory_space<vmem>>) attributes {dimension_semantics = [#tpu.dimension_semantics<parallel>, #tpu.dimension_semantics<arbitrary>], iteration_bounds = array<i64: 1, 1>, scalar_prefetch = 0 : i64, scratch_operands = 2 : i64, tpu.core_type = #tpu.core_type<tc>, window_params = [{transform_indices = @transform_0, window_bounds = array<i64: 8, 8, 16>}, {transform_indices = @transform_1, window_bounds = array<i64: 2, 8, 128>}, {pipeline_mode = #tpu.pipeline_mode<synchronous>, transform_indices = @transform_2, window_bounds = array<i64: 16, 384>}, {pipeline_mode = #tpu.pipeline_mode<synchronous>, transform_indices = @transform_3, window_bounds = array<i64: 128, 256>}, {pipeline_mode = #tpu.pipeline_mode<synchronous>, transform_indices = @transform_4, window_bounds = array<i64: 128, 128>}, {pipeline_mode = #tpu.pipeline_mode<synchronous>, transform_indices = @transform_5, window_bounds = array<i64: 1, 384>}, {pipeline_mode = #tpu.pipeline_mode<synchronous>, transform_indices = @transform_6, window_bounds = array<i64: 128, 384>}, {pipeline_mode = #tpu.pipeline_mode<synchronous>, transform_indices = @transform_7, window_bounds = array<i64: 128, 256>}, {pipeline_mode = #tpu.pipeline_mode<synchronous>, transform_indices = @transform_8, window_bounds = array<i64: 128, 128>}, {pipeline_mode = #tpu.pipeline_mode<synchronous>, transform_indices = @transform_9, window_bounds = array<i64: 1, 384>}, {transform_indices = @transform_10, window_bounds = array<i64: 8, 8, 128>}, {transform_indices = @transform_11, window_bounds = array<i64: 2, 8, 128>}]} {
    %c0_i32 = arith.constant 0 : i32
    %0 = arith.cmpi eq, %arg1, %c0_i32 : i32
    %1 = arith.extui %0 : i1 to i32
    %c0_i32_0 = arith.constant 0 : i32
    %2 = arith.cmpi ne, %1, %c0_i32_0 : i32
    scf.if %2 {
      %c0_180 = arith.constant 0 : index
      %c0_181 = arith.constant 0 : index
      %c0_182 = arith.constant 0 : index
      %470 = vector.load %arg3[%c0_180, %c0_181, %c0_182] : memref<2x8x128xf32, #tpu.memory_space<vmem>>, vector<2x8x128xf32>
      %c0_183 = arith.constant 0 : index
      %c0_184 = arith.constant 0 : index
      %c0_185 = arith.constant 0 : index
      %471 = vector.load %arg15[%c0_183, %c0_184, %c0_185] : memref<2x8x128xf32, #tpu.memory_space<vmem>>, vector<2x8x128xf32>
      tpu.vector_store %arg15[%c0_183, %c0_184, %c0_185], %470 {strides = array<i32>} : memref<2x8x128xf32, #tpu.memory_space<vmem>>, vector<2x8x128xf32>,
    } else {
    }
    %c0 = arith.constant 0 : index
    %c0_1 = arith.constant 0 : index
    %c0_2 = arith.constant 0 : index
    %3 = vector.load %arg2[%c0, %c0_1, %c0_2] : memref<8x8x16xf32, #tpu.memory_space<vmem>>, vector<8x8x16xf32>
    %4 = vector.shape_cast %3 : vector<8x8x16xf32> to vector<64x16xf32>
    %c0_3 = arith.constant 0 : index
    %c0_4 = arith.constant 0 : index
    %5 = vector.load %arg4[%c0_3, %c0_4] : memref<16x384xf32, #tpu.memory_space<vmem>>, vector<16x384xf32>
    %cst = arith.constant dense<0.000000e+00> : vector<64x384xf32>
    %6 = tpu.matmul %4, %5, %cst {dimension_numbers = #tpu.dot_dimension_numbers<[1], [0], [0], [1], [0, 0, 1, 1], [], []>} : vector<64x16xf32>, vector<16x384xf32>, vector<64x384xf32> -> vector<64x384xf32>
    %c0_5 = arith.constant 0 : index
    %c0_6 = arith.constant 0 : index
    %7 = vector.load %arg7[%c0_5, %c0_6] : memref<1x384xf32, #tpu.memory_space<vmem>>, vector<1x384xf32>
    %8 = vector.broadcast %7 : vector<1x384xf32> to vector<64x384xf32>
    %9 = arith.addf %6, %8 : vector<64x384xf32>
    %10 = vector.shape_cast %9 : vector<64x384xf32> to vector<8x8x384xf32>
    %c0_7 = arith.constant 0 : index
    %c0_8 = arith.constant 0 : index
    %c0_9 = arith.constant 0 : index
    %11 = vector.load %arg14[%c0_7, %c0_8, %c0_9] : memref<8x8x384xf32, #tpu.memory_space<vmem>>, vector<8x8x384xf32>
    tpu.vector_store %arg14[%c0_7, %c0_8, %c0_9], %10 {strides = array<i32>} : memref<8x8x384xf32, #tpu.memory_space<vmem>>, vector<8x8x384xf32>,
    %c0_10 = arith.constant 0 : index
    %c0_11 = arith.constant 0 : index
    %12 = vector.load %arg5[%c0_10, %c0_11] : memref<128x256xf32, #tpu.memory_space<vmem>>, vector<128x256xf32>
    %c0_12 = arith.constant 0 : index
    %c0_13 = arith.constant 0 : index
    %13 = vector.load %arg6[%c0_12, %c0_13] : memref<128x128xf32, #tpu.memory_space<vmem>>, vector<128x128xf32>
    %c0_14 = arith.constant 0 : index
    %c0_15 = arith.constant 0 : index
    %c0_16 = arith.constant 0 : index
    %14 = vector.load %arg15[%c0_14, %c0_15, %c0_16] : memref<2x8x128xf32, #tpu.memory_space<vmem>>, vector<1x8x128xf32>
    %15 = vector.shape_cast %14 : vector<1x8x128xf32> to vector<8x128xf32>
    %c0_i32_17 = arith.constant 0 : i32
    %16 = arith.index_cast %c0_i32_17 : i32 to index
    %c0_18 = arith.constant 0 : index
    %c0_19 = arith.constant 0 : index
    %17 = vector.load %arg14[%16, %c0_18, %c0_19] : memref<8x8x384xf32, #tpu.memory_space<vmem>>, vector<1x8x384xf32>
    %18 = vector.shape_cast %17 : vector<1x8x384xf32> to vector<8x384xf32>
    %cst_20 = arith.constant dense<0.000000e+00> : vector<8x256xf32>
    %19 = tpu.matmul %15, %12, %cst_20 {dimension_numbers = #tpu.dot_dimension_numbers<[1], [0], [0], [1], [0, 0, 1, 1], [], []>} : vector<8x128xf32>, vector<128x256xf32>, vector<8x256xf32> -> vector<8x256xf32>
    %20 = vector.extract_strided_slice %18 {offsets = [0, 0], sizes = [8, 256], strides = [1, 1]} : vector<8x384xf32> to vector<8x256xf32>
    %21 = arith.addf %20, %19 : vector<8x256xf32>
    %22 = arith.negf %21 : vector<8x256xf32>
    %23 = math.exp %22 : vector<8x256xf32>
    %cst_21 = arith.constant 1.000000e+00 : f32
    %24 = vector.broadcast %cst_21 : f32 to vector<8x256xf32>
    %25 = arith.addf %24, %23 : vector<8x256xf32>
    %26 = arith.divf %24, %25 : vector<8x256xf32>
    %27 = vector.extract_strided_slice %26 {offsets = [0, 0], sizes = [8, 128], strides = [1, 1]} : vector<8x256xf32> to vector<8x128xf32>
    %28 = vector.extract_strided_slice %26 {offsets = [0, 128], sizes = [8, 128], strides = [1, 1]} : vector<8x256xf32> to vector<8x128xf32>
    %29 = arith.mulf %27, %15 : vector<8x128xf32>
    %cst_22 = arith.constant dense<0.000000e+00> : vector<8x128xf32>
    %30 = tpu.matmul %29, %13, %cst_22 {dimension_numbers = #tpu.dot_dimension_numbers<[1], [0], [0], [1], [0, 0, 1, 1], [], []>} : vector<8x128xf32>, vector<128x128xf32>, vector<8x128xf32> -> vector<8x128xf32>
    %31 = vector.extract_strided_slice %18 {offsets = [0, 256], sizes = [8, 128], strides = [1, 1]} : vector<8x384xf32> to vector<8x128xf32>
    %32 = arith.addf %30, %31 : vector<8x128xf32>
    %33 = math.tanh %32 : vector<8x128xf32>
    %cst_23 = arith.constant 1.000000e+00 : f32
    %34 = vector.broadcast %cst_23 : f32 to vector<8x128xf32>
    %35 = arith.subf %34, %28 : vector<8x128xf32>
    %36 = arith.mulf %35, %15 : vector<8x128xf32>
    %37 = arith.mulf %28, %33 : vector<8x128xf32>
    %38 = arith.addf %36, %37 : vector<8x128xf32>
    %39 = arith.index_cast %c0_i32_17 : i32 to index
    %c0_24 = arith.constant 0 : index
    %c0_25 = arith.constant 0 : index
    %40 = vector.load %arg12[%39, %c0_24, %c0_25] : memref<8x8x128xf32, #tpu.memory_space<vmem>>, vector<1x8x128xf32>
    %41 = vector.shape_cast %40 : vector<1x8x128xf32> to vector<8x128xf32>
    %42 = vector.shape_cast %38 : vector<8x128xf32> to vector<1x8x128xf32>
    tpu.vector_store %arg12[%39, %c0_24, %c0_25], %42 {strides = array<i32>} : memref<8x8x128xf32, #tpu.memory_space<vmem>>, vector<1x8x128xf32>,
    %c1_i32 = arith.constant 1 : i32
    %43 = arith.index_cast %c1_i32 : i32 to index
    %c0_26 = arith.constant 0 : index
    %c0_27 = arith.constant 0 : index
    %44 = vector.load %arg14[%43, %c0_26, %c0_27] : memref<8x8x384xf32, #tpu.memory_space<vmem>>, vector<1x8x384xf32>
    %45 = vector.shape_cast %44 : vector<1x8x384xf32> to vector<8x384xf32>
    %cst_28 = arith.constant dense<0.000000e+00> : vector<8x256xf32>
    %46 = tpu.matmul %38, %12, %cst_28 {dimension_numbers = #tpu.dot_dimension_numbers<[1], [0], [0], [1], [0, 0, 1, 1], [], []>} : vector<8x128xf32>, vector<128x256xf32>, vector<8x256xf32> -> vector<8x256xf32>
    %47 = vector.extract_strided_slice %45 {offsets = [0, 0], sizes = [8, 256], strides = [1, 1]} : vector<8x384xf32> to vector<8x256xf32>
    %48 = arith.addf %47, %46 : vector<8x256xf32>
    %49 = arith.negf %48 : vector<8x256xf32>
    %50 = math.exp %49 : vector<8x256xf32>
    %cst_29 = arith.constant 1.000000e+00 : f32
    %51 = vector.broadcast %cst_29 : f32 to vector<8x256xf32>
    %52 = arith.addf %51, %50 : vector<8x256xf32>
    %53 = arith.divf %51, %52 : vector<8x256xf32>
    %54 = vector.extract_strided_slice %53 {offsets = [0, 0], sizes = [8, 128], strides = [1, 1]} : vector<8x256xf32> to vector<8x128xf32>
    %55 = vector.extract_strided_slice %53 {offsets = [0, 128], sizes = [8, 128], strides = [1, 1]} : vector<8x256xf32> to vector<8x128xf32>
    %56 = arith.mulf %54, %38 : vector<8x128xf32>
    %cst_30 = arith.constant dense<0.000000e+00> : vector<8x128xf32>
    %57 = tpu.matmul %56, %13, %cst_30 {dimension_numbers = #tpu.dot_dimension_numbers<[1], [0], [0], [1], [0, 0, 1, 1], [], []>} : vector<8x128xf32>, vector<128x128xf32>, vector<8x128xf32> -> vector<8x128xf32>
    %58 = vector.extract_strided_slice %45 {offsets = [0, 256], sizes = [8, 128], strides = [1, 1]} : vector<8x384xf32> to vector<8x128xf32>
    %59 = arith.addf %57, %58 : vector<8x128xf32>
    %60 = math.tanh %59 : vector<8x128xf32>
    %cst_31 = arith.constant 1.000000e+00 : f32
    %61 = vector.broadcast %cst_31 : f32 to vector<8x128xf32>
    %62 = arith.subf %61, %55 : vector<8x128xf32>
    %63 = arith.mulf %62, %38 : vector<8x128xf32>
    %64 = arith.mulf %55, %60 : vector<8x128xf32>
    %65 = arith.addf %63, %64 : vector<8x128xf32>
    %66 = arith.index_cast %c1_i32 : i32 to index
    %c0_32 = arith.constant 0 : index
    %c0_33 = arith.constant 0 : index
    %67 = vector.load %arg12[%66, %c0_32, %c0_33] : memref<8x8x128xf32, #tpu.memory_space<vmem>>, vector<1x8x128xf32>
    %68 = vector.shape_cast %67 : vector<1x8x128xf32> to vector<8x128xf32>
    %69 = vector.shape_cast %65 : vector<8x128xf32> to vector<1x8x128xf32>
    tpu.vector_store %arg12[%66, %c0_32, %c0_33], %69 {strides = array<i32>} : memref<8x8x128xf32, #tpu.memory_space<vmem>>, vector<1x8x128xf32>,
    %c2_i32 = arith.constant 2 : i32
    %70 = arith.index_cast %c2_i32 : i32 to index
    %c0_34 = arith.constant 0 : index
    %c0_35 = arith.constant 0 : index
    %71 = vector.load %arg14[%70, %c0_34, %c0_35] : memref<8x8x384xf32, #tpu.memory_space<vmem>>, vector<1x8x384xf32>
    %72 = vector.shape_cast %71 : vector<1x8x384xf32> to vector<8x384xf32>
    %cst_36 = arith.constant dense<0.000000e+00> : vector<8x256xf32>
    %73 = tpu.matmul %65, %12, %cst_36 {dimension_numbers = #tpu.dot_dimension_numbers<[1], [0], [0], [1], [0, 0, 1, 1], [], []>} : vector<8x128xf32>, vector<128x256xf32>, vector<8x256xf32> -> vector<8x256xf32>
    %74 = vector.extract_strided_slice %72 {offsets = [0, 0], sizes = [8, 256], strides = [1, 1]} : vector<8x384xf32> to vector<8x256xf32>
    %75 = arith.addf %74, %73 : vector<8x256xf32>
    %76 = arith.negf %75 : vector<8x256xf32>
    %77 = math.exp %76 : vector<8x256xf32>
    %cst_37 = arith.constant 1.000000e+00 : f32
    %78 = vector.broadcast %cst_37 : f32 to vector<8x256xf32>
    %79 = arith.addf %78, %77 : vector<8x256xf32>
    %80 = arith.divf %78, %79 : vector<8x256xf32>
    %81 = vector.extract_strided_slice %80 {offsets = [0, 0], sizes = [8, 128], strides = [1, 1]} : vector<8x256xf32> to vector<8x128xf32>
    %82 = vector.extract_strided_slice %80 {offsets = [0, 128], sizes = [8, 128], strides = [1, 1]} : vector<8x256xf32> to vector<8x128xf32>
    %83 = arith.mulf %81, %65 : vector<8x128xf32>
    %cst_38 = arith.constant dense<0.000000e+00> : vector<8x128xf32>
    %84 = tpu.matmul %83, %13, %cst_38 {dimension_numbers = #tpu.dot_dimension_numbers<[1], [0], [0], [1], [0, 0, 1, 1], [], []>} : vector<8x128xf32>, vector<128x128xf32>, vector<8x128xf32> -> vector<8x128xf32>
    %85 = vector.extract_strided_slice %72 {offsets = [0, 256], sizes = [8, 128], strides = [1, 1]} : vector<8x384xf32> to vector<8x128xf32>
    %86 = arith.addf %84, %85 : vector<8x128xf32>
    %87 = math.tanh %86 : vector<8x128xf32>
    %cst_39 = arith.constant 1.000000e+00 : f32
    %88 = vector.broadcast %cst_39 : f32 to vector<8x128xf32>
    %89 = arith.subf %88, %82 : vector<8x128xf32>
    %90 = arith.mulf %89, %65 : vector<8x128xf32>
    %91 = arith.mulf %82, %87 : vector<8x128xf32>
    %92 = arith.addf %90, %91 : vector<8x128xf32>
    %93 = arith.index_cast %c2_i32 : i32 to index
    %c0_40 = arith.constant 0 : index
    %c0_41 = arith.constant 0 : index
    %94 = vector.load %arg12[%93, %c0_40, %c0_41] : memref<8x8x128xf32, #tpu.memory_space<vmem>>, vector<1x8x128xf32>
    %95 = vector.shape_cast %94 : vector<1x8x128xf32> to vector<8x128xf32>
    %96 = vector.shape_cast %92 : vector<8x128xf32> to vector<1x8x128xf32>
    tpu.vector_store %arg12[%93, %c0_40, %c0_41], %96 {strides = array<i32>} : memref<8x8x128xf32, #tpu.memory_space<vmem>>, vector<1x8x128xf32>,
    %c3_i32 = arith.constant 3 : i32
    %97 = arith.index_cast %c3_i32 : i32 to index
    %c0_42 = arith.constant 0 : index
    %c0_43 = arith.constant 0 : index
    %98 = vector.load %arg14[%97, %c0_42, %c0_43] : memref<8x8x384xf32, #tpu.memory_space<vmem>>, vector<1x8x384xf32>
    %99 = vector.shape_cast %98 : vector<1x8x384xf32> to vector<8x384xf32>
    %cst_44 = arith.constant dense<0.000000e+00> : vector<8x256xf32>
    %100 = tpu.matmul %92, %12, %cst_44 {dimension_numbers = #tpu.dot_dimension_numbers<[1], [0], [0], [1], [0, 0, 1, 1], [], []>} : vector<8x128xf32>, vector<128x256xf32>, vector<8x256xf32> -> vector<8x256xf32>
    %101 = vector.extract_strided_slice %99 {offsets = [0, 0], sizes = [8, 256], strides = [1, 1]} : vector<8x384xf32> to vector<8x256xf32>
    %102 = arith.addf %101, %100 : vector<8x256xf32>
    %103 = arith.negf %102 : vector<8x256xf32>
    %104 = math.exp %103 : vector<8x256xf32>
    %cst_45 = arith.constant 1.000000e+00 : f32
    %105 = vector.broadcast %cst_45 : f32 to vector<8x256xf32>
    %106 = arith.addf %105, %104 : vector<8x256xf32>
    %107 = arith.divf %105, %106 : vector<8x256xf32>
    %108 = vector.extract_strided_slice %107 {offsets = [0, 0], sizes = [8, 128], strides = [1, 1]} : vector<8x256xf32> to vector<8x128xf32>
    %109 = vector.extract_strided_slice %107 {offsets = [0, 128], sizes = [8, 128], strides = [1, 1]} : vector<8x256xf32> to vector<8x128xf32>
    %110 = arith.mulf %108, %92 : vector<8x128xf32>
    %cst_46 = arith.constant dense<0.000000e+00> : vector<8x128xf32>
    %111 = tpu.matmul %110, %13, %cst_46 {dimension_numbers = #tpu.dot_dimension_numbers<[1], [0], [0], [1], [0, 0, 1, 1], [], []>} : vector<8x128xf32>, vector<128x128xf32>, vector<8x128xf32> -> vector<8x128xf32>
    %112 = vector.extract_strided_slice %99 {offsets = [0, 256], sizes = [8, 128], strides = [1, 1]} : vector<8x384xf32> to vector<8x128xf32>
    %113 = arith.addf %111, %112 : vector<8x128xf32>
    %114 = math.tanh %113 : vector<8x128xf32>
    %cst_47 = arith.constant 1.000000e+00 : f32
    %115 = vector.broadcast %cst_47 : f32 to vector<8x128xf32>
    %116 = arith.subf %115, %109 : vector<8x128xf32>
    %117 = arith.mulf %116, %92 : vector<8x128xf32>
    %118 = arith.mulf %109, %114 : vector<8x128xf32>
    %119 = arith.addf %117, %118 : vector<8x128xf32>
    %120 = arith.index_cast %c3_i32 : i32 to index
    %c0_48 = arith.constant 0 : index
    %c0_49 = arith.constant 0 : index
    %121 = vector.load %arg12[%120, %c0_48, %c0_49] : memref<8x8x128xf32, #tpu.memory_space<vmem>>, vector<1x8x128xf32>
    %122 = vector.shape_cast %121 : vector<1x8x128xf32> to vector<8x128xf32>
    %123 = vector.shape_cast %119 : vector<8x128xf32> to vector<1x8x128xf32>
    tpu.vector_store %arg12[%120, %c0_48, %c0_49], %123 {strides = array<i32>} : memref<8x8x128xf32, #tpu.memory_space<vmem>>, vector<1x8x128xf32>,
    %c4_i32 = arith.constant 4 : i32
    %124 = arith.index_cast %c4_i32 : i32 to index
    %c0_50 = arith.constant 0 : index
    %c0_51 = arith.constant 0 : index
    %125 = vector.load %arg14[%124, %c0_50, %c0_51] : memref<8x8x384xf32, #tpu.memory_space<vmem>>, vector<1x8x384xf32>
    %126 = vector.shape_cast %125 : vector<1x8x384xf32> to vector<8x384xf32>
    %cst_52 = arith.constant dense<0.000000e+00> : vector<8x256xf32>
    %127 = tpu.matmul %119, %12, %cst_52 {dimension_numbers = #tpu.dot_dimension_numbers<[1], [0], [0], [1], [0, 0, 1, 1], [], []>} : vector<8x128xf32>, vector<128x256xf32>, vector<8x256xf32> -> vector<8x256xf32>
    %128 = vector.extract_strided_slice %126 {offsets = [0, 0], sizes = [8, 256], strides = [1, 1]} : vector<8x384xf32> to vector<8x256xf32>
    %129 = arith.addf %128, %127 : vector<8x256xf32>
    %130 = arith.negf %129 : vector<8x256xf32>
    %131 = math.exp %130 : vector<8x256xf32>
    %cst_53 = arith.constant 1.000000e+00 : f32
    %132 = vector.broadcast %cst_53 : f32 to vector<8x256xf32>
    %133 = arith.addf %132, %131 : vector<8x256xf32>
    %134 = arith.divf %132, %133 : vector<8x256xf32>
    %135 = vector.extract_strided_slice %134 {offsets = [0, 0], sizes = [8, 128], strides = [1, 1]} : vector<8x256xf32> to vector<8x128xf32>
    %136 = vector.extract_strided_slice %134 {offsets = [0, 128], sizes = [8, 128], strides = [1, 1]} : vector<8x256xf32> to vector<8x128xf32>
    %137 = arith.mulf %135, %119 : vector<8x128xf32>
    %cst_54 = arith.constant dense<0.000000e+00> : vector<8x128xf32>
    %138 = tpu.matmul %137, %13, %cst_54 {dimension_numbers = #tpu.dot_dimension_numbers<[1], [0], [0], [1], [0, 0, 1, 1], [], []>} : vector<8x128xf32>, vector<128x128xf32>, vector<8x128xf32> -> vector<8x128xf32>
    %139 = vector.extract_strided_slice %126 {offsets = [0, 256], sizes = [8, 128], strides = [1, 1]} : vector<8x384xf32> to vector<8x128xf32>
    %140 = arith.addf %138, %139 : vector<8x128xf32>
    %141 = math.tanh %140 : vector<8x128xf32>
    %cst_55 = arith.constant 1.000000e+00 : f32
    %142 = vector.broadcast %cst_55 : f32 to vector<8x128xf32>
    %143 = arith.subf %142, %136 : vector<8x128xf32>
    %144 = arith.mulf %143, %119 : vector<8x128xf32>
    %145 = arith.mulf %136, %141 : vector<8x128xf32>
    %146 = arith.addf %144, %145 : vector<8x128xf32>
    %147 = arith.index_cast %c4_i32 : i32 to index
    %c0_56 = arith.constant 0 : index
    %c0_57 = arith.constant 0 : index
    %148 = vector.load %arg12[%147, %c0_56, %c0_57] : memref<8x8x128xf32, #tpu.memory_space<vmem>>, vector<1x8x128xf32>
    %149 = vector.shape_cast %148 : vector<1x8x128xf32> to vector<8x128xf32>
    %150 = vector.shape_cast %146 : vector<8x128xf32> to vector<1x8x128xf32>
    tpu.vector_store %arg12[%147, %c0_56, %c0_57], %150 {strides = array<i32>} : memref<8x8x128xf32, #tpu.memory_space<vmem>>, vector<1x8x128xf32>,
    %c5_i32 = arith.constant 5 : i32
    %151 = arith.index_cast %c5_i32 : i32 to index
    %c0_58 = arith.constant 0 : index
    %c0_59 = arith.constant 0 : index
    %152 = vector.load %arg14[%151, %c0_58, %c0_59] : memref<8x8x384xf32, #tpu.memory_space<vmem>>, vector<1x8x384xf32>
    %153 = vector.shape_cast %152 : vector<1x8x384xf32> to vector<8x384xf32>
    %cst_60 = arith.constant dense<0.000000e+00> : vector<8x256xf32>
    %154 = tpu.matmul %146, %12, %cst_60 {dimension_numbers = #tpu.dot_dimension_numbers<[1], [0], [0], [1], [0, 0, 1, 1], [], []>} : vector<8x128xf32>, vector<128x256xf32>, vector<8x256xf32> -> vector<8x256xf32>
    %155 = vector.extract_strided_slice %153 {offsets = [0, 0], sizes = [8, 256], strides = [1, 1]} : vector<8x384xf32> to vector<8x256xf32>
    %156 = arith.addf %155, %154 : vector<8x256xf32>
    %157 = arith.negf %156 : vector<8x256xf32>
    %158 = math.exp %157 : vector<8x256xf32>
    %cst_61 = arith.constant 1.000000e+00 : f32
    %159 = vector.broadcast %cst_61 : f32 to vector<8x256xf32>
    %160 = arith.addf %159, %158 : vector<8x256xf32>
    %161 = arith.divf %159, %160 : vector<8x256xf32>
    %162 = vector.extract_strided_slice %161 {offsets = [0, 0], sizes = [8, 128], strides = [1, 1]} : vector<8x256xf32> to vector<8x128xf32>
    %163 = vector.extract_strided_slice %161 {offsets = [0, 128], sizes = [8, 128], strides = [1, 1]} : vector<8x256xf32> to vector<8x128xf32>
    %164 = arith.mulf %162, %146 : vector<8x128xf32>
    %cst_62 = arith.constant dense<0.000000e+00> : vector<8x128xf32>
    %165 = tpu.matmul %164, %13, %cst_62 {dimension_numbers = #tpu.dot_dimension_numbers<[1], [0], [0], [1], [0, 0, 1, 1], [], []>} : vector<8x128xf32>, vector<128x128xf32>, vector<8x128xf32> -> vector<8x128xf32>
    %166 = vector.extract_strided_slice %153 {offsets = [0, 256], sizes = [8, 128], strides = [1, 1]} : vector<8x384xf32> to vector<8x128xf32>
    %167 = arith.addf %165, %166 : vector<8x128xf32>
    %168 = math.tanh %167 : vector<8x128xf32>
    %cst_63 = arith.constant 1.000000e+00 : f32
    %169 = vector.broadcast %cst_63 : f32 to vector<8x128xf32>
    %170 = arith.subf %169, %163 : vector<8x128xf32>
    %171 = arith.mulf %170, %146 : vector<8x128xf32>
    %172 = arith.mulf %163, %168 : vector<8x128xf32>
    %173 = arith.addf %171, %172 : vector<8x128xf32>
    %174 = arith.index_cast %c5_i32 : i32 to index
    %c0_64 = arith.constant 0 : index
    %c0_65 = arith.constant 0 : index
    %175 = vector.load %arg12[%174, %c0_64, %c0_65] : memref<8x8x128xf32, #tpu.memory_space<vmem>>, vector<1x8x128xf32>
    %176 = vector.shape_cast %175 : vector<1x8x128xf32> to vector<8x128xf32>
    %177 = vector.shape_cast %173 : vector<8x128xf32> to vector<1x8x128xf32>
    tpu.vector_store %arg12[%174, %c0_64, %c0_65], %177 {strides = array<i32>} : memref<8x8x128xf32, #tpu.memory_space<vmem>>, vector<1x8x128xf32>,
    %c6_i32 = arith.constant 6 : i32
    %178 = arith.index_cast %c6_i32 : i32 to index
    %c0_66 = arith.constant 0 : index
    %c0_67 = arith.constant 0 : index
    %179 = vector.load %arg14[%178, %c0_66, %c0_67] : memref<8x8x384xf32, #tpu.memory_space<vmem>>, vector<1x8x384xf32>
    %180 = vector.shape_cast %179 : vector<1x8x384xf32> to vector<8x384xf32>
    %cst_68 = arith.constant dense<0.000000e+00> : vector<8x256xf32>
    %181 = tpu.matmul %173, %12, %cst_68 {dimension_numbers = #tpu.dot_dimension_numbers<[1], [0], [0], [1], [0, 0, 1, 1], [], []>} : vector<8x128xf32>, vector<128x256xf32>, vector<8x256xf32> -> vector<8x256xf32>
    %182 = vector.extract_strided_slice %180 {offsets = [0, 0], sizes = [8, 256], strides = [1, 1]} : vector<8x384xf32> to vector<8x256xf32>
    %183 = arith.addf %182, %181 : vector<8x256xf32>
    %184 = arith.negf %183 : vector<8x256xf32>
    %185 = math.exp %184 : vector<8x256xf32>
    %cst_69 = arith.constant 1.000000e+00 : f32
    %186 = vector.broadcast %cst_69 : f32 to vector<8x256xf32>
    %187 = arith.addf %186, %185 : vector<8x256xf32>
    %188 = arith.divf %186, %187 : vector<8x256xf32>
    %189 = vector.extract_strided_slice %188 {offsets = [0, 0], sizes = [8, 128], strides = [1, 1]} : vector<8x256xf32> to vector<8x128xf32>
    %190 = vector.extract_strided_slice %188 {offsets = [0, 128], sizes = [8, 128], strides = [1, 1]} : vector<8x256xf32> to vector<8x128xf32>
    %191 = arith.mulf %189, %173 : vector<8x128xf32>
    %cst_70 = arith.constant dense<0.000000e+00> : vector<8x128xf32>
    %192 = tpu.matmul %191, %13, %cst_70 {dimension_numbers = #tpu.dot_dimension_numbers<[1], [0], [0], [1], [0, 0, 1, 1], [], []>} : vector<8x128xf32>, vector<128x128xf32>, vector<8x128xf32> -> vector<8x128xf32>
    %193 = vector.extract_strided_slice %180 {offsets = [0, 256], sizes = [8, 128], strides = [1, 1]} : vector<8x384xf32> to vector<8x128xf32>
    %194 = arith.addf %192, %193 : vector<8x128xf32>
    %195 = math.tanh %194 : vector<8x128xf32>
    %cst_71 = arith.constant 1.000000e+00 : f32
    %196 = vector.broadcast %cst_71 : f32 to vector<8x128xf32>
    %197 = arith.subf %196, %190 : vector<8x128xf32>
    %198 = arith.mulf %197, %173 : vector<8x128xf32>
    %199 = arith.mulf %190, %195 : vector<8x128xf32>
    %200 = arith.addf %198, %199 : vector<8x128xf32>
    %201 = arith.index_cast %c6_i32 : i32 to index
    %c0_72 = arith.constant 0 : index
    %c0_73 = arith.constant 0 : index
    %202 = vector.load %arg12[%201, %c0_72, %c0_73] : memref<8x8x128xf32, #tpu.memory_space<vmem>>, vector<1x8x128xf32>
    %203 = vector.shape_cast %202 : vector<1x8x128xf32> to vector<8x128xf32>
    %204 = vector.shape_cast %200 : vector<8x128xf32> to vector<1x8x128xf32>
    tpu.vector_store %arg12[%201, %c0_72, %c0_73], %204 {strides = array<i32>} : memref<8x8x128xf32, #tpu.memory_space<vmem>>, vector<1x8x128xf32>,
    %c7_i32 = arith.constant 7 : i32
    %205 = arith.index_cast %c7_i32 : i32 to index
    %c0_74 = arith.constant 0 : index
    %c0_75 = arith.constant 0 : index
    %206 = vector.load %arg14[%205, %c0_74, %c0_75] : memref<8x8x384xf32, #tpu.memory_space<vmem>>, vector<1x8x384xf32>
    %207 = vector.shape_cast %206 : vector<1x8x384xf32> to vector<8x384xf32>
    %cst_76 = arith.constant dense<0.000000e+00> : vector<8x256xf32>
    %208 = tpu.matmul %200, %12, %cst_76 {dimension_numbers = #tpu.dot_dimension_numbers<[1], [0], [0], [1], [0, 0, 1, 1], [], []>} : vector<8x128xf32>, vector<128x256xf32>, vector<8x256xf32> -> vector<8x256xf32>
    %209 = vector.extract_strided_slice %207 {offsets = [0, 0], sizes = [8, 256], strides = [1, 1]} : vector<8x384xf32> to vector<8x256xf32>
    %210 = arith.addf %209, %208 : vector<8x256xf32>
    %211 = arith.negf %210 : vector<8x256xf32>
    %212 = math.exp %211 : vector<8x256xf32>
    %cst_77 = arith.constant 1.000000e+00 : f32
    %213 = vector.broadcast %cst_77 : f32 to vector<8x256xf32>
    %214 = arith.addf %213, %212 : vector<8x256xf32>
    %215 = arith.divf %213, %214 : vector<8x256xf32>
    %216 = vector.extract_strided_slice %215 {offsets = [0, 0], sizes = [8, 128], strides = [1, 1]} : vector<8x256xf32> to vector<8x128xf32>
    %217 = vector.extract_strided_slice %215 {offsets = [0, 128], sizes = [8, 128], strides = [1, 1]} : vector<8x256xf32> to vector<8x128xf32>
    %218 = arith.mulf %216, %200 : vector<8x128xf32>
    %cst_78 = arith.constant dense<0.000000e+00> : vector<8x128xf32>
    %219 = tpu.matmul %218, %13, %cst_78 {dimension_numbers = #tpu.dot_dimension_numbers<[1], [0], [0], [1], [0, 0, 1, 1], [], []>} : vector<8x128xf32>, vector<128x128xf32>, vector<8x128xf32> -> vector<8x128xf32>
    %220 = vector.extract_strided_slice %207 {offsets = [0, 256], sizes = [8, 128], strides = [1, 1]} : vector<8x384xf32> to vector<8x128xf32>
    %221 = arith.addf %219, %220 : vector<8x128xf32>
    %222 = math.tanh %221 : vector<8x128xf32>
    %cst_79 = arith.constant 1.000000e+00 : f32
    %223 = vector.broadcast %cst_79 : f32 to vector<8x128xf32>
    %224 = arith.subf %223, %217 : vector<8x128xf32>
    %225 = arith.mulf %224, %200 : vector<8x128xf32>
    %226 = arith.mulf %217, %222 : vector<8x128xf32>
    %227 = arith.addf %225, %226 : vector<8x128xf32>
    %228 = arith.index_cast %c7_i32 : i32 to index
    %c0_80 = arith.constant 0 : index
    %c0_81 = arith.constant 0 : index
    %229 = vector.load %arg12[%228, %c0_80, %c0_81] : memref<8x8x128xf32, #tpu.memory_space<vmem>>, vector<1x8x128xf32>
    %230 = vector.shape_cast %229 : vector<1x8x128xf32> to vector<8x128xf32>
    %231 = vector.shape_cast %227 : vector<8x128xf32> to vector<1x8x128xf32>
    tpu.vector_store %arg12[%228, %c0_80, %c0_81], %231 {strides = array<i32>} : memref<8x8x128xf32, #tpu.memory_space<vmem>>, vector<1x8x128xf32>,
    %c8_i32 = arith.constant 8 : i32
    %c0_82 = arith.constant 0 : index
    %c0_83 = arith.constant 0 : index
    %c0_84 = arith.constant 0 : index
    %232 = vector.load %arg15[%c0_82, %c0_83, %c0_84] : memref<2x8x128xf32, #tpu.memory_space<vmem>>, vector<1x8x128xf32>
    %233 = vector.shape_cast %232 : vector<1x8x128xf32> to vector<8x128xf32>
    %234 = vector.shape_cast %227 : vector<8x128xf32> to vector<1x8x128xf32>
    tpu.vector_store %arg15[%c0_82, %c0_83, %c0_84], %234 {strides = array<i32>} : memref<2x8x128xf32, #tpu.memory_space<vmem>>, vector<1x8x128xf32>,
    %c0_85 = arith.constant 0 : index
    %c0_86 = arith.constant 0 : index
    %c0_87 = arith.constant 0 : index
    %235 = vector.load %arg12[%c0_85, %c0_86, %c0_87] : memref<8x8x128xf32, #tpu.memory_space<vmem>>, vector<8x8x128xf32>
    %236 = vector.shape_cast %235 : vector<8x8x128xf32> to vector<64x128xf32>
    %c0_88 = arith.constant 0 : index
    %c0_89 = arith.constant 0 : index
    %237 = vector.load %arg8[%c0_88, %c0_89] : memref<128x384xf32, #tpu.memory_space<vmem>>, vector<128x384xf32>
    %cst_90 = arith.constant dense<0.000000e+00> : vector<64x384xf32>
    %238 = tpu.matmul %236, %237, %cst_90 {dimension_numbers = #tpu.dot_dimension_numbers<[1], [0], [0], [1], [0, 0, 1, 1], [], []>} : vector<64x128xf32>, vector<128x384xf32>, vector<64x384xf32> -> vector<64x384xf32>
    %c0_91 = arith.constant 0 : index
    %c0_92 = arith.constant 0 : index
    %239 = vector.load %arg11[%c0_91, %c0_92] : memref<1x384xf32, #tpu.memory_space<vmem>>, vector<1x384xf32>
    %240 = vector.broadcast %239 : vector<1x384xf32> to vector<64x384xf32>
    %241 = arith.addf %238, %240 : vector<64x384xf32>
    %242 = vector.shape_cast %241 : vector<64x384xf32> to vector<8x8x384xf32>
    %c0_93 = arith.constant 0 : index
    %c0_94 = arith.constant 0 : index
    %c0_95 = arith.constant 0 : index
    %243 = vector.load %arg14[%c0_93, %c0_94, %c0_95] : memref<8x8x384xf32, #tpu.memory_space<vmem>>, vector<8x8x384xf32>
    tpu.vector_store %arg14[%c0_93, %c0_94, %c0_95], %242 {strides = array<i32>} : memref<8x8x384xf32, #tpu.memory_space<vmem>>, vector<8x8x384xf32>,
    %c0_96 = arith.constant 0 : index
    %c0_97 = arith.constant 0 : index
    %244 = vector.load %arg9[%c0_96, %c0_97] : memref<128x256xf32, #tpu.memory_space<vmem>>, vector<128x256xf32>
    %c0_98 = arith.constant 0 : index
    %c0_99 = arith.constant 0 : index
    %245 = vector.load %arg10[%c0_98, %c0_99] : memref<128x128xf32, #tpu.memory_space<vmem>>, vector<128x128xf32>
    %c1 = arith.constant 1 : index
    %c0_100 = arith.constant 0 : index
    %c0_101 = arith.constant 0 : index
    %246 = vector.load %arg15[%c1, %c0_100, %c0_101] : memref<2x8x128xf32, #tpu.memory_space<vmem>>, vector<1x8x128xf32>
    %247 = vector.shape_cast %246 : vector<1x8x128xf32> to vector<8x128xf32>
    %c0_i32_102 = arith.constant 0 : i32
    %248 = arith.index_cast %c0_i32_102 : i32 to index
    %c0_103 = arith.constant 0 : index
    %c0_104 = arith.constant 0 : index
    %249 = vector.load %arg14[%248, %c0_103, %c0_104] : memref<8x8x384xf32, #tpu.memory_space<vmem>>, vector<1x8x384xf32>
    %250 = vector.shape_cast %249 : vector<1x8x384xf32> to vector<8x384xf32>
    %cst_105 = arith.constant dense<0.000000e+00> : vector<8x256xf32>
    %251 = tpu.matmul %247, %244, %cst_105 {dimension_numbers = #tpu.dot_dimension_numbers<[1], [0], [0], [1], [0, 0, 1, 1], [], []>} : vector<8x128xf32>, vector<128x256xf32>, vector<8x256xf32> -> vector<8x256xf32>
    %252 = vector.extract_strided_slice %250 {offsets = [0, 0], sizes = [8, 256], strides = [1, 1]} : vector<8x384xf32> to vector<8x256xf32>
    %253 = arith.addf %252, %251 : vector<8x256xf32>
    %254 = arith.negf %253 : vector<8x256xf32>
    %255 = math.exp %254 : vector<8x256xf32>
    %cst_106 = arith.constant 1.000000e+00 : f32
    %256 = vector.broadcast %cst_106 : f32 to vector<8x256xf32>
    %257 = arith.addf %256, %255 : vector<8x256xf32>
    %258 = arith.divf %256, %257 : vector<8x256xf32>
    %259 = vector.extract_strided_slice %258 {offsets = [0, 0], sizes = [8, 128], strides = [1, 1]} : vector<8x256xf32> to vector<8x128xf32>
    %260 = vector.extract_strided_slice %258 {offsets = [0, 128], sizes = [8, 128], strides = [1, 1]} : vector<8x256xf32> to vector<8x128xf32>
    %261 = arith.mulf %259, %247 : vector<8x128xf32>
    %cst_107 = arith.constant dense<0.000000e+00> : vector<8x128xf32>
    %262 = tpu.matmul %261, %245, %cst_107 {dimension_numbers = #tpu.dot_dimension_numbers<[1], [0], [0], [1], [0, 0, 1, 1], [], []>} : vector<8x128xf32>, vector<128x128xf32>, vector<8x128xf32> -> vector<8x128xf32>
    %263 = vector.extract_strided_slice %250 {offsets = [0, 256], sizes = [8, 128], strides = [1, 1]} : vector<8x384xf32> to vector<8x128xf32>
    %264 = arith.addf %262, %263 : vector<8x128xf32>
    %265 = math.tanh %264 : vector<8x128xf32>
    %cst_108 = arith.constant 1.000000e+00 : f32
    %266 = vector.broadcast %cst_108 : f32 to vector<8x128xf32>
    %267 = arith.subf %266, %260 : vector<8x128xf32>
    %268 = arith.mulf %267, %247 : vector<8x128xf32>
    %269 = arith.mulf %260, %265 : vector<8x128xf32>
    %270 = arith.addf %268, %269 : vector<8x128xf32>
    %271 = arith.index_cast %c0_i32_102 : i32 to index
    %c0_109 = arith.constant 0 : index
    %c0_110 = arith.constant 0 : index
    %272 = vector.load %arg12[%271, %c0_109, %c0_110] : memref<8x8x128xf32, #tpu.memory_space<vmem>>, vector<1x8x128xf32>
    %273 = vector.shape_cast %272 : vector<1x8x128xf32> to vector<8x128xf32>
    %274 = vector.shape_cast %270 : vector<8x128xf32> to vector<1x8x128xf32>
    tpu.vector_store %arg12[%271, %c0_109, %c0_110], %274 {strides = array<i32>} : memref<8x8x128xf32, #tpu.memory_space<vmem>>, vector<1x8x128xf32>,
    %c1_i32_111 = arith.constant 1 : i32
    %275 = arith.index_cast %c1_i32_111 : i32 to index
    %c0_112 = arith.constant 0 : index
    %c0_113 = arith.constant 0 : index
    %276 = vector.load %arg14[%275, %c0_112, %c0_113] : memref<8x8x384xf32, #tpu.memory_space<vmem>>, vector<1x8x384xf32>
    %277 = vector.shape_cast %276 : vector<1x8x384xf32> to vector<8x384xf32>
    %cst_114 = arith.constant dense<0.000000e+00> : vector<8x256xf32>
    %278 = tpu.matmul %270, %244, %cst_114 {dimension_numbers = #tpu.dot_dimension_numbers<[1], [0], [0], [1], [0, 0, 1, 1], [], []>} : vector<8x128xf32>, vector<128x256xf32>, vector<8x256xf32> -> vector<8x256xf32>
    %279 = vector.extract_strided_slice %277 {offsets = [0, 0], sizes = [8, 256], strides = [1, 1]} : vector<8x384xf32> to vector<8x256xf32>
    %280 = arith.addf %279, %278 : vector<8x256xf32>
    %281 = arith.negf %280 : vector<8x256xf32>
    %282 = math.exp %281 : vector<8x256xf32>
    %cst_115 = arith.constant 1.000000e+00 : f32
    %283 = vector.broadcast %cst_115 : f32 to vector<8x256xf32>
    %284 = arith.addf %283, %282 : vector<8x256xf32>
    %285 = arith.divf %283, %284 : vector<8x256xf32>
    %286 = vector.extract_strided_slice %285 {offsets = [0, 0], sizes = [8, 128], strides = [1, 1]} : vector<8x256xf32> to vector<8x128xf32>
    %287 = vector.extract_strided_slice %285 {offsets = [0, 128], sizes = [8, 128], strides = [1, 1]} : vector<8x256xf32> to vector<8x128xf32>
    %288 = arith.mulf %286, %270 : vector<8x128xf32>
    %cst_116 = arith.constant dense<0.000000e+00> : vector<8x128xf32>
    %289 = tpu.matmul %288, %245, %cst_116 {dimension_numbers = #tpu.dot_dimension_numbers<[1], [0], [0], [1], [0, 0, 1, 1], [], []>} : vector<8x128xf32>, vector<128x128xf32>, vector<8x128xf32> -> vector<8x128xf32>
    %290 = vector.extract_strided_slice %277 {offsets = [0, 256], sizes = [8, 128], strides = [1, 1]} : vector<8x384xf32> to vector<8x128xf32>
    %291 = arith.addf %289, %290 : vector<8x128xf32>
    %292 = math.tanh %291 : vector<8x128xf32>
    %cst_117 = arith.constant 1.000000e+00 : f32
    %293 = vector.broadcast %cst_117 : f32 to vector<8x128xf32>
    %294 = arith.subf %293, %287 : vector<8x128xf32>
    %295 = arith.mulf %294, %270 : vector<8x128xf32>
    %296 = arith.mulf %287, %292 : vector<8x128xf32>
    %297 = arith.addf %295, %296 : vector<8x128xf32>
    %298 = arith.index_cast %c1_i32_111 : i32 to index
    %c0_118 = arith.constant 0 : index
    %c0_119 = arith.constant 0 : index
    %299 = vector.load %arg12[%298, %c0_118, %c0_119] : memref<8x8x128xf32, #tpu.memory_space<vmem>>, vector<1x8x128xf32>
    %300 = vector.shape_cast %299 : vector<1x8x128xf32> to vector<8x128xf32>
    %301 = vector.shape_cast %297 : vector<8x128xf32> to vector<1x8x128xf32>
    tpu.vector_store %arg12[%298, %c0_118, %c0_119], %301 {strides = array<i32>} : memref<8x8x128xf32, #tpu.memory_space<vmem>>, vector<1x8x128xf32>,
    %c2_i32_120 = arith.constant 2 : i32
    %302 = arith.index_cast %c2_i32_120 : i32 to index
    %c0_121 = arith.constant 0 : index
    %c0_122 = arith.constant 0 : index
    %303 = vector.load %arg14[%302, %c0_121, %c0_122] : memref<8x8x384xf32, #tpu.memory_space<vmem>>, vector<1x8x384xf32>
    %304 = vector.shape_cast %303 : vector<1x8x384xf32> to vector<8x384xf32>
    %cst_123 = arith.constant dense<0.000000e+00> : vector<8x256xf32>
    %305 = tpu.matmul %297, %244, %cst_123 {dimension_numbers = #tpu.dot_dimension_numbers<[1], [0], [0], [1], [0, 0, 1, 1], [], []>} : vector<8x128xf32>, vector<128x256xf32>, vector<8x256xf32> -> vector<8x256xf32>
    %306 = vector.extract_strided_slice %304 {offsets = [0, 0], sizes = [8, 256], strides = [1, 1]} : vector<8x384xf32> to vector<8x256xf32>
    %307 = arith.addf %306, %305 : vector<8x256xf32>
    %308 = arith.negf %307 : vector<8x256xf32>
    %309 = math.exp %308 : vector<8x256xf32>
    %cst_124 = arith.constant 1.000000e+00 : f32
    %310 = vector.broadcast %cst_124 : f32 to vector<8x256xf32>
    %311 = arith.addf %310, %309 : vector<8x256xf32>
    %312 = arith.divf %310, %311 : vector<8x256xf32>
    %313 = vector.extract_strided_slice %312 {offsets = [0, 0], sizes = [8, 128], strides = [1, 1]} : vector<8x256xf32> to vector<8x128xf32>
    %314 = vector.extract_strided_slice %312 {offsets = [0, 128], sizes = [8, 128], strides = [1, 1]} : vector<8x256xf32> to vector<8x128xf32>
    %315 = arith.mulf %313, %297 : vector<8x128xf32>
    %cst_125 = arith.constant dense<0.000000e+00> : vector<8x128xf32>
    %316 = tpu.matmul %315, %245, %cst_125 {dimension_numbers = #tpu.dot_dimension_numbers<[1], [0], [0], [1], [0, 0, 1, 1], [], []>} : vector<8x128xf32>, vector<128x128xf32>, vector<8x128xf32> -> vector<8x128xf32>
    %317 = vector.extract_strided_slice %304 {offsets = [0, 256], sizes = [8, 128], strides = [1, 1]} : vector<8x384xf32> to vector<8x128xf32>
    %318 = arith.addf %316, %317 : vector<8x128xf32>
    %319 = math.tanh %318 : vector<8x128xf32>
    %cst_126 = arith.constant 1.000000e+00 : f32
    %320 = vector.broadcast %cst_126 : f32 to vector<8x128xf32>
    %321 = arith.subf %320, %314 : vector<8x128xf32>
    %322 = arith.mulf %321, %297 : vector<8x128xf32>
    %323 = arith.mulf %314, %319 : vector<8x128xf32>
    %324 = arith.addf %322, %323 : vector<8x128xf32>
    %325 = arith.index_cast %c2_i32_120 : i32 to index
    %c0_127 = arith.constant 0 : index
    %c0_128 = arith.constant 0 : index
    %326 = vector.load %arg12[%325, %c0_127, %c0_128] : memref<8x8x128xf32, #tpu.memory_space<vmem>>, vector<1x8x128xf32>
    %327 = vector.shape_cast %326 : vector<1x8x128xf32> to vector<8x128xf32>
    %328 = vector.shape_cast %324 : vector<8x128xf32> to vector<1x8x128xf32>
    tpu.vector_store %arg12[%325, %c0_127, %c0_128], %328 {strides = array<i32>} : memref<8x8x128xf32, #tpu.memory_space<vmem>>, vector<1x8x128xf32>,
    %c3_i32_129 = arith.constant 3 : i32
    %329 = arith.index_cast %c3_i32_129 : i32 to index
    %c0_130 = arith.constant 0 : index
    %c0_131 = arith.constant 0 : index
    %330 = vector.load %arg14[%329, %c0_130, %c0_131] : memref<8x8x384xf32, #tpu.memory_space<vmem>>, vector<1x8x384xf32>
    %331 = vector.shape_cast %330 : vector<1x8x384xf32> to vector<8x384xf32>
    %cst_132 = arith.constant dense<0.000000e+00> : vector<8x256xf32>
    %332 = tpu.matmul %324, %244, %cst_132 {dimension_numbers = #tpu.dot_dimension_numbers<[1], [0], [0], [1], [0, 0, 1, 1], [], []>} : vector<8x128xf32>, vector<128x256xf32>, vector<8x256xf32> -> vector<8x256xf32>
    %333 = vector.extract_strided_slice %331 {offsets = [0, 0], sizes = [8, 256], strides = [1, 1]} : vector<8x384xf32> to vector<8x256xf32>
    %334 = arith.addf %333, %332 : vector<8x256xf32>
    %335 = arith.negf %334 : vector<8x256xf32>
    %336 = math.exp %335 : vector<8x256xf32>
    %cst_133 = arith.constant 1.000000e+00 : f32
    %337 = vector.broadcast %cst_133 : f32 to vector<8x256xf32>
    %338 = arith.addf %337, %336 : vector<8x256xf32>
    %339 = arith.divf %337, %338 : vector<8x256xf32>
    %340 = vector.extract_strided_slice %339 {offsets = [0, 0], sizes = [8, 128], strides = [1, 1]} : vector<8x256xf32> to vector<8x128xf32>
    %341 = vector.extract_strided_slice %339 {offsets = [0, 128], sizes = [8, 128], strides = [1, 1]} : vector<8x256xf32> to vector<8x128xf32>
    %342 = arith.mulf %340, %324 : vector<8x128xf32>
    %cst_134 = arith.constant dense<0.000000e+00> : vector<8x128xf32>
    %343 = tpu.matmul %342, %245, %cst_134 {dimension_numbers = #tpu.dot_dimension_numbers<[1], [0], [0], [1], [0, 0, 1, 1], [], []>} : vector<8x128xf32>, vector<128x128xf32>, vector<8x128xf32> -> vector<8x128xf32>
    %344 = vector.extract_strided_slice %331 {offsets = [0, 256], sizes = [8, 128], strides = [1, 1]} : vector<8x384xf32> to vector<8x128xf32>
    %345 = arith.addf %343, %344 : vector<8x128xf32>
    %346 = math.tanh %345 : vector<8x128xf32>
    %cst_135 = arith.constant 1.000000e+00 : f32
    %347 = vector.broadcast %cst_135 : f32 to vector<8x128xf32>
    %348 = arith.subf %347, %341 : vector<8x128xf32>
    %349 = arith.mulf %348, %324 : vector<8x128xf32>
    %350 = arith.mulf %341, %346 : vector<8x128xf32>
    %351 = arith.addf %349, %350 : vector<8x128xf32>
    %352 = arith.index_cast %c3_i32_129 : i32 to index
    %c0_136 = arith.constant 0 : index
    %c0_137 = arith.constant 0 : index
    %353 = vector.load %arg12[%352, %c0_136, %c0_137] : memref<8x8x128xf32, #tpu.memory_space<vmem>>, vector<1x8x128xf32>
    %354 = vector.shape_cast %353 : vector<1x8x128xf32> to vector<8x128xf32>
    %355 = vector.shape_cast %351 : vector<8x128xf32> to vector<1x8x128xf32>
    tpu.vector_store %arg12[%352, %c0_136, %c0_137], %355 {strides = array<i32>} : memref<8x8x128xf32, #tpu.memory_space<vmem>>, vector<1x8x128xf32>,
    %c4_i32_138 = arith.constant 4 : i32
    %356 = arith.index_cast %c4_i32_138 : i32 to index
    %c0_139 = arith.constant 0 : index
    %c0_140 = arith.constant 0 : index
    %357 = vector.load %arg14[%356, %c0_139, %c0_140] : memref<8x8x384xf32, #tpu.memory_space<vmem>>, vector<1x8x384xf32>
    %358 = vector.shape_cast %357 : vector<1x8x384xf32> to vector<8x384xf32>
    %cst_141 = arith.constant dense<0.000000e+00> : vector<8x256xf32>
    %359 = tpu.matmul %351, %244, %cst_141 {dimension_numbers = #tpu.dot_dimension_numbers<[1], [0], [0], [1], [0, 0, 1, 1], [], []>} : vector<8x128xf32>, vector<128x256xf32>, vector<8x256xf32> -> vector<8x256xf32>
    %360 = vector.extract_strided_slice %358 {offsets = [0, 0], sizes = [8, 256], strides = [1, 1]} : vector<8x384xf32> to vector<8x256xf32>
    %361 = arith.addf %360, %359 : vector<8x256xf32>
    %362 = arith.negf %361 : vector<8x256xf32>
    %363 = math.exp %362 : vector<8x256xf32>
    %cst_142 = arith.constant 1.000000e+00 : f32
    %364 = vector.broadcast %cst_142 : f32 to vector<8x256xf32>
    %365 = arith.addf %364, %363 : vector<8x256xf32>
    %366 = arith.divf %364, %365 : vector<8x256xf32>
    %367 = vector.extract_strided_slice %366 {offsets = [0, 0], sizes = [8, 128], strides = [1, 1]} : vector<8x256xf32> to vector<8x128xf32>
    %368 = vector.extract_strided_slice %366 {offsets = [0, 128], sizes = [8, 128], strides = [1, 1]} : vector<8x256xf32> to vector<8x128xf32>
    %369 = arith.mulf %367, %351 : vector<8x128xf32>
    %cst_143 = arith.constant dense<0.000000e+00> : vector<8x128xf32>
    %370 = tpu.matmul %369, %245, %cst_143 {dimension_numbers = #tpu.dot_dimension_numbers<[1], [0], [0], [1], [0, 0, 1, 1], [], []>} : vector<8x128xf32>, vector<128x128xf32>, vector<8x128xf32> -> vector<8x128xf32>
    %371 = vector.extract_strided_slice %358 {offsets = [0, 256], sizes = [8, 128], strides = [1, 1]} : vector<8x384xf32> to vector<8x128xf32>
    %372 = arith.addf %370, %371 : vector<8x128xf32>
    %373 = math.tanh %372 : vector<8x128xf32>
    %cst_144 = arith.constant 1.000000e+00 : f32
    %374 = vector.broadcast %cst_144 : f32 to vector<8x128xf32>
    %375 = arith.subf %374, %368 : vector<8x128xf32>
    %376 = arith.mulf %375, %351 : vector<8x128xf32>
    %377 = arith.mulf %368, %373 : vector<8x128xf32>
    %378 = arith.addf %376, %377 : vector<8x128xf32>
    %379 = arith.index_cast %c4_i32_138 : i32 to index
    %c0_145 = arith.constant 0 : index
    %c0_146 = arith.constant 0 : index
    %380 = vector.load %arg12[%379, %c0_145, %c0_146] : memref<8x8x128xf32, #tpu.memory_space<vmem>>, vector<1x8x128xf32>
    %381 = vector.shape_cast %380 : vector<1x8x128xf32> to vector<8x128xf32>
    %382 = vector.shape_cast %378 : vector<8x128xf32> to vector<1x8x128xf32>
    tpu.vector_store %arg12[%379, %c0_145, %c0_146], %382 {strides = array<i32>} : memref<8x8x128xf32, #tpu.memory_space<vmem>>, vector<1x8x128xf32>,
    %c5_i32_147 = arith.constant 5 : i32
    %383 = arith.index_cast %c5_i32_147 : i32 to index
    %c0_148 = arith.constant 0 : index
    %c0_149 = arith.constant 0 : index
    %384 = vector.load %arg14[%383, %c0_148, %c0_149] : memref<8x8x384xf32, #tpu.memory_space<vmem>>, vector<1x8x384xf32>
    %385 = vector.shape_cast %384 : vector<1x8x384xf32> to vector<8x384xf32>
    %cst_150 = arith.constant dense<0.000000e+00> : vector<8x256xf32>
    %386 = tpu.matmul %378, %244, %cst_150 {dimension_numbers = #tpu.dot_dimension_numbers<[1], [0], [0], [1], [0, 0, 1, 1], [], []>} : vector<8x128xf32>, vector<128x256xf32>, vector<8x256xf32> -> vector<8x256xf32>
    %387 = vector.extract_strided_slice %385 {offsets = [0, 0], sizes = [8, 256], strides = [1, 1]} : vector<8x384xf32> to vector<8x256xf32>
    %388 = arith.addf %387, %386 : vector<8x256xf32>
    %389 = arith.negf %388 : vector<8x256xf32>
    %390 = math.exp %389 : vector<8x256xf32>
    %cst_151 = arith.constant 1.000000e+00 : f32
    %391 = vector.broadcast %cst_151 : f32 to vector<8x256xf32>
    %392 = arith.addf %391, %390 : vector<8x256xf32>
    %393 = arith.divf %391, %392 : vector<8x256xf32>
    %394 = vector.extract_strided_slice %393 {offsets = [0, 0], sizes = [8, 128], strides = [1, 1]} : vector<8x256xf32> to vector<8x128xf32>
    %395 = vector.extract_strided_slice %393 {offsets = [0, 128], sizes = [8, 128], strides = [1, 1]} : vector<8x256xf32> to vector<8x128xf32>
    %396 = arith.mulf %394, %378 : vector<8x128xf32>
    %cst_152 = arith.constant dense<0.000000e+00> : vector<8x128xf32>
    %397 = tpu.matmul %396, %245, %cst_152 {dimension_numbers = #tpu.dot_dimension_numbers<[1], [0], [0], [1], [0, 0, 1, 1], [], []>} : vector<8x128xf32>, vector<128x128xf32>, vector<8x128xf32> -> vector<8x128xf32>
    %398 = vector.extract_strided_slice %385 {offsets = [0, 256], sizes = [8, 128], strides = [1, 1]} : vector<8x384xf32> to vector<8x128xf32>
    %399 = arith.addf %397, %398 : vector<8x128xf32>
    %400 = math.tanh %399 : vector<8x128xf32>
    %cst_153 = arith.constant 1.000000e+00 : f32
    %401 = vector.broadcast %cst_153 : f32 to vector<8x128xf32>
    %402 = arith.subf %401, %395 : vector<8x128xf32>
    %403 = arith.mulf %402, %378 : vector<8x128xf32>
    %404 = arith.mulf %395, %400 : vector<8x128xf32>
    %405 = arith.addf %403, %404 : vector<8x128xf32>
    %406 = arith.index_cast %c5_i32_147 : i32 to index
    %c0_154 = arith.constant 0 : index
    %c0_155 = arith.constant 0 : index
    %407 = vector.load %arg12[%406, %c0_154, %c0_155] : memref<8x8x128xf32, #tpu.memory_space<vmem>>, vector<1x8x128xf32>
    %408 = vector.shape_cast %407 : vector<1x8x128xf32> to vector<8x128xf32>
    %409 = vector.shape_cast %405 : vector<8x128xf32> to vector<1x8x128xf32>
    tpu.vector_store %arg12[%406, %c0_154, %c0_155], %409 {strides = array<i32>} : memref<8x8x128xf32, #tpu.memory_space<vmem>>, vector<1x8x128xf32>,
    %c6_i32_156 = arith.constant 6 : i32
    %410 = arith.index_cast %c6_i32_156 : i32 to index
    %c0_157 = arith.constant 0 : index
    %c0_158 = arith.constant 0 : index
    %411 = vector.load %arg14[%410, %c0_157, %c0_158] : memref<8x8x384xf32, #tpu.memory_space<vmem>>, vector<1x8x384xf32>
    %412 = vector.shape_cast %411 : vector<1x8x384xf32> to vector<8x384xf32>
    %cst_159 = arith.constant dense<0.000000e+00> : vector<8x256xf32>
    %413 = tpu.matmul %405, %244, %cst_159 {dimension_numbers = #tpu.dot_dimension_numbers<[1], [0], [0], [1], [0, 0, 1, 1], [], []>} : vector<8x128xf32>, vector<128x256xf32>, vector<8x256xf32> -> vector<8x256xf32>
    %414 = vector.extract_strided_slice %412 {offsets = [0, 0], sizes = [8, 256], strides = [1, 1]} : vector<8x384xf32> to vector<8x256xf32>
    %415 = arith.addf %414, %413 : vector<8x256xf32>
    %416 = arith.negf %415 : vector<8x256xf32>
    %417 = math.exp %416 : vector<8x256xf32>
    %cst_160 = arith.constant 1.000000e+00 : f32
    %418 = vector.broadcast %cst_160 : f32 to vector<8x256xf32>
    %419 = arith.addf %418, %417 : vector<8x256xf32>
    %420 = arith.divf %418, %419 : vector<8x256xf32>
    %421 = vector.extract_strided_slice %420 {offsets = [0, 0], sizes = [8, 128], strides = [1, 1]} : vector<8x256xf32> to vector<8x128xf32>
    %422 = vector.extract_strided_slice %420 {offsets = [0, 128], sizes = [8, 128], strides = [1, 1]} : vector<8x256xf32> to vector<8x128xf32>
    %423 = arith.mulf %421, %405 : vector<8x128xf32>
    %cst_161 = arith.constant dense<0.000000e+00> : vector<8x128xf32>
    %424 = tpu.matmul %423, %245, %cst_161 {dimension_numbers = #tpu.dot_dimension_numbers<[1], [0], [0], [1], [0, 0, 1, 1], [], []>} : vector<8x128xf32>, vector<128x128xf32>, vector<8x128xf32> -> vector<8x128xf32>
    %425 = vector.extract_strided_slice %412 {offsets = [0, 256], sizes = [8, 128], strides = [1, 1]} : vector<8x384xf32> to vector<8x128xf32>
    %426 = arith.addf %424, %425 : vector<8x128xf32>
    %427 = math.tanh %426 : vector<8x128xf32>
    %cst_162 = arith.constant 1.000000e+00 : f32
    %428 = vector.broadcast %cst_162 : f32 to vector<8x128xf32>
    %429 = arith.subf %428, %422 : vector<8x128xf32>
    %430 = arith.mulf %429, %405 : vector<8x128xf32>
    %431 = arith.mulf %422, %427 : vector<8x128xf32>
    %432 = arith.addf %430, %431 : vector<8x128xf32>
    %433 = arith.index_cast %c6_i32_156 : i32 to index
    %c0_163 = arith.constant 0 : index
    %c0_164 = arith.constant 0 : index
    %434 = vector.load %arg12[%433, %c0_163, %c0_164] : memref<8x8x128xf32, #tpu.memory_space<vmem>>, vector<1x8x128xf32>
    %435 = vector.shape_cast %434 : vector<1x8x128xf32> to vector<8x128xf32>
    %436 = vector.shape_cast %432 : vector<8x128xf32> to vector<1x8x128xf32>
    tpu.vector_store %arg12[%433, %c0_163, %c0_164], %436 {strides = array<i32>} : memref<8x8x128xf32, #tpu.memory_space<vmem>>, vector<1x8x128xf32>,
    %c7_i32_165 = arith.constant 7 : i32
    %437 = arith.index_cast %c7_i32_165 : i32 to index
    %c0_166 = arith.constant 0 : index
    %c0_167 = arith.constant 0 : index
    %438 = vector.load %arg14[%437, %c0_166, %c0_167] : memref<8x8x384xf32, #tpu.memory_space<vmem>>, vector<1x8x384xf32>
    %439 = vector.shape_cast %438 : vector<1x8x384xf32> to vector<8x384xf32>
    %cst_168 = arith.constant dense<0.000000e+00> : vector<8x256xf32>
    %440 = tpu.matmul %432, %244, %cst_168 {dimension_numbers = #tpu.dot_dimension_numbers<[1], [0], [0], [1], [0, 0, 1, 1], [], []>} : vector<8x128xf32>, vector<128x256xf32>, vector<8x256xf32> -> vector<8x256xf32>
    %441 = vector.extract_strided_slice %439 {offsets = [0, 0], sizes = [8, 256], strides = [1, 1]} : vector<8x384xf32> to vector<8x256xf32>
    %442 = arith.addf %441, %440 : vector<8x256xf32>
    %443 = arith.negf %442 : vector<8x256xf32>
    %444 = math.exp %443 : vector<8x256xf32>
    %cst_169 = arith.constant 1.000000e+00 : f32
    %445 = vector.broadcast %cst_169 : f32 to vector<8x256xf32>
    %446 = arith.addf %445, %444 : vector<8x256xf32>
    %447 = arith.divf %445, %446 : vector<8x256xf32>
    %448 = vector.extract_strided_slice %447 {offsets = [0, 0], sizes = [8, 128], strides = [1, 1]} : vector<8x256xf32> to vector<8x128xf32>
    %449 = vector.extract_strided_slice %447 {offsets = [0, 128], sizes = [8, 128], strides = [1, 1]} : vector<8x256xf32> to vector<8x128xf32>
    %450 = arith.mulf %448, %432 : vector<8x128xf32>
    %cst_170 = arith.constant dense<0.000000e+00> : vector<8x128xf32>
    %451 = tpu.matmul %450, %245, %cst_170 {dimension_numbers = #tpu.dot_dimension_numbers<[1], [0], [0], [1], [0, 0, 1, 1], [], []>} : vector<8x128xf32>, vector<128x128xf32>, vector<8x128xf32> -> vector<8x128xf32>
    %452 = vector.extract_strided_slice %439 {offsets = [0, 256], sizes = [8, 128], strides = [1, 1]} : vector<8x384xf32> to vector<8x128xf32>
    %453 = arith.addf %451, %452 : vector<8x128xf32>
    %454 = math.tanh %453 : vector<8x128xf32>
    %cst_171 = arith.constant 1.000000e+00 : f32
    %455 = vector.broadcast %cst_171 : f32 to vector<8x128xf32>
    %456 = arith.subf %455, %449 : vector<8x128xf32>
    %457 = arith.mulf %456, %432 : vector<8x128xf32>
    %458 = arith.mulf %449, %454 : vector<8x128xf32>
    %459 = arith.addf %457, %458 : vector<8x128xf32>
    %460 = arith.index_cast %c7_i32_165 : i32 to index
    %c0_172 = arith.constant 0 : index
    %c0_173 = arith.constant 0 : index
    %461 = vector.load %arg12[%460, %c0_172, %c0_173] : memref<8x8x128xf32, #tpu.memory_space<vmem>>, vector<1x8x128xf32>
    %462 = vector.shape_cast %461 : vector<1x8x128xf32> to vector<8x128xf32>
    %463 = vector.shape_cast %459 : vector<8x128xf32> to vector<1x8x128xf32>
    tpu.vector_store %arg12[%460, %c0_172, %c0_173], %463 {strides = array<i32>} : memref<8x8x128xf32, #tpu.memory_space<vmem>>, vector<1x8x128xf32>,
    %c8_i32_174 = arith.constant 8 : i32
    %c1_175 = arith.constant 1 : index
    %c0_176 = arith.constant 0 : index
    %c0_177 = arith.constant 0 : index
    %464 = vector.load %arg15[%c1_175, %c0_176, %c0_177] : memref<2x8x128xf32, #tpu.memory_space<vmem>>, vector<1x8x128xf32>
    %465 = vector.shape_cast %464 : vector<1x8x128xf32> to vector<8x128xf32>
    %466 = vector.shape_cast %459 : vector<8x128xf32> to vector<1x8x128xf32>
    tpu.vector_store %arg15[%c1_175, %c0_176, %c0_177], %466 {strides = array<i32>} : memref<2x8x128xf32, #tpu.memory_space<vmem>>, vector<1x8x128xf32>,
    %c0_i32_178 = arith.constant 0 : i32
    %467 = arith.cmpi eq, %arg1, %c0_i32_178 : i32
    %468 = arith.extui %467 : i1 to i32
    %c0_i32_179 = arith.constant 0 : i32
    %469 = arith.cmpi ne, %468, %c0_i32_179 : i32
    scf.if %469 {
      %c0_180 = arith.constant 0 : index
      %c0_181 = arith.constant 0 : index
      %c0_182 = arith.constant 0 : index
      %470 = vector.load %arg15[%c0_180, %c0_181, %c0_182] : memref<2x8x128xf32, #tpu.memory_space<vmem>>, vector<2x8x128xf32>
      %c0_183 = arith.constant 0 : index
      %c0_184 = arith.constant 0 : index
      %c0_185 = arith.constant 0 : index
      %471 = vector.load %arg13[%c0_183, %c0_184, %c0_185] : memref<2x8x128xf32, #tpu.memory_space<vmem>>, vector<2x8x128xf32>
      tpu.vector_store %arg13[%c0_183, %c0_184, %c0_185], %470 {strides = array<i32>} : memref<2x8x128xf32, #tpu.memory_space<vmem>>, vector<2x8x128xf32>,
    } else {
    }
    return
  }
  func.func @transform_0(%arg0: i32, %arg1: i32) -> (i32, i32, i32) {
    %c0_i32 = arith.constant 0 : i32
    %c0_i32_0 = arith.constant 0 : i32
    return %arg1, %arg0, %c0_i32 : i32, i32, i32
  }
  func.func @transform_1(%arg0: i32, %arg1: i32) -> (i32, i32, i32) {
    %c0_i32 = arith.constant 0 : i32
    %c0_i32_0 = arith.constant 0 : i32
    %c0_i32_1 = arith.constant 0 : i32
    return %c0_i32, %arg0, %c0_i32_0 : i32, i32, i32
  }
  func.func @transform_2(%arg0: i32, %arg1: i32) -> (i32, i32) {
    %c0_i32 = arith.constant 0 : i32
    %c0_i32_0 = arith.constant 0 : i32
    %c0_i32_1 = arith.constant 0 : i32
    return %c0_i32, %c0_i32_0 : i32, i32
  }
  func.func @transform_3(%arg0: i32, %arg1: i32) -> (i32, i32) {
    %c0_i32 = arith.constant 0 : i32
    %c0_i32_0 = arith.constant 0 : i32
    %c0_i32_1 = arith.constant 0 : i32
    return %c0_i32, %c0_i32_0 : i32, i32
  }
  func.func @transform_4(%arg0: i32, %arg1: i32) -> (i32, i32) {
    %c0_i32 = arith.constant 0 : i32
    %c0_i32_0 = arith.constant 0 : i32
    %c0_i32_1 = arith.constant 0 : i32
    return %c0_i32, %c0_i32_0 : i32, i32
  }
  func.func @transform_5(%arg0: i32, %arg1: i32) -> (i32, i32) {
    %c0_i32 = arith.constant 0 : i32
    %c0_i32_0 = arith.constant 0 : i32
    %c0_i32_1 = arith.constant 0 : i32
    return %c0_i32, %c0_i32_0 : i32, i32
  }
  func.func @transform_6(%arg0: i32, %arg1: i32) -> (i32, i32) {
    %c0_i32 = arith.constant 0 : i32
    %c0_i32_0 = arith.constant 0 : i32
    %c0_i32_1 = arith.constant 0 : i32
    return %c0_i32, %c0_i32_0 : i32, i32
  }
  func.func @transform_7(%arg0: i32, %arg1: i32) -> (i32, i32) {
    %c0_i32 = arith.constant 0 : i32
    %c0_i32_0 = arith.constant 0 : i32
    %c0_i32_1 = arith.constant 0 : i32
    return %c0_i32, %c0_i32_0 : i32, i32
  }
  func.func @transform_8(%arg0: i32, %arg1: i32) -> (i32, i32) {
    %c0_i32 = arith.constant 0 : i32
    %c0_i32_0 = arith.constant 0 : i32
    %c0_i32_1 = arith.constant 0 : i32
    return %c0_i32, %c0_i32_0 : i32, i32
  }
  func.func @transform_9(%arg0: i32, %arg1: i32) -> (i32, i32) {
    %c0_i32 = arith.constant 0 : i32
    %c0_i32_0 = arith.constant 0 : i32
    %c0_i32_1 = arith.constant 0 : i32
    return %c0_i32, %c0_i32_0 : i32, i32
  }
  func.func @transform_10(%arg0: i32, %arg1: i32) -> (i32, i32, i32) {
    %c0_i32 = arith.constant 0 : i32
    %c0_i32_0 = arith.constant 0 : i32
    return %arg1, %arg0, %c0_i32 : i32, i32, i32
  }
  func.func @transform_11(%arg0: i32, %arg1: i32) -> (i32, i32, i32) {
    %c0_i32 = arith.constant 0 : i32
    %c0_i32_0 = arith.constant 0 : i32
    %c0_i32_1 = arith.constant 0 : i32
    return %c0_i32, %arg0, %c0_i32_0 : i32, i32, i32
  }
}

</mosaic_0001>

<bundles_post_ra>
// kernel: tpu_custom_call.1
= control target key start
LH: loop header
LB: loop body
LE: loop exit
PB: predicated region body
PF: predicated region fallthrough
CT: control target
= control target key end

     0   :  { %17 = vsyncpa [#allocation5], 0  ;;  %s7119_s0 = inlined_call_operand.hbm [shape: f32[8,8,16], index: 0, kind: input, shape index: {}]   ;;  %s7120_s1 = inlined_call_operand.hbm [shape: f32[2,8,128], index: 1, kind: input, shape index: {}]   ;;  %s7121_s2 = inlined_call_operand.hbm [shape: f32[16,384], index: 2, kind: input, shape index: {}]   ;;  %s7122_s3 = inlined_call_operand.hbm [shape: f32[128,256], index: 3, kind: input, shape index: {}]   ;;  %s7123_s4 = inlined_call_operand.hbm [shape: f32[128,128], index: 4, kind: input, shape index: {}]   ;;  %s7124_s5 = inlined_call_operand.vmem [shape: f32[1,384], index: 5, kind: input, shape index: {}]   ;;  %s7125_s6 = inlined_call_operand.hbm [shape: f32[128,384], index: 6, kind: input, shape index: {}]   ;;  %s7126_s7 = inlined_call_operand.hbm [shape: f32[128,256], index: 7, kind: input, shape index: {}]   ;;  %s7127_s8 = inlined_call_operand.hbm [shape: f32[128,128], index: 8, kind: input, shape index: {}]   ;;  %s7128_s9 = inlined_call_operand.vmem [shape: f32[1,384], index: 9, kind: input, shape index: {}]   ;;  %s7129_s10 = inlined_call_operand.hbm [shape: f32[8,8,128], index: 10, kind: output, shape index: {0}]   ;;  %s7130_s11 = inlined_call_operand.hbm [shape: f32[2,8,128], index: 11, kind: output, shape index: {1}]  }
   0x1   :  { %18 = vsyncpa [#allocation8], 0 }
   0x2   :  { %19 = vsyncpa [#allocation11], 0 }
   0x3   :  { %20 = vsyncpa [#allocation14], 0 }
   0x4   :  { %21 = vsyncpa [#allocation17], 0 }
   0x5   :  { %22 = vsyncpa [#allocation6], 0 }
   0x6   :  { %23 = vsyncpa [#allocation20], 0  ;;  %s5987_s17 = smov [#allocation7]   ;;  %s5988_s19 = smov [#allocation10]  }
   0x7   :  { %s41_s18 = sshll.u32 %s5987_s17, 4  ;;  %s65_s20 = sshll.u32 %s5988_s19, 4  ;;  %s42_s18 = int_to_ptr.vmem [resolvable:$true] %s41_s18  ;;  %s6066_s20 = int_to_ptr.vmem [resolvable:$true] %s65_s20 }
   0x8   :  { %s5753_s23 = scalar_lea.hbm %s7120_s1, 256 }
   0x9   :  { %p5754_p0 = scmp.ne.s32.totalorder %s7120_s1, %s5753_s23  ;;  %p5757_p1 = scmp.lt.u32.totalorder %s5753_s23, %s7120_s1 }
   0xb   :  { %p5759_p2 = pnand %p5757_p1, %p5754_p0 }
   0xd   :  { %5762 = shalt.err (!%p5759_p2)
}
   0xe   :  { %s5763_s28 = scalar_lea.vmem %s42_s18, 256  ;;  %p5768_p4 = scmp.lt.s32.totalorder %s42_s18, %s42_s18 }
   0xf   :  { %p5764_p3 = scmp.ne.s32.totalorder %s42_s18, %s5763_s28  ;;  %p5769_p5 = scmp.lt.s32.totalorder %s5763_s28, %s5763_s28 }
  0x11   :  { %p5770_p6 = por %p5769_p5, %p5768_p4 }
  0x13   :  { %p5771_p7 = pnand %p5770_p6, %p5764_p3 }
  0x15   :  { %5774 = shalt.err (!%p5771_p7)
}
  0x16   :  { %s5989_s29 = smov 128   ;;  %s5990_s30 = smov 8  }
  0x17   :  { %47 = dma.hbm_to_vmem [thread:$0]  %s7120_s1, 256, %s42_s18, [#allocation8], %s5989_s29, %s5989_s29, %s5990_s30  }
  0x18   :  { %s5775_s16 = scalar_lea.hbm %s7122_s3, 4096 }
  0x19   :  { %p5776_p8 = scmp.ne.s32.totalorder %s7122_s3, %s5775_s16  ;;  %p5779_p9 = scmp.lt.u32.totalorder %s5775_s16, %s7122_s3 }
  0x1b   :  { %p5781_p10 = pnand %p5779_p9, %p5776_p8 }
  0x1d   :  { %5784 = shalt.err (!%p5781_p10)
}
  0x1e   :  { %s5785_s23 = scalar_lea.vmem %s6066_s20, 4096  ;;  %p5790_p12 = scmp.lt.s32.totalorder %s6066_s20, %s6066_s20 }
  0x1f   :  { %p5786_p11 = scmp.ne.s32.totalorder %s6066_s20, %s5785_s23  ;;  %p5791_p13 = scmp.lt.s32.totalorder %s5785_s23, %s5785_s23 }
  0x21   :  { %p5792_p0 = por %p5791_p13, %p5790_p12 }
  0x23   :  { %p5793_p1 = pnand %p5792_p0, %p5786_p11 }
  0x25   :  { %5796 = shalt.err (!%p5793_p1)
}
  0x26   :  { %s5991_s1 = smov 256   ;;  %s5992_s18 = smov 16  }
  0x27   :  { %71 = dma.hbm_to_vmem [thread:$0]  %s7122_s3, 4096, %s6066_s20, [#allocation11], %s5991_s1, %s5991_s1, %s5992_s18  }
  0x28   :  { %s5993_s26 = smov [#allocation13]   ;;  %s5994_s28 = smov [#allocation4]  }
  0x29   :  { %s91_s27 = sshll.u32 %s5993_s26, 4  ;;  %s29_s12 = sshll.u32 %s5994_s28, 4  ;;  %s92_s27 = int_to_ptr.vmem [resolvable:$true] %s91_s27  ;;  %s6103_s12 = int_to_ptr.vmem [resolvable:$true] %s29_s12 }
  0x2a   :  { %s5797_s15 = scalar_lea.hbm %s7125_s6, 6144 }
  0x2b   :  { %p5798_p2 = scmp.ne.s32.totalorder %s7125_s6, %s5797_s15  ;;  %p5801_p3 = scmp.lt.u32.totalorder %s5797_s15, %s7125_s6 }
  0x2d   :  { %p5803_p4 = pnand %p5801_p3, %p5798_p2 }
  0x2f   :  { %5806 = shalt.err (!%p5803_p4)
}
  0x30   :  { %s5807_s3 = scalar_lea.vmem %s92_s27, 6144  ;;  %p5812_p6 = scmp.lt.s32.totalorder %s92_s27, %s92_s27 }
  0x31   :  { %p5808_p5 = scmp.ne.s32.totalorder %s92_s27, %s5807_s3  ;;  %p5813_p7 = scmp.lt.s32.totalorder %s5807_s3, %s5807_s3 }
  0x33   :  { %p5814_p8 = por %p5813_p7, %p5812_p6 }
  0x35   :  { %p5815_p9 = pnand %p5814_p8, %p5808_p5 }
  0x37   :  { %5818 = shalt.err (!%p5815_p9)
}
  0x38   :  { %s5995_s20 = smov 384   ;;  %s5996_s22 = smov 24  }
  0x39   :  { %97 = dma.hbm_to_vmem [thread:$0]  %s7125_s6, 6144, %s92_s27, [#allocation14], %s5995_s20, %s5995_s20, %s5996_s22  }
  0x3a   :  { %s5819_s28 = scalar_lea.hbm %s7119_s0, 1024 }
  0x3b   :  { %p5820_p10 = scmp.ne.s32.totalorder %s7119_s0, %s5819_s28  ;;  %p5823_p11 = scmp.lt.u32.totalorder %s5819_s28, %s7119_s0 }
  0x3d   :  { %p5825_p12 = pnand %p5823_p11, %p5820_p10 }
  0x3f   :  { %5828 = shalt.err (!%p5825_p12)
}
  0x40   :  { %s5829_s17 = scalar_lea.vmem %s6103_s12, 1024  ;;  %p5834_p0 = scmp.lt.s32.totalorder %s6103_s12, %s6103_s12 }
  0x41   :  { %p5830_p13 = scmp.ne.s32.totalorder %s6103_s12, %s5829_s17  ;;  %p5835_p1 = scmp.lt.s32.totalorder %s5829_s17, %s5829_s17 }
  0x43   :  { %p5836_p2 = por %p5835_p1, %p5834_p0 }
  0x45   :  { %p5837_p3 = pnand %p5836_p2, %p5830_p13 }
  0x47   :  { %5840 = shalt.err (!%p5837_p3)
}
  0x48   :  { %35 = dma.hbm_to_vmem [thread:$0]  %s7119_s0, 1024, %s6103_s12, [#allocation5], %s5989_s29, %s5989_s29, %s5990_s30  }
  0x49   :  { %s5997_s19 = smov [#allocation9]   ;;  %s5998_s3 = smov [#allocation12]  }
  0x4a   :  { %s53_s21 = sshll.u32 %s5997_s19, 4  ;;  %s77_s23 = sshll.u32 %s5998_s3, 4  ;;  %s54_s21 = int_to_ptr.vmem [resolvable:$true] %s53_s21  ;;  %s6140_s23 = int_to_ptr.vmem [resolvable:$true] %s77_s23 }
  0x4b   :  { %s5841_s26 = scalar_lea.hbm %s7121_s2, 768 }
  0x4c   :  { %p5842_p4 = scmp.ne.s32.totalorder %s7121_s2, %s5841_s26  ;;  %p5845_p5 = scmp.lt.u32.totalorder %s5841_s26, %s7121_s2 }
  0x4e   :  { %p5847_p6 = pnand %p5845_p5, %p5842_p4 }
  0x50   :  { %5850 = shalt.err (!%p5847_p6)
}
  0x51   :  { %s5851_s0 = scalar_lea.vmem %s54_s21, 768  ;;  %p5856_p8 = scmp.lt.s32.totalorder %s54_s21, %s54_s21 }
  0x52   :  { %p5852_p7 = scmp.ne.s32.totalorder %s54_s21, %s5851_s0  ;;  %p5857_p9 = scmp.lt.s32.totalorder %s5851_s0, %s5851_s0 }
  0x54   :  { %p5858_p10 = por %p5857_p9, %p5856_p8 }
  0x56   :  { %p5859_p11 = pnand %p5858_p10, %p5852_p7 }
  0x58   :  { %5862 = shalt.err (!%p5859_p11)
}
  0x59   :  { %59 = dma.hbm_to_vmem [thread:$0]  %s7121_s2, 768, %s54_s21, [#allocation8], %s5995_s20, %s5995_s20, %s5996_s22  }
  0x5a   :  { %s5863_s27 = scalar_lea.hbm %s7123_s4, 2048 }
  0x5b   :  { %p5864_p12 = scmp.ne.s32.totalorder %s7123_s4, %s5863_s27  ;;  %p5867_p13 = scmp.lt.u32.totalorder %s5863_s27, %s7123_s4 }
  0x5d   :  { %p5869_p0 = pnand %p5867_p13, %p5864_p12 }
  0x5f   :  { %5872 = shalt.err (!%p5869_p0)
}
  0x60   :  { %s5873_s26 = scalar_lea.vmem %s6140_s23, 2048  ;;  %p5878_p2 = scmp.lt.s32.totalorder %s6140_s23, %s6140_s23 }
  0x61   :  { %p5874_p1 = scmp.ne.s32.totalorder %s6140_s23, %s5873_s26  ;;  %p5879_p3 = scmp.lt.s32.totalorder %s5873_s26, %s5873_s26 }
  0x63   :  { %p5880_p4 = por %p5879_p3, %p5878_p2 }
  0x65   :  { %p5881_p5 = pnand %p5880_p4, %p5874_p1 }
  0x67   :  { %5884 = shalt.err (!%p5881_p5)
}
  0x68   :  { %83 = dma.hbm_to_vmem [thread:$0]  %s7123_s4, 2048, %s6140_s23, [#allocation11], %s5989_s29, %s5989_s29, %s5990_s30  }
  0x69   :  { %s5999_s22 = smov [#allocation15]   ;;  %s6000_s28 = smov [#allocation16]  }
  0x6a   :  { %s103_s21 = sshll.u32 %s5999_s22, 4  ;;  %s115_s13 = sshll.u32 %s6000_s28, 4  ;;  %s104_s21 = int_to_ptr.vmem [resolvable:$true] %s103_s21  ;;  %s6177_s13 = int_to_ptr.vmem [resolvable:$true] %s115_s13 }
  0x6b   :  { %s5885_s0 = scalar_lea.hbm %s7126_s7, 4096 }
  0x6c   :  { %p5886_p6 = scmp.ne.s32.totalorder %s7126_s7, %s5885_s0  ;;  %p5889_p7 = scmp.lt.u32.totalorder %s5885_s0, %s7126_s7 }
  0x6e   :  { %p5891_p8 = pnand %p5889_p7, %p5886_p6 }
  0x70   :  { %5894 = shalt.err (!%p5891_p8)
}
  0x71   :  { %s5895_s4 = scalar_lea.vmem %s104_s21, 4096  ;;  %p5900_p10 = scmp.lt.s32.totalorder %s104_s21, %s104_s21 }
  0x72   :  { %p5896_p9 = scmp.ne.s32.totalorder %s104_s21, %s5895_s4  ;;  %p5901_p11 = scmp.lt.s32.totalorder %s5895_s4, %s5895_s4 }
  0x74   :  { %p5902_p12 = por %p5901_p11, %p5900_p10 }
  0x76   :  { %p5903_p13 = pnand %p5902_p12, %p5896_p9 }
  0x78   :  { %5906 = shalt.err (!%p5903_p13)
}
  0x79   :  { %109 = dma.hbm_to_vmem [thread:$0]  %s7126_s7, 4096, %s104_s21, [#allocation14], %s5991_s1, %s5991_s1, %s5992_s18  }
  0x7a   :  { %s5907_s24 = scalar_lea.hbm %s7127_s8, 2048 }
  0x7b   :  { %p5908_p0 = scmp.ne.s32.totalorder %s7127_s8, %s5907_s24  ;;  %p5911_p1 = scmp.lt.u32.totalorder %s5907_s24, %s7127_s8 }
  0x7d   :  { %p5913_p2 = pnand %p5911_p1, %p5908_p0 }
  0x7f   :  { %5916 = shalt.err (!%p5913_p2)
}
  0x80   :  { %s5917_s22 = scalar_lea.vmem %s6177_s13, 2048  ;;  %p5922_p4 = scmp.lt.s32.totalorder %s6177_s13, %s6177_s13 }
  0x81   :  { %p5918_p3 = scmp.ne.s32.totalorder %s6177_s13, %s5917_s22  ;;  %p5923_p5 = scmp.lt.s32.totalorder %s5917_s22, %s5917_s22 }
  0x83   :  { %p5924_p6 = por %p5923_p5, %p5922_p4 }
  0x85   :  { %p5925_p7 = pnand %p5924_p6, %p5918_p3 }
  0x87   :  { %5928 = shalt.err (!%p5925_p7)
}
  0x88   :  { %121 = dma.hbm_to_vmem [thread:$0]  %s7127_s8, 2048, %s6177_s13, [#allocation17], %s5989_s29, %s5989_s29, %s5990_s30  }
  0x89   :  { %5973 = dma.done.wait [#allocation5], 1024  }
  0x8a   :  { %5974 = vsyncadd [#allocation5], 4294966272 }
  0x8b   :  { %5975 = dma.done.wait [#allocation8], 1024  }
  0x8c   :  { %5976 = vsyncadd [#allocation8], 4294966272 }
  0x8d   :  { %5977 = dma.done.wait [#allocation11], 6144  }
  0x8e   :  { %5978 = vsyncadd [#allocation11], 4294961152 }
  0x8f   :  { %5979 = dma.done.wait [#allocation14], 10240  }
  0x90   :  { %5980 = vsyncadd [#allocation14], 4294957056 }
  0x91   :  { %5981 = dma.done.wait [#allocation17], 2048  }
  0x92   :  { %5982 = vsyncadd [#allocation17], 4294965248  ;;  %v6001_v0 = vmov 0.0   ;;  %v165_v1 = vld [vmem:[#allocation9 + $0x8] sm:$0xff]  ;;  %v168_v2 = vld [vmem:[#allocation9 + $0x20] sm:$0xff]  ;;  %vm187_vm0 = vcmask 130048  }
  0x93   :  { %276 = vmatprep.mubr.f32.mxu0 %v6001_v0  ;;  %v164_v3 = vld [vmem:[#allocation9] sm:$0xff]  ;;  %v4542_v4 = vpack.c.bf16 %v168_v2, %v165_v1  ;;  %v167_v5 = vld [vmem:[#allocation9 + $0x18] sm:$0xff]  ;;  %v156_v6 = vld [vmem:[#allocation4] sm:$0xff]  ;;  %v6002_v50 = vmov 0.0|0.0   ;;  %vm6003_vm1 = vmmov 0   ;;  %s6005_s13 = smov [#allocation19]  }
  0x94   :  { %v455_v7 = vld [vmem:[#allocation10 + $0x8] sm:$0xff]  ;;  %v4544_v8 = vpack.c.bf16 %v167_v5, %v164_v3  ;;  %v457_v9 = vld [vmem:[#allocation10 + $0x18] sm:$0xff]  ;;  %v454_v10 = vld [vmem:[#allocation10] sm:$0xff]  ;;  %3926 = vmatprep.mubr.msk.f32.mxu1 %vm187_vm0, %v156_v6  ;;  %s3548_s14 = sshll.u32 %s6005_s13, 4  ;;  %s7082_s14 = int_to_ptr.vmem [resolvable:$true] %s3548_s14 }
  0x95   :  { %v456_v11 = vld [vmem:[#allocation10 + $0x10] sm:$0xff]  ;;  %4543 = vmatprep.subr.bf16.mxu0 %v4542_v4  ;;  %v6216_v12 = vpack.c.bf16 %v457_v9, %v455_v7  ;;  %v459_v13 = vld [vmem:[#allocation10 + $0x28] sm:$0xff]  ;;  %v461_v14 = vld [vmem:[#allocation10 + $0x38] sm:$0xff] }
  0x96   :  { %4545 = vmatpush1.bf16.msra.mxu0 %v4544_v8  ;;  %v6218_v15 = vpack.c.bf16 %v456_v11, %v454_v10  ;;  %v6221_v16 = vpack.c.bf16 %v461_v14, %v459_v13  ;;  %v458_v17 = vld [vmem:[#allocation10 + $0x20] sm:$0xff]  ;;  %v460_v18 = vld [vmem:[#allocation10 + $0x30] sm:$0xff]  ;;  %v463_v19 = vld [vmem:[#allocation10 + $0x48] sm:$0xff] }
  0x97   :  { %4551 = vmatprep.subr.bf16.mxu0 %v6216_v12  ;;  %v465_v20 = vld [vmem:[#allocation10 + $0x58] sm:$0xff]  ;;  %v157_v21 = vld [vmem:[#allocation4 + $0x8] sm:$0xff]  ;;  %v6226_v22 = vpack.c.bf16 %v460_v18, %v458_v17  ;;  %v462_v24 = vld [vmem:[#allocation10 + $0x40] sm:$0xff] }
  0x98   :  { %v6229_v23 = vpack.c.bf16 %v465_v20, %v463_v19  ;;  %v464_v25 = vld [vmem:[#allocation10 + $0x50] sm:$0xff]  ;;  %v467_v26 = vld [vmem:[#allocation10 + $0x68] sm:$0xff]  ;;  %v469_v27 = vld [vmem:[#allocation10 + $0x78] sm:$0xff] }
  0x99   :  { %3568 = vmatmul.mubr.msk.f32.vlgmr.msra.gmra.mrb[0].mxu0 %vm187_vm0, %v156_v6  ;;  %v158_v28 = vld [vmem:[#allocation4 + $0x10] sm:$0xff]  ;;  %v6234_v29 = vpack.c.bf16 %v464_v25, %v462_v24  ;;  %v6237_v30 = vpack.c.bf16 %v469_v27, %v467_v26  ;;  %v466_v31 = vld [vmem:[#allocation10 + $0x60] sm:$0xff]  ;;  %v471_v33 = vld [vmem:[#allocation10 + $0x88] sm:$0xff] }
  0x9a   :  { %4553 = vmatpush1.bf16.msra.mxu0 %v6218_v15  ;;  %282 = vmatprep.mubr.f32.mxu0 %v6001_v0  ;;  %v468_v32 = vld [vmem:[#allocation10 + $0x70] sm:$0xff]  ;;  %v473_v34 = vld [vmem:[#allocation10 + $0x98] sm:$0xff]  ;;  %v166_v35 = vld [vmem:[#allocation9 + $0x10] sm:$0xff] }
  0x9b   :  { %4555 = vmatprep.subr.bf16.mxu0 %v6221_v16  ;;  %v169_v36 = vld [vmem:[#allocation9 + $0x28] sm:$0xff]  ;;  %v6242_v38 = vpack.c.bf16 %v468_v32, %v466_v31  ;;  %v6245_v40 = vpack.c.bf16 %v473_v34, %v471_v33  ;;  %v470_v41 = vld [vmem:[#allocation10 + $0x80] sm:$0xff]  ;;  %v472_v42 = vld [vmem:[#allocation10 + $0x90] sm:$0xff] }
  0x9c   :  { %v159_v37 = vld [vmem:[#allocation4 + $0x18] sm:$0xff]  ;;  %v4546_v39 = vpack.c.bf16 %v169_v36, %v166_v35  ;;  %v475_v43 = vld [vmem:[#allocation10 + $0xa8] sm:$0xff]  ;;  %v160_v45 = vld [vmem:[#allocation4 + $0x20] sm:$0xff]  ;;  %v6250_v46 = vpack.c.bf16 %v472_v42, %v470_v41  ;;  %v172_v36 = vlaneseq }
  0x9d   :  { %3569 = vmatmul.mubr.msk.f32.gmra.mrb[2].mxu0 %vm187_vm0, %v157_v21  ;;  %v477_v44 = vld [vmem:[#allocation10 + $0xb8] sm:$0xff]  ;;  %v474_v48 = vld [vmem:[#allocation10 + $0xa0] sm:$0xff]  ;;  %v476_v49 = vld [vmem:[#allocation10 + $0xb0] sm:$0xff] }
  0x9e   :  { %4557 = vmatpush1.bf16.msra.mxu0 %v6226_v22  ;;  %288 = vmatprep.mubr.f32.mxu0 %v6001_v0  ;;  %v6253_v47 = vpack.c.bf16 %v477_v44, %v475_v43  ;;  %v479_v51 = vld [vmem:[#allocation10 + $0xc8] sm:$0xff]  ;;  %v481_v52 = vld [vmem:[#allocation10 + $0xd8] sm:$0xff]  ;;  %v6261_v54 = vpack.c.bf16 %v476_v49, %v474_v48  ;;  %v478_v56 = vld [vmem:[#allocation10 + $0xc0] sm:$0xff] }
  0x9f   :  { %4559 = vmatprep.subr.bf16.mxu0 %v6229_v23  ;;  %4547 = vmatprep.subr.bf16.mxu1 %v4546_v39  ;;  %v161_v53 = vld [vmem:[#allocation4 + $0x28] sm:$0xff]  ;;  %v6264_v55 = vpack.c.bf16 %v481_v52, %v479_v51  ;;  %v480_v57 = vld [vmem:[#allocation10 + $0xd0] sm:$0xff]  ;;  %v485_v59 = vld [vmem:[#allocation10 + $0xf8] sm:$0xff] }
  0xa0   :  { %4549 = vmatpush3.bf16.msra.mxu1 %v4546_v39  ;;  %v483_v58 = vld [vmem:[#allocation10 + $0xe8] sm:$0xff]  ;;  %v162_v60 = vld [vmem:[#allocation4 + $0x30] sm:$0xff]  ;;  %v6271_v61 = vpack.c.bf16 %v480_v57, %v478_v56  ;;  %v482_v63 = vld [vmem:[#allocation10 + $0xe0] sm:$0xff] }
  0xa1   :  { %3570 = vmatmul.mubr.msk.f32.gmra.mrb[4].mxu0 %vm187_vm0, %v158_v28  ;;  %4582 = vmatprep.subr.bf16.mxu1 %v6002_v50  ;;  %v6274_v62 = vpack.c.bf16 %v485_v59, %v483_v58  ;;  %v484_v1 = vld [vmem:[#allocation10 + $0xf0] sm:$0xff]  ;;  %v163_v2 = vld [vmem:[#allocation4 + $0x38] sm:$0xff]  ;;  %v6288_v4 = vld [vmem:[#allocation7] sm:$0xff] }
  0xa2   :  { %4561 = vmatpush1.bf16.msra.mxu0 %v6234_v29  ;;  %294 = vmatprep.mubr.f32.mxu0 %v6001_v0  ;;  %v6281_v3 = vpack.c.bf16 %v484_v1, %v482_v63  ;;  %v486_v5 = vld [vmem:[#allocation12] sm:$0xff]  ;;  %v487_v6 = vld [vmem:[#allocation12 + $0x8] sm:$0xff]  ;;  %v488_v8 = vld [vmem:[#allocation12 + $0x10] sm:$0xff] }
  0xa3   :  { %4563 = vmatprep.subr.bf16.mxu0 %v6237_v30  ;;  %3927 = vmatmul.mubr.msk.f32.vlgmr.msra.gmra.mrb[0].mxu1 %vm187_vm0, %v157_v21  ;;  %v6309_v7 = vpack.c.bf16 %v487_v6, %v486_v5  ;;  %v489_v9 = vld [vmem:[#allocation12 + $0x18] sm:$0xff]  ;;  %v490_v11 = vld [vmem:[#allocation12 + $0x20] sm:$0xff]  ;;  %v491_v13 = vld [vmem:[#allocation12 + $0x28] sm:$0xff] }
  0xa4   :  { %3929 = vmatprep.mubr.msk.f32.mxu1 %vm187_vm0, %v158_v28  ;;  %v6313_v10 = vpack.c.bf16 %v489_v9, %v488_v8  ;;  %v6317_v14 = vpack.c.bf16 %v491_v13, %v490_v11  ;;  %v492_v17 = vld [vmem:[#allocation12 + $0x30] sm:$0xff]  ;;  %v493_v18 = vld [vmem:[#allocation12 + $0x38] sm:$0xff]  ;;  %v494_v20 = vld [vmem:[#allocation12 + $0x40] sm:$0xff] }
  0xa5   :  { %3571 = vmatmul.mubr.msk.f32.gmra.mrb[6].mxu0 %vm187_vm0, %v159_v37  ;;  %4584 = vmatpush3.bf16.msra.mxu1 %v6309_v7  ;;  %v6321_v19 = vpack.c.bf16 %v493_v18, %v492_v17  ;;  %v495_v21 = vld [vmem:[#allocation12 + $0x48] sm:$0xff]  ;;  %v496_v25 = vld [vmem:[#allocation12 + $0x50] sm:$0xff]  ;;  %v497_v26 = vld [vmem:[#allocation12 + $0x58] sm:$0xff] }
  0xa6   :  { %4565 = vmatpush1.bf16.msra.mxu0 %v6242_v38  ;;  %300 = vmatprep.mubr.f32.mxu0 %v6001_v0  ;;  %v6325_v24 = vpack.c.bf16 %v495_v21, %v494_v20  ;;  %v6329_v27 = vpack.c.bf16 %v497_v26, %v496_v25  ;;  %v498_v28 = vld [vmem:[#allocation12 + $0x60] sm:$0xff]  ;;  %v499_v31 = vld [vmem:[#allocation12 + $0x68] sm:$0xff]  ;;  %v500_v33 = vld [vmem:[#allocation12 + $0x70] sm:$0xff] }
  0xa7   :  { %4567 = vmatprep.subr.bf16.mxu0 %v6245_v40  ;;  %3930 = vmatmul.mubr.msk.f32.gmra.mrb[2].mxu1 %vm187_vm0, %v159_v37  ;;  %v6332_v32 = vpack.c.bf16 %v499_v31, %v498_v28  ;;  %v501_v34 = vld [vmem:[#allocation12 + $0x78] sm:$0xff]  ;;  %v6343_v37 = vshrl.u32 %v172_v36, 7  ;;  %v170_v41 = vld [vmem:[%s7124_s5] sm:$0x7] }
  0xa8   :  { %3932 = vmatprep.mubr.msk.f32.mxu1 %vm187_vm0, %v160_v45  ;;  %4585 = vmatprep.subr.bf16.mxu1 %v6002_v50  ;;  %v6338_v35 = vpack.c.bf16 %v501_v34, %v500_v33 }
  0xa9   :  { %3572 = vmatmul.mubr.msk.f32.gmra.mrb[8].mxu0 %vm187_vm0, %v160_v45  ;;  %4587 = vmatpush3.bf16.msra.mxu1 %v6313_v10  ;;  %v182_v39 = vsub.s32 2, %v6343_v37  ;;  %v174_v58 = vsub.s32 0, %v6343_v37  ;;  %v178_v21 = vsub.s32 1, %v6343_v37 }
  0xaa   :  { %4569 = vmatpush1.bf16.msra.mxu0 %v6250_v46  ;;  %306 = vmatprep.mubr.f32.mxu0 %v6001_v0 }
  0xab   :  { %4571 = vmatprep.subr.bf16.mxu0 %v6253_v47  ;;  %3933 = vmatmul.mubr.msk.f32.gmra.mrb[4].mxu1 %vm187_vm0, %v161_v53  ;;  %v183_v42 = vrot.slane %v170_v41, %v182_v39  ;;  %v6393_v25 = vrot.slane %v170_v41, %v178_v21 }
  0xac   :  { %3935 = vmatprep.mubr.msk.f32.mxu1 %vm187_vm0, %v162_v60  ;;  %4588 = vmatprep.subr.bf16.mxu1 %v6002_v50 }
  0xad   :  { %3573 = vmatmul.mubr.msk.f32.gmra.mrb[10].mxu0 %vm187_vm0, %v161_v53  ;;  %4590 = vmatpush3.bf16.msra.mxu1 %v6317_v14 }
  0xae   :  { %4573 = vmatpush1.bf16.msra.mxu0 %v6261_v54  ;;  %312 = vmatprep.mubr.f32.mxu0 %v6001_v0 }
  0xaf   :  { %4575 = vmatprep.subr.bf16.mxu0 %v6264_v55  ;;  %3936 = vmatmul.mubr.msk.f32.gmra.mrb[6].mxu1 %vm187_vm0, %v163_v2 }
  0xb0   :  { %4591 = vmatprep.subr.bf16.mxu1 %v6002_v50  ;;  %3970 = vmatprep.mubr.msk.f32.mxu1 %vm6003_vm1, %v6001_v0 }
  0xb1   :  { %3574 = vmatmul.mubr.msk.f32.gmra.mrb[12].mxu0 %vm187_vm0, %v162_v60  ;;  %4593 = vmatpush3.bf16.msra.mxu1 %v6321_v19 }
  0xb2   :  { %4577 = vmatpush1.bf16.msra.mxu0 %v6271_v61  ;;  %318 = vmatprep.mubr.f32.mxu0 %v6001_v0 }
  0xb3   :  { %4579 = vmatprep.subr.bf16.mxu0 %v6274_v62  ;;  %4594 = vmatprep.subr.bf16.mxu1 %v6002_v50 }
  0xb5   :  { %3575 = vmatmul.mubr.msk.f32.gmra.mrb[14].mxu0 %vm187_vm0, %v163_v2  ;;  %4596 = vmatpush3.bf16.msra.mxu1 %v6325_v24  ;;  %v6366_v2 = vrot.slane %v170_v41, %v174_v58 }
  0xb6   :  { %4581 = vmatpush1.bf16.msra.mxu0 %v6281_v3  ;;  %570 = vmatprep.mubr.f32.mxu0 %v6001_v0 }
  0xb7   :  { %4607 = vmatprep.subr.bf16.mxu0 %v6216_v12  ;;  %4597 = vmatprep.subr.bf16.mxu1 %v6002_v50 }
  0xb9   :  { %571 = vmatmul.mubr.f32.vlgmr.msra.gmra.mrb[0].mxu0 %v6288_v4  ;;  %4599 = vmatpush3.bf16.msra.mxu1 %v6329_v27 }
  0xba   :  { %4609 = vmatpush1.bf16.msra.mxu0 %v6218_v15  ;;  %736 = vmatprep.mubr.f32.mxu0 %v6001_v0 }
  0xbb   :  { %4611 = vmatprep.subr.bf16.mxu0 %v6221_v16  ;;  %4600 = vmatprep.subr.bf16.mxu1 %v6002_v50 }
  0xbd   :  { %4602 = vmatpush3.bf16.msra.mxu1 %v6332_v32 }
  0xbe   :  { %4613 = vmatpush1.bf16.msra.mxu0 %v6226_v22  ;;  %4603 = vmatprep.subr.bf16.mxu1 %v6002_v50 }
  0xbf   :  { %4615 = vmatprep.subr.bf16.mxu0 %v6229_v23 }
  0xc1   :  { %4605 = vmatpush3.bf16.msra.mxu1 %v6338_v35 }
  0xc2   :  { %4617 = vmatpush1.bf16.msra.mxu0 %v6234_v29  ;;  %4638 = vmatprep.subr.bf16.mxu1 %v6002_v50 }
  0xc3   :  { %4619 = vmatprep.subr.bf16.mxu0 %v6237_v30 }
  0xc6   :  { %4621 = vmatpush1.bf16.msra.mxu0 %v6242_v38 }
  0xc7   :  { %4623 = vmatprep.subr.bf16.mxu0 %v6245_v40 }
  0xca   :  { %4625 = vmatpush1.bf16.msra.mxu0 %v6250_v46 }
  0xcb   :  { %4627 = vmatprep.subr.bf16.mxu0 %v6253_v47 }
  0xce   :  { %4629 = vmatpush1.bf16.msra.mxu0 %v6261_v54 }
  0xcf   :  { %4631 = vmatprep.subr.bf16.mxu0 %v6264_v55 }
  0xd2   :  { %4633 = vmatpush1.bf16.msra.mxu0 %v6271_v61 }
  0xd3   :  { %4635 = vmatprep.subr.bf16.mxu0 %v6274_v62 }
  0xd6   :  { %4637 = vmatpush1.bf16.msra.mxu0 %v6281_v3 }
  0xd7   :  { %4663 = vmatprep.subr.bf16.mxu0 %v6216_v12 }
 0x176   :  { %v3928_v43 = vpop.f32.mrb[0].mxu1 }
 0x177   :  { %v6351_v44 = vadd.f32 %v3928_v43, %v183_v42  ;;  %v391_v45 = vpop.f32.mrb[1].mxu1 }
 0x178   :  { %v392_v34 = vadd.f32 %v391_v45, %v183_v42 }
 0x17a   :  { %v3931_v48 = vpop.f32.mrb[2].mxu1 }
 0x17b   :  { %v6353_v49 = vadd.f32 %v3931_v48, %v183_v42  ;;  %v401_v51 = vpop.f32.mrb[3].mxu1 }
 0x17c   :  { %v6355_v52 = vadd.f32 %v401_v51, %v183_v42 }
 0x17e   :  { %v3934_v53 = vpop.f32.mrb[4].mxu1 }
 0x17f   :  { %v6357_v56 = vadd.f32 %v3934_v53, %v183_v42  ;;  %v411_v57 = vpop.f32.mrb[5].mxu1 }
 0x180   :  { %v6360_v59 = vadd.f32 %v411_v57, %v183_v42 }
 0x182   :  { %v3937_v60 = vpop.f32.mrb[6].mxu1 }
 0x183   :  { %v6362_v63 = vadd.f32 %v3937_v60, %v183_v42  ;;  %v421_v1 = vpop.f32.mrb[7].mxu1 }
 0x184   :  { %v6368_v5 = vadd.f32 %v421_v1, %v183_v42 }
 0x18c   :  { %v572_v6 = vpop.f32.mrb[0].mxu0 }
 0x18d   :  { %v5510_v8 = vadd.f32 %v572_v6, %v6366_v2  ;;  %v574_v9 = vpop.f32.mrb[1].mxu0 }
 0x18e   :  { %v5511_v26 = vadd.f32 %v574_v9, %v6393_v25 }
 0x18f   :  { %v3584_v11 = vmul.f32 -1.442695, %v5510_v8 }
 0x190   :  { %v3585_v28 = vmul.f32 -1.442695, %v5511_v26 }
 0x191   :  { %5593 = vpow2.f32 %v3584_v11 }
 0x19b   :  { %v5594_v13 = vpop.eup %5593 }
 0x19c   :  { %v585_v17 = vadd.f32 1.0, %v5594_v13 }
 0x19e   :  { %5595 = vrcp.f32 %v585_v17 }
 0x19f   :  { %5597 = vpow2.f32 %v3585_v28 }
 0x1a8   :  { %v5596_v18 = vpop.eup %5595 }
 0x1a9   :  { %v591_v20 = vmul.f32 %v5596_v18, %v6288_v4  ;;  %v5598_v31 = vpop.eup %5597 }
 0x1aa   :  { %v586_v33 = vadd.f32 1.0, %v5598_v31 }
 0x1ab   :  { %3971 = vmatmul.mubr.f32.vlgmr.msra.gmra.mrb[8].mxu1 %v591_v20 }
 0x1ac   :  { %4640 = vmatpush3.bf16.msra.mxu1 %v6309_v7  ;;  %4005 = vmatprep.mubr.msk.f32.mxu1 %vm6003_vm1, %v6001_v0  ;;  %5599 = vrcp.f32 %v586_v33 }
 0x1ad   :  { %4641 = vmatprep.subr.bf16.mxu1 %v6002_v50 }
 0x1b0   :  { %4643 = vmatpush3.bf16.msra.mxu1 %v6313_v10 }
 0x1b1   :  { %4644 = vmatprep.subr.bf16.mxu1 %v6002_v50 }
 0x1b4   :  { %4646 = vmatpush3.bf16.msra.mxu1 %v6317_v14 }
 0x1b5   :  { %4647 = vmatprep.subr.bf16.mxu1 %v6002_v50 }
 0x1b6   :  { %v5600_v51 = vpop.eup %5599 }
 0x1b7   :  { %v663_v53 = vsub.f32 1.0, %v5600_v51 }
 0x1b8   :  { %4649 = vmatpush3.bf16.msra.mxu1 %v6321_v19 }
 0x1b9   :  { %4650 = vmatprep.subr.bf16.mxu1 %v6002_v50  ;;  %v664_v60 = vmul.f32 %v663_v53, %v6288_v4 }
 0x1bc   :  { %4652 = vmatpush3.bf16.msra.mxu1 %v6325_v24 }
 0x1bd   :  { %4653 = vmatprep.subr.bf16.mxu1 %v6002_v50 }
 0x1c0   :  { %4655 = vmatpush3.bf16.msra.mxu1 %v6329_v27 }
 0x1c1   :  { %4656 = vmatprep.subr.bf16.mxu1 %v6002_v50 }
 0x1c4   :  { %4658 = vmatpush3.bf16.msra.mxu1 %v6332_v32 }
 0x1c5   :  { %4659 = vmatprep.subr.bf16.mxu1 %v6002_v50 }
 0x1c8   :  { %4661 = vmatpush3.bf16.msra.mxu1 %v6338_v35 }
 0x1c9   :  { %4694 = vmatprep.subr.bf16.mxu1 %v6002_v50 }
 0x27e   :  { %v658_v36 = vpop.f32.mrb[8].mxu1 }
 0x27f   :  { %v659_v43 = vadd.f32 %v658_v36, %v392_v34  ;;  %v3972_v48 = vpop.f32.mrb[9].mxu1 }
 0x281   :  { %5601 = vtanh.f32 %v659_v43 }
 0x28b   :  { %v5602_v57 = vpop.eup %5601 }
 0x28c   :  { %v665_v1 = vmul.f32 %v5602_v57, %v5600_v51 }
 0x28e   :  { %v6397_v41 = vadd.f32 %v665_v1, %v664_v60 }
 0x290   :  { %737 = vmatmul.mubr.f32.vlgmr.msra.gmra.mrb[2].mxu0 %v6397_v41 }
 0x291   :  { %4665 = vmatpush1.bf16.msra.mxu0 %v6218_v15  ;;  %903 = vmatprep.mubr.f32.mxu0 %v6001_v0 }
 0x292   :  { %4667 = vmatprep.subr.bf16.mxu0 %v6221_v16 }
 0x295   :  { %4669 = vmatpush1.bf16.msra.mxu0 %v6226_v22 }
 0x296   :  { %4671 = vmatprep.subr.bf16.mxu0 %v6229_v23 }
 0x299   :  { %4673 = vmatpush1.bf16.msra.mxu0 %v6234_v29 }
 0x29a   :  { %4675 = vmatprep.subr.bf16.mxu0 %v6237_v30 }
 0x29d   :  { %4677 = vmatpush1.bf16.msra.mxu0 %v6242_v38 }
 0x29e   :  { %4679 = vmatprep.subr.bf16.mxu0 %v6245_v40 }
 0x2a1   :  { %4681 = vmatpush1.bf16.msra.mxu0 %v6250_v46 }
 0x2a2   :  { %4683 = vmatprep.subr.bf16.mxu0 %v6253_v47 }
 0x2a5   :  { %4685 = vmatpush1.bf16.msra.mxu0 %v6261_v54 }
 0x2a6   :  { %4687 = vmatprep.subr.bf16.mxu0 %v6264_v55 }
 0x2a9   :  { %4689 = vmatpush1.bf16.msra.mxu0 %v6271_v61 }
 0x2aa   :  { %4691 = vmatprep.subr.bf16.mxu0 %v6274_v62 }
 0x2ad   :  { %4693 = vmatpush1.bf16.msra.mxu0 %v6281_v3 }
 0x2ae   :  { %4719 = vmatprep.subr.bf16.mxu0 %v6216_v12 }
 0x363   :  { %v738_v4 = vpop.f32.mrb[2].mxu0 }
 0x364   :  { %v5512_v42 = vadd.f32 %v738_v4, %v6366_v2  ;;  %v740_v45 = vpop.f32.mrb[3].mxu0 }
 0x365   :  { %v5513_v17 = vadd.f32 %v740_v45, %v6393_v25 }
 0x366   :  { %v3586_v6 = vmul.f32 -1.442695, %v5512_v42 }
 0x367   :  { %v3587_v18 = vmul.f32 -1.442695, %v5513_v17 }
 0x368   :  { %5603 = vpow2.f32 %v3586_v6 }
 0x372   :  { %v5604_v8 = vpop.eup %5603 }
 0x373   :  { %v751_v9 = vadd.f32 1.0, %v5604_v8 }
 0x375   :  { %5605 = vrcp.f32 %v751_v9 }
 0x376   :  { %5607 = vpow2.f32 %v3587_v18 }
 0x37f   :  { %v5606_v11 = vpop.eup %5605 }
 0x380   :  { %v757_v13 = vmul.f32 %v5606_v11, %v6397_v41  ;;  %v5608_v20 = vpop.eup %5607 }
 0x381   :  { %v752_v26 = vadd.f32 1.0, %v5608_v20 }
 0x382   :  { %4006 = vmatmul.mubr.f32.vlgmr.msra.gmra.mrb[10].mxu1 %v757_v13 }
 0x383   :  { %4696 = vmatpush3.bf16.msra.mxu1 %v6309_v7  ;;  %4040 = vmatprep.mubr.msk.f32.mxu1 %vm6003_vm1, %v6001_v0  ;;  %5609 = vrcp.f32 %v752_v26 }
 0x384   :  { %4697 = vmatprep.subr.bf16.mxu1 %v6002_v50 }
 0x387   :  { %4699 = vmatpush3.bf16.msra.mxu1 %v6313_v10 }
 0x388   :  { %4700 = vmatprep.subr.bf16.mxu1 %v6002_v50 }
 0x38b   :  { %4702 = vmatpush3.bf16.msra.mxu1 %v6317_v14 }
 0x38c   :  { %4703 = vmatprep.subr.bf16.mxu1 %v6002_v50 }
 0x38d   :  { %v5610_v34 = vpop.eup %5609 }
 0x38e   :  { %v829_v36 = vsub.f32 1.0, %v5610_v34 }
 0x38f   :  { %4705 = vmatpush3.bf16.msra.mxu1 %v6321_v19 }
 0x390   :  { %4706 = vmatprep.subr.bf16.mxu1 %v6002_v50  ;;  %v830_v48 = vmul.f32 %v829_v36, %v6397_v41 }
 0x393   :  { %4708 = vmatpush3.bf16.msra.mxu1 %v6325_v24 }
 0x394   :  { %4709 = vmatprep.subr.bf16.mxu1 %v6002_v50 }
 0x397   :  { %4711 = vmatpush3.bf16.msra.mxu1 %v6329_v27 }
 0x398   :  { %4712 = vmatprep.subr.bf16.mxu1 %v6002_v50 }
 0x39b   :  { %4714 = vmatpush3.bf16.msra.mxu1 %v6332_v32 }
 0x39c   :  { %4715 = vmatprep.subr.bf16.mxu1 %v6002_v50 }
 0x39f   :  { %4717 = vmatpush3.bf16.msra.mxu1 %v6338_v35 }
 0x3a0   :  { %4750 = vmatprep.subr.bf16.mxu1 %v6002_v50 }
 0x455   :  { %v824_v28 = vpop.f32.mrb[10].mxu1 }
 0x456   :  { %v825_v31 = vadd.f32 %v824_v28, %v6351_v44  ;;  %v4007_v33 = vpop.f32.mrb[11].mxu1 }
 0x458   :  { %5611 = vtanh.f32 %v825_v31 }
 0x462   :  { %v5612_v43 = vpop.eup %5611 }
 0x463   :  { %v831_v51 = vmul.f32 %v5612_v43, %v5610_v34 }
 0x465   :  { %v6440_v53 = vadd.f32 %v831_v51, %v830_v48 }
 0x467   :  { %904 = vmatmul.mubr.f32.vlgmr.msra.gmra.mrb[4].mxu0 %v6440_v53 }
 0x468   :  { %4721 = vmatpush1.bf16.msra.mxu0 %v6218_v15  ;;  %1070 = vmatprep.mubr.f32.mxu0 %v6001_v0 }
 0x469   :  { %4723 = vmatprep.subr.bf16.mxu0 %v6221_v16 }
 0x46c   :  { %4725 = vmatpush1.bf16.msra.mxu0 %v6226_v22 }
 0x46d   :  { %4727 = vmatprep.subr.bf16.mxu0 %v6229_v23 }
 0x470   :  { %4729 = vmatpush1.bf16.msra.mxu0 %v6234_v29 }
 0x471   :  { %4731 = vmatprep.subr.bf16.mxu0 %v6237_v30 }
 0x474   :  { %4733 = vmatpush1.bf16.msra.mxu0 %v6242_v38 }
 0x475   :  { %4735 = vmatprep.subr.bf16.mxu0 %v6245_v40 }
 0x478   :  { %4737 = vmatpush1.bf16.msra.mxu0 %v6250_v46 }
 0x479   :  { %4739 = vmatprep.subr.bf16.mxu0 %v6253_v47 }
 0x47c   :  { %4741 = vmatpush1.bf16.msra.mxu0 %v6261_v54 }
 0x47d   :  { %4743 = vmatprep.subr.bf16.mxu0 %v6264_v55 }
 0x480   :  { %4745 = vmatpush1.bf16.msra.mxu0 %v6271_v61 }
 0x481   :  { %4747 = vmatprep.subr.bf16.mxu0 %v6274_v62 }
 0x484   :  { %4749 = vmatpush1.bf16.msra.mxu0 %v6281_v3 }
 0x485   :  { %4775 = vmatprep.subr.bf16.mxu0 %v6216_v12 }
 0x53a   :  { %v905_v44 = vpop.f32.mrb[4].mxu0 }
 0x53b   :  { %v5514_v57 = vadd.f32 %v905_v44, %v6366_v2  ;;  %v907_v60 = vpop.f32.mrb[5].mxu0 }
 0x53c   :  { %v5515_v8 = vadd.f32 %v907_v60, %v6393_v25 }
 0x53d   :  { %v3588_v1 = vmul.f32 -1.442695, %v5514_v57 }
 0x53e   :  { %v3589_v9 = vmul.f32 -1.442695, %v5515_v8 }
 0x53f   :  { %5613 = vpow2.f32 %v3588_v1 }
 0x549   :  { %v5614_v4 = vpop.eup %5613 }
 0x54a   :  { %v918_v42 = vadd.f32 1.0, %v5614_v4 }
 0x54c   :  { %5615 = vrcp.f32 %v918_v42 }
 0x54d   :  { %5617 = vpow2.f32 %v3589_v9 }
 0x556   :  { %v5616_v45 = vpop.eup %5615 }
 0x557   :  { %v924_v6 = vmul.f32 %v5616_v45, %v6440_v53  ;;  %v5618_v11 = vpop.eup %5617 }
 0x558   :  { %v919_v13 = vadd.f32 1.0, %v5618_v11 }
 0x559   :  { %4041 = vmatmul.mubr.f32.vlgmr.msra.gmra.mrb[12].mxu1 %v924_v6 }
 0x55a   :  { %4752 = vmatpush3.bf16.msra.mxu1 %v6309_v7  ;;  %4075 = vmatprep.mubr.msk.f32.mxu1 %vm6003_vm1, %v6001_v0  ;;  %5619 = vrcp.f32 %v919_v13 }
 0x55b   :  { %4753 = vmatprep.subr.bf16.mxu1 %v6002_v50 }
 0x55e   :  { %4755 = vmatpush3.bf16.msra.mxu1 %v6313_v10 }
 0x55f   :  { %4756 = vmatprep.subr.bf16.mxu1 %v6002_v50 }
 0x562   :  { %4758 = vmatpush3.bf16.msra.mxu1 %v6317_v14 }
 0x563   :  { %4759 = vmatprep.subr.bf16.mxu1 %v6002_v50 }
 0x564   :  { %v5620_v26 = vpop.eup %5619 }
 0x565   :  { %v996_v28 = vsub.f32 1.0, %v5620_v26 }
 0x566   :  { %4761 = vmatpush3.bf16.msra.mxu1 %v6321_v19 }
 0x567   :  { %4762 = vmatprep.subr.bf16.mxu1 %v6002_v50  ;;  %v997_v33 = vmul.f32 %v996_v28, %v6440_v53 }
 0x56a   :  { %4764 = vmatpush3.bf16.msra.mxu1 %v6325_v24 }
 0x56b   :  { %4765 = vmatprep.subr.bf16.mxu1 %v6002_v50 }
 0x56e   :  { %4767 = vmatpush3.bf16.msra.mxu1 %v6329_v27 }
 0x56f   :  { %4768 = vmatprep.subr.bf16.mxu1 %v6002_v50 }
 0x572   :  { %4770 = vmatpush3.bf16.msra.mxu1 %v6332_v32 }
 0x573   :  { %4771 = vmatprep.subr.bf16.mxu1 %v6002_v50 }
 0x576   :  { %4773 = vmatpush3.bf16.msra.mxu1 %v6338_v35 }
 0x577   :  { %4806 = vmatprep.subr.bf16.mxu1 %v6002_v50 }
 0x62c   :  { %v991_v17 = vpop.f32.mrb[12].mxu1 }
 0x62d   :  { %v992_v18 = vadd.f32 %v991_v17, %v6355_v52  ;;  %v4042_v20 = vpop.f32.mrb[13].mxu1 }
 0x62f   :  { %5621 = vtanh.f32 %v992_v18 }
 0x639   :  { %v5622_v31 = vpop.eup %5621 }
 0x63a   :  { %v998_v34 = vmul.f32 %v5622_v31, %v5620_v26 }
 0x63c   :  { %v6483_v36 = vadd.f32 %v998_v34, %v997_v33 }
 0x63e   :  { %1071 = vmatmul.mubr.f32.vlgmr.msra.gmra.mrb[6].mxu0 %v6483_v36 }
 0x63f   :  { %4777 = vmatpush1.bf16.msra.mxu0 %v6218_v15  ;;  %1237 = vmatprep.mubr.f32.mxu0 %v6001_v0 }
 0x640   :  { %4779 = vmatprep.subr.bf16.mxu0 %v6221_v16 }
 0x643   :  { %4781 = vmatpush1.bf16.msra.mxu0 %v6226_v22 }
 0x644   :  { %4783 = vmatprep.subr.bf16.mxu0 %v6229_v23 }
 0x647   :  { %4785 = vmatpush1.bf16.msra.mxu0 %v6234_v29 }
 0x648   :  { %4787 = vmatprep.subr.bf16.mxu0 %v6237_v30 }
 0x64b   :  { %4789 = vmatpush1.bf16.msra.mxu0 %v6242_v38 }
 0x64c   :  { %4791 = vmatprep.subr.bf16.mxu0 %v6245_v40 }
 0x64f   :  { %4793 = vmatpush1.bf16.msra.mxu0 %v6250_v46 }
 0x650   :  { %4795 = vmatprep.subr.bf16.mxu0 %v6253_v47 }
 0x653   :  { %4797 = vmatpush1.bf16.msra.mxu0 %v6261_v54 }
 0x654   :  { %4799 = vmatprep.subr.bf16.mxu0 %v6264_v55 }
 0x657   :  { %4801 = vmatpush1.bf16.msra.mxu0 %v6271_v61 }
 0x658   :  { %4803 = vmatprep.subr.bf16.mxu0 %v6274_v62 }
 0x65b   :  { %4805 = vmatpush1.bf16.msra.mxu0 %v6281_v3 }
 0x65c   :  { %4831 = vmatprep.subr.bf16.mxu0 %v6216_v12 }
 0x711   :  { %v1072_v52 = vpop.f32.mrb[6].mxu0 }
 0x712   :  { %v5516_v43 = vadd.f32 %v1072_v52, %v6366_v2  ;;  %v1074_v48 = vpop.f32.mrb[7].mxu0 }
 0x713   :  { %v5517_v4 = vadd.f32 %v1074_v48, %v6393_v25 }
 0x714   :  { %v3590_v51 = vmul.f32 -1.442695, %v5516_v43 }
 0x715   :  { %v3591_v42 = vmul.f32 -1.442695, %v5517_v4 }
 0x716   :  { %5623 = vpow2.f32 %v3590_v51 }
 0x720   :  { %v5624_v44 = vpop.eup %5623 }
 0x721   :  { %v1085_v57 = vadd.f32 1.0, %v5624_v44 }
 0x723   :  { %5625 = vrcp.f32 %v1085_v57 }
 0x724   :  { %5627 = vpow2.f32 %v3591_v42 }
 0x72d   :  { %v5626_v60 = vpop.eup %5625 }
 0x72e   :  { %v1091_v1 = vmul.f32 %v5626_v60, %v6483_v36  ;;  %v5628_v45 = vpop.eup %5627 }
 0x72f   :  { %v1086_v6 = vadd.f32 1.0, %v5628_v45 }
 0x730   :  { %4076 = vmatmul.mubr.f32.vlgmr.msra.gmra.mrb[14].mxu1 %v1091_v1 }
 0x731   :  { %4808 = vmatpush3.bf16.msra.mxu1 %v6309_v7  ;;  %4110 = vmatprep.mubr.msk.f32.mxu1 %vm6003_vm1, %v6001_v0  ;;  %5629 = vrcp.f32 %v1086_v6 }
 0x732   :  { %4809 = vmatprep.subr.bf16.mxu1 %v6002_v50 }
 0x735   :  { %4811 = vmatpush3.bf16.msra.mxu1 %v6313_v10 }
 0x736   :  { %4812 = vmatprep.subr.bf16.mxu1 %v6002_v50 }
 0x739   :  { %4814 = vmatpush3.bf16.msra.mxu1 %v6317_v14 }
 0x73a   :  { %4815 = vmatprep.subr.bf16.mxu1 %v6002_v50 }
 0x73b   :  { %v5630_v13 = vpop.eup %5629 }
 0x73c   :  { %v1163_v17 = vsub.f32 1.0, %v5630_v13 }
 0x73d   :  { %4817 = vmatpush3.bf16.msra.mxu1 %v6321_v19 }
 0x73e   :  { %4818 = vmatprep.subr.bf16.mxu1 %v6002_v50  ;;  %v1164_v20 = vmul.f32 %v1163_v17, %v6483_v36 }
 0x741   :  { %4820 = vmatpush3.bf16.msra.mxu1 %v6325_v24 }
 0x742   :  { %4821 = vmatprep.subr.bf16.mxu1 %v6002_v50 }
 0x745   :  { %4823 = vmatpush3.bf16.msra.mxu1 %v6329_v27 }
 0x746   :  { %4824 = vmatprep.subr.bf16.mxu1 %v6002_v50 }
 0x749   :  { %4826 = vmatpush3.bf16.msra.mxu1 %v6332_v32 }
 0x74a   :  { %4827 = vmatprep.subr.bf16.mxu1 %v6002_v50 }
 0x74d   :  { %4829 = vmatpush3.bf16.msra.mxu1 %v6338_v35 }
 0x74e   :  { %4862 = vmatprep.subr.bf16.mxu1 %v6002_v50 }
 0x803   :  { %v1158_v8 = vpop.f32.mrb[14].mxu1 }
 0x804   :  { %v1159_v9 = vadd.f32 %v1158_v8, %v6353_v49  ;;  %v4077_v11 = vpop.f32.mrb[15].mxu1 }
 0x806   :  { %5631 = vtanh.f32 %v1159_v9 }
 0x810   :  { %v5632_v18 = vpop.eup %5631 }
 0x811   :  { %v1165_v26 = vmul.f32 %v5632_v18, %v5630_v13 }
 0x813   :  { %v6526_v28 = vadd.f32 %v1165_v26, %v1164_v20 }
 0x815   :  { %1238 = vmatmul.mubr.f32.vlgmr.msra.gmra.mrb[8].mxu0 %v6526_v28 }
 0x816   :  { %4833 = vmatpush1.bf16.msra.mxu0 %v6218_v15  ;;  %1404 = vmatprep.mubr.f32.mxu0 %v6001_v0 }
 0x817   :  { %4835 = vmatprep.subr.bf16.mxu0 %v6221_v16 }
 0x81a   :  { %4837 = vmatpush1.bf16.msra.mxu0 %v6226_v22 }
 0x81b   :  { %4839 = vmatprep.subr.bf16.mxu0 %v6229_v23 }
 0x81e   :  { %4841 = vmatpush1.bf16.msra.mxu0 %v6234_v29 }
 0x81f   :  { %4843 = vmatprep.subr.bf16.mxu0 %v6237_v30 }
 0x822   :  { %4845 = vmatpush1.bf16.msra.mxu0 %v6242_v38 }
 0x823   :  { %4847 = vmatprep.subr.bf16.mxu0 %v6245_v40 }
 0x826   :  { %4849 = vmatpush1.bf16.msra.mxu0 %v6250_v46 }
 0x827   :  { %4851 = vmatprep.subr.bf16.mxu0 %v6253_v47 }
 0x82a   :  { %4853 = vmatpush1.bf16.msra.mxu0 %v6261_v54 }
 0x82b   :  { %4855 = vmatprep.subr.bf16.mxu0 %v6264_v55 }
 0x82e   :  { %4857 = vmatpush1.bf16.msra.mxu0 %v6271_v61 }
 0x82f   :  { %4859 = vmatprep.subr.bf16.mxu0 %v6274_v62 }
 0x832   :  { %4861 = vmatpush1.bf16.msra.mxu0 %v6281_v3 }
 0x833   :  { %4887 = vmatprep.subr.bf16.mxu0 %v6216_v12 }
 0x8e8   :  { %v1239_v49 = vpop.f32.mrb[8].mxu0 }
 0x8e9   :  { %v5518_v31 = vadd.f32 %v1239_v49, %v6366_v2  ;;  %v1241_v33 = vpop.f32.mrb[9].mxu0 }
 0x8ea   :  { %v5519_v44 = vadd.f32 %v1241_v33, %v6393_v25 }
 0x8eb   :  { %v3592_v34 = vmul.f32 -1.442695, %v5518_v31 }
 0x8ec   :  { %v3593_v57 = vmul.f32 -1.442695, %v5519_v44 }
 0x8ed   :  { %5633 = vpow2.f32 %v3592_v34 }
 0x8f7   :  { %v5634_v52 = vpop.eup %5633 }
 0x8f8   :  { %v1252_v43 = vadd.f32 1.0, %v5634_v52 }
 0x8fa   :  { %5635 = vrcp.f32 %v1252_v43 }
 0x8fb   :  { %5637 = vpow2.f32 %v3593_v57 }
 0x904   :  { %v5636_v48 = vpop.eup %5635 }
 0x905   :  { %v1258_v51 = vmul.f32 %v5636_v48, %v6526_v28  ;;  %v5638_v60 = vpop.eup %5637 }
 0x906   :  { %v1253_v1 = vadd.f32 1.0, %v5638_v60 }
 0x907   :  { %4111 = vmatmul.mubr.f32.vlgmr.msra.gmra.mrb[16].mxu1 %v1258_v51 }
 0x908   :  { %4864 = vmatpush3.bf16.msra.mxu1 %v6309_v7  ;;  %4145 = vmatprep.mubr.msk.f32.mxu1 %vm6003_vm1, %v6001_v0  ;;  %5639 = vrcp.f32 %v1253_v1 }
 0x909   :  { %4865 = vmatprep.subr.bf16.mxu1 %v6002_v50 }
 0x90c   :  { %4867 = vmatpush3.bf16.msra.mxu1 %v6313_v10 }
 0x90d   :  { %4868 = vmatprep.subr.bf16.mxu1 %v6002_v50 }
 0x910   :  { %4870 = vmatpush3.bf16.msra.mxu1 %v6317_v14 }
 0x911   :  { %4871 = vmatprep.subr.bf16.mxu1 %v6002_v50 }
 0x912   :  { %v5640_v6 = vpop.eup %5639 }
 0x913   :  { %v1330_v8 = vsub.f32 1.0, %v5640_v6 }
 0x914   :  { %4873 = vmatpush3.bf16.msra.mxu1 %v6321_v19 }
 0x915   :  { %4874 = vmatprep.subr.bf16.mxu1 %v6002_v50  ;;  %v1331_v11 = vmul.f32 %v1330_v8, %v6526_v28  ;;  %v1856_v8 = vld [vmem:[#allocation13 + $0x50] sm:$0xff] }
 0x918   :  { %4876 = vmatpush3.bf16.msra.mxu1 %v6325_v24 }
 0x919   :  { %4877 = vmatprep.subr.bf16.mxu1 %v6002_v50 }
 0x91c   :  { %4879 = vmatpush3.bf16.msra.mxu1 %v6329_v27 }
 0x91d   :  { %4880 = vmatprep.subr.bf16.mxu1 %v6002_v50 }
 0x920   :  { %4882 = vmatpush3.bf16.msra.mxu1 %v6332_v32 }
 0x921   :  { %4883 = vmatprep.subr.bf16.mxu1 %v6002_v50 }
 0x924   :  { %4885 = vmatpush3.bf16.msra.mxu1 %v6338_v35 }
 0x925   :  { %4918 = vmatprep.subr.bf16.mxu1 %v6002_v50 }
 0x9da   :  { %v1325_v4 = vpop.f32.mrb[16].mxu1 }
 0x9db   :  { %v1326_v42 = vadd.f32 %v1325_v4, %v6360_v59  ;;  %v4112_v45 = vpop.f32.mrb[17].mxu1 }
 0x9dd   :  { %5641 = vtanh.f32 %v1326_v42 }
 0x9e7   :  { %v5642_v9 = vpop.eup %5641 }
 0x9e8   :  { %v1332_v13 = vmul.f32 %v5642_v9, %v5640_v6 }
 0x9ea   :  { %v6569_v17 = vadd.f32 %v1332_v13, %v1331_v11 }
 0x9ec   :  { %1405 = vmatmul.mubr.f32.vlgmr.msra.gmra.mrb[10].mxu0 %v6569_v17 }
 0x9ed   :  { %4889 = vmatpush1.bf16.msra.mxu0 %v6218_v15  ;;  %1571 = vmatprep.mubr.f32.mxu0 %v6001_v0 }
 0x9ee   :  { %4891 = vmatprep.subr.bf16.mxu0 %v6221_v16 }
 0x9f1   :  { %4893 = vmatpush1.bf16.msra.mxu0 %v6226_v22 }
 0x9f2   :  { %4895 = vmatprep.subr.bf16.mxu0 %v6229_v23 }
 0x9f5   :  { %4897 = vmatpush1.bf16.msra.mxu0 %v6234_v29 }
 0x9f6   :  { %4899 = vmatprep.subr.bf16.mxu0 %v6237_v30 }
 0x9f9   :  { %4901 = vmatpush1.bf16.msra.mxu0 %v6242_v38 }
 0x9fa   :  { %4903 = vmatprep.subr.bf16.mxu0 %v6245_v40 }
 0x9fd   :  { %4905 = vmatpush1.bf16.msra.mxu0 %v6250_v46 }
 0x9fe   :  { %4907 = vmatprep.subr.bf16.mxu0 %v6253_v47 }
 0xa01   :  { %4909 = vmatpush1.bf16.msra.mxu0 %v6261_v54 }
 0xa02   :  { %4911 = vmatprep.subr.bf16.mxu0 %v6264_v55 }
 0xa05   :  { %4913 = vmatpush1.bf16.msra.mxu0 %v6271_v61 }
 0xa06   :  { %4915 = vmatprep.subr.bf16.mxu0 %v6274_v62 }
 0xa09   :  { %4917 = vmatpush1.bf16.msra.mxu0 %v6281_v3 }
 0xa0a   :  { %4943 = vmatprep.subr.bf16.mxu0 %v6216_v12 }
 0xabf   :  { %v1406_v59 = vpop.f32.mrb[10].mxu0 }
 0xac0   :  { %v5520_v18 = vadd.f32 %v1406_v59, %v6366_v2  ;;  %v1408_v20 = vpop.f32.mrb[11].mxu0 }
 0xac1   :  { %v5521_v12 = vadd.f32 %v1408_v20, %v6393_v25  ;;  %v1852_v20 = vld [vmem:[#allocation13 + $0x30] sm:$0xff] }
 0xac2   :  { %v3594_v26 = vmul.f32 -1.442695, %v5520_v18 }
 0xac3   :  { %v3595_v52 = vmul.f32 -1.442695, %v5521_v12  ;;  %v1861_v12 = vld [vmem:[#allocation13 + $0x78] sm:$0xff] }
 0xac4   :  { %5643 = vpow2.f32 %v3594_v26  ;;  %v1855_v26 = vld [vmem:[#allocation13 + $0x48] sm:$0xff] }
 0xace   :  { %v5644_v49 = vpop.eup %5643 }
 0xacf   :  { %v1419_v31 = vadd.f32 1.0, %v5644_v49  ;;  %v1859_v49 = vld [vmem:[#allocation13 + $0x68] sm:$0xff] }
 0xad1   :  { %5645 = vrcp.f32 %v1419_v31  ;;  %v5004_v31 = vpack.c.bf16 %v1855_v26, %v1852_v20 }
 0xad2   :  { %5647 = vpow2.f32 %v3595_v52  ;;  %v1865_v52 = vld [vmem:[#allocation13 + $0x98] sm:$0xff] }
 0xadb   :  { %v5646_v33 = vpop.eup %5645 }
 0xadc   :  { %v1425_v34 = vmul.f32 %v5646_v33, %v6569_v17  ;;  %v5648_v43 = vpop.eup %5647 }
 0xadd   :  { %v1420_v48 = vadd.f32 1.0, %v5648_v43  ;;  %v1868_v43 = vld [vmem:[#allocation13 + $0xb0] sm:$0xff] }
 0xade   :  { %4146 = vmatmul.mubr.f32.vlgmr.msra.gmra.mrb[18].mxu1 %v1425_v34  ;;  %v1858_v34 = vld [vmem:[#allocation13 + $0x60] sm:$0xff] }
 0xadf   :  { %4920 = vmatpush3.bf16.msra.mxu1 %v6309_v7  ;;  %4180 = vmatprep.mubr.msk.f32.mxu1 %vm6003_vm1, %v6001_v0  ;;  %5649 = vrcp.f32 %v1420_v48  ;;  %v5008_v48 = vpack.c.bf16 %v1861_v12, %v1858_v34  ;;  %v1854_v34 = vld [vmem:[#allocation13 + $0x40] sm:$0xff]  ;;  %v1857_v12 = vld [vmem:[#allocation13 + $0x58] sm:$0xff] }
 0xae0   :  { %4921 = vmatprep.subr.bf16.mxu1 %v6002_v50 }
 0xae3   :  { %4923 = vmatpush3.bf16.msra.mxu1 %v6313_v10 }
 0xae4   :  { %4924 = vmatprep.subr.bf16.mxu1 %v6002_v50 }
 0xae7   :  { %4926 = vmatpush3.bf16.msra.mxu1 %v6317_v14 }
 0xae8   :  { %4927 = vmatprep.subr.bf16.mxu1 %v6002_v50 }
 0xae9   :  { %v5650_v60 = vpop.eup %5649 }
 0xaea   :  { %v1497_v1 = vsub.f32 1.0, %v5650_v60 }
 0xaeb   :  { %4929 = vmatpush3.bf16.msra.mxu1 %v6321_v19 }
 0xaec   :  { %4930 = vmatprep.subr.bf16.mxu1 %v6002_v50  ;;  %v1498_v42 = vmul.f32 %v1497_v1, %v6569_v17  ;;  %v1874_v1 = vld [vmem:[#allocation13 + $0xe0] sm:$0xff] }
 0xaef   :  { %4932 = vmatpush3.bf16.msra.mxu1 %v6325_v24 }
 0xaf0   :  { %4933 = vmatprep.subr.bf16.mxu1 %v6002_v50 }
 0xaf3   :  { %4935 = vmatpush3.bf16.msra.mxu1 %v6329_v27 }
 0xaf4   :  { %4936 = vmatprep.subr.bf16.mxu1 %v6002_v50 }
 0xaf7   :  { %4938 = vmatpush3.bf16.msra.mxu1 %v6332_v32 }
 0xaf8   :  { %4939 = vmatprep.subr.bf16.mxu1 %v6002_v50 }
 0xafb   :  { %4941 = vmatpush3.bf16.msra.mxu1 %v6338_v35 }
 0xafc   :  { %4974 = vmatprep.subr.bf16.mxu1 %v6002_v50 }
 0xbb1   :  { %v1492_v51 = vpop.f32.mrb[18].mxu1 }
 0xbb2   :  { %v1493_v44 = vadd.f32 %v1492_v51, %v6357_v56  ;;  %v4147_v57 = vpop.f32.mrb[19].mxu1  ;;  %v1853_v56 = vld [vmem:[#allocation13 + $0x38] sm:$0xff]  ;;  %v5010_v51 = vpack.c.bf16 %v1868_v43, %v1865_v52 }
 0xbb3   :  { %v5002_v18 = vpack.c.bf16 %v1856_v8, %v1853_v56  ;;  %v1867_v57 = vld [vmem:[#allocation13 + $0xa8] sm:$0xff]  ;;  %v2156_v8 = vld [vmem:[#allocation15 + $0x18] sm:$0xff] }
 0xbb4   :  { %5651 = vtanh.f32 %v1493_v44  ;;  %v1864_v44 = vld [vmem:[#allocation13 + $0x90] sm:$0xff]  ;;  %v2154_v56 = vld [vmem:[#allocation15 + $0x8] sm:$0xff] }
 0xbbe   :  { %v5652_v4 = vpop.eup %5651 }
 0xbbf   :  { %v1499_v45 = vmul.f32 %v5652_v4, %v5650_v60  ;;  %v1871_v60 = vld [vmem:[#allocation13 + $0xc8] sm:$0xff]  ;;  %v5012_v4 = vpack.c.bf16 %v1867_v57, %v1864_v44  ;;  %v1866_v57 = vld [vmem:[#allocation13 + $0xa0] sm:$0xff] }
 0xbc0   :  { %v1863_v44 = vld [vmem:[#allocation13 + $0x88] sm:$0xff] }
 0xbc1   :  { %v6612_v6 = vadd.f32 %v1499_v45, %v1498_v42  ;;  %v5014_v42 = vpack.c.bf16 %v1874_v1, %v1871_v60  ;;  %v1870_v45 = vld [vmem:[#allocation13 + $0xc0] sm:$0xff]  ;;  %v1869_v60 = vld [vmem:[#allocation13 + $0xb8] sm:$0xff] }
 0xbc2   :  { %v5042_v1 = vpack.c.bf16 %v1869_v60, %v1866_v57  ;;  %v2184_v57 = vld [vmem:[#allocation15 + $0xf8] sm:$0xff] }
 0xbc3   :  { %1572 = vmatmul.mubr.f32.vlgmr.msra.gmra.mrb[12].mxu0 %v6612_v6 }
 0xbc4   :  { %4945 = vmatpush1.bf16.msra.mxu0 %v6218_v15  ;;  %1738 = vmatprep.mubr.f32.mxu0 %v6001_v0 }
 0xbc5   :  { %4947 = vmatprep.subr.bf16.mxu0 %v6221_v16 }
 0xbc8   :  { %4949 = vmatpush1.bf16.msra.mxu0 %v6226_v22 }
 0xbc9   :  { %4951 = vmatprep.subr.bf16.mxu0 %v6229_v23 }
 0xbcc   :  { %4953 = vmatpush1.bf16.msra.mxu0 %v6234_v29 }
 0xbcd   :  { %4955 = vmatprep.subr.bf16.mxu0 %v6237_v30 }
 0xbd0   :  { %4957 = vmatpush1.bf16.msra.mxu0 %v6242_v38 }
 0xbd1   :  { %4959 = vmatprep.subr.bf16.mxu0 %v6245_v40 }
 0xbd4   :  { %4961 = vmatpush1.bf16.msra.mxu0 %v6250_v46  ;;  %v1847_v46 = vld [vmem:[#allocation13 + $0x8] sm:$0xff] }
 0xbd5   :  { %4963 = vmatprep.subr.bf16.mxu0 %v6253_v47  ;;  %v1850_v47 = vld [vmem:[#allocation13 + $0x20] sm:$0xff] }
 0xbd8   :  { %4965 = vmatpush1.bf16.msra.mxu0 %v6261_v54  ;;  %v4998_v54 = vpack.c.bf16 %v1850_v47, %v1847_v46  ;;  %v1886_v46 = vld [vmem:[#allocation13 + $0x140] sm:$0xff] }
 0xbd9   :  { %4967 = vmatprep.subr.bf16.mxu0 %v6264_v55 }
 0xbdc   :  { %4969 = vmatpush1.bf16.msra.mxu0 %v6271_v61 }
 0xbdd   :  { %4971 = vmatprep.subr.bf16.mxu0 %v6274_v62 }
 0xbe0   :  { %4973 = vmatpush1.bf16.msra.mxu0 %v6281_v3 }
 0xbe1   :  { %4999 = vmatprep.subr.bf16.mxu0 %v4998_v54 }
 0xc96   :  { %v1573_v15 = vpop.f32.mrb[12].mxu0 }
 0xc97   :  { %v5522_v16 = vadd.f32 %v1573_v15, %v6366_v2  ;;  %v1575_v22 = vpop.f32.mrb[13].mxu0  ;;  %v1873_v15 = vld [vmem:[#allocation13 + $0xd8] sm:$0xff] }
 0xc98   :  { %v5523_v55 = vadd.f32 %v1575_v22, %v6393_v25  ;;  %v1880_v22 = vld [vmem:[#allocation13 + $0x110] sm:$0xff] }
 0xc99   :  { %v3596_v23 = vmul.f32 -1.442695, %v5522_v16  ;;  %v1877_v16 = vld [vmem:[#allocation13 + $0xf8] sm:$0xff] }
 0xc9a   :  { %v3597_v61 = vmul.f32 -1.442695, %v5523_v55  ;;  %v1882_v55 = vld [vmem:[#allocation13 + $0x120] sm:$0xff] }
 0xc9b   :  { %5653 = vpow2.f32 %v3596_v23  ;;  %v5016_v23 = vpack.c.bf16 %v1873_v15, %v1870_v45  ;;  %v1878_v15 = vld [vmem:[#allocation13 + $0x100] sm:$0xff] }
 0xca5   :  { %v5654_v29 = vpop.eup %5653 }
 0xca6   :  { %v1586_v30 = vadd.f32 1.0, %v5654_v29  ;;  %v5018_v29 = vpack.c.bf16 %v1880_v22, %v1877_v16  ;;  %v1881_v16 = vld [vmem:[#allocation13 + $0x118] sm:$0xff] }
 0xca7   :  { %v5050_v22 = vpack.c.bf16 %v1881_v16, %v1878_v15 }
 0xca8   :  { %5655 = vrcp.f32 %v1586_v30  ;;  %v1876_v30 = vld [vmem:[#allocation13 + $0xf0] sm:$0xff] }
 0xca9   :  { %5657 = vpow2.f32 %v3597_v61  ;;  %v1885_v61 = vld [vmem:[#allocation13 + $0x138] sm:$0xff] }
 0xcb2   :  { %v5656_v38 = vpop.eup %5655 }
 0xcb3   :  { %v1592_v40 = vmul.f32 %v5656_v38, %v6612_v6  ;;  %v5658_v62 = vpop.eup %5657  ;;  %v1879_v38 = vld [vmem:[#allocation13 + $0x108] sm:$0xff] }
 0xcb4   :  { %v1587_v3 = vadd.f32 1.0, %v5658_v62  ;;  %v5020_v47 = vpack.c.bf16 %v1879_v38, %v1876_v30  ;;  %v1889_v62 = vld [vmem:[#allocation13 + $0x158] sm:$0xff]  ;;  %v1890_v30 = vld [vmem:[#allocation13 + $0x160] sm:$0xff] }
 0xcb5   :  { %4181 = vmatmul.mubr.f32.vlgmr.msra.gmra.mrb[20].mxu1 %v1592_v40  ;;  %v1883_v40 = vld [vmem:[#allocation13 + $0x128] sm:$0xff]  ;;  %v1893_v38 = vld [vmem:[#allocation13 + $0x178] sm:$0xff] }
 0xcb6   :  { %4976 = vmatpush3.bf16.msra.mxu1 %v6309_v7  ;;  %4215 = vmatprep.mubr.msk.f32.mxu1 %vm6003_vm1, %v6001_v0  ;;  %5659 = vrcp.f32 %v1587_v3  ;;  %v5022_v54 = vpack.c.bf16 %v1886_v46, %v1883_v40  ;;  %v1892_v3 = vld [vmem:[#allocation13 + $0x170] sm:$0xff]  ;;  %v5058_v40 = vpack.c.bf16 %v1893_v38, %v1890_v30  ;;  %v2158_v46 = vld [vmem:[#allocation15 + $0x28] sm:$0xff] }
 0xcb7   :  { %4977 = vmatprep.subr.bf16.mxu1 %v6002_v50 }
 0xcba   :  { %4979 = vmatpush3.bf16.msra.mxu1 %v6313_v10 }
 0xcbb   :  { %4980 = vmatprep.subr.bf16.mxu1 %v6002_v50 }
 0xcbe   :  { %4982 = vmatpush3.bf16.msra.mxu1 %v6317_v14 }
 0xcbf   :  { %4983 = vmatprep.subr.bf16.mxu1 %v6002_v50 }
 0xcc2   :  { %4985 = vmatpush3.bf16.msra.mxu1 %v6321_v19  ;;  %v5660_v19 = vpop.eup %5659 }
 0xcc3   :  { %4986 = vmatprep.subr.bf16.mxu1 %v6002_v50 }
 0xcc6   :  { %4988 = vmatpush3.bf16.msra.mxu1 %v6325_v24  ;;  %v1664_v24 = vsub.f32 1.0, %v5660_v19 }
 0xcc7   :  { %4989 = vmatprep.subr.bf16.mxu1 %v6002_v50 }
 0xcc8   :  { %v1665_v9 = vmul.f32 %v1664_v24, %v6612_v6 }
 0xcca   :  { %4991 = vmatpush3.bf16.msra.mxu1 %v6329_v27  ;;  %v1846_v27 = vld [vmem:[#allocation13] sm:$0xff] }
 0xccb   :  { %4992 = vmatprep.subr.bf16.mxu1 %v6002_v50 }
 0xcce   :  { %4994 = vmatpush3.bf16.msra.mxu1 %v6332_v32  ;;  %v1849_v32 = vld [vmem:[#allocation13 + $0x18] sm:$0xff] }
 0xccf   :  { %4995 = vmatprep.subr.bf16.mxu1 %v6002_v50  ;;  %v5000_v13 = vpack.c.bf16 %v1849_v32, %v1846_v27  ;;  %v1848_v27 = vld [vmem:[#allocation13 + $0x10] sm:$0xff]  ;;  %v1851_v32 = vld [vmem:[#allocation13 + $0x28] sm:$0xff] }
 0xcd2   :  { %4997 = vmatpush3.bf16.msra.mxu1 %v6338_v35 }
 0xd88   :  { %v1659_v7 = vpop.f32.mrb[20].mxu1 }
 0xd89   :  { %v1660_v10 = vadd.f32 %v1659_v7, %v6368_v5  ;;  %v4182_v14 = vpop.f32.mrb[21].mxu1  ;;  %v1862_v5 = vld [vmem:[#allocation13 + $0x80] sm:$0xff]  ;;  %v5024_v7 = vpack.c.bf16 %v1885_v61, %v1882_v55  ;;  %v2159_v61 = vld [vmem:[#allocation15 + $0x30] sm:$0xff] }
 0xd8a   :  { %v5006_v33 = vpack.c.bf16 %v1862_v5, %v1859_v49  ;;  %v1888_v14 = vld [vmem:[#allocation13 + $0x150] sm:$0xff]  ;;  %v2157_v55 = vld [vmem:[#allocation15 + $0x20] sm:$0xff] }
 0xd8b   :  { %5661 = vtanh.f32 %v1660_v10  ;;  %v5026_v10 = vpack.c.bf16 %v1892_v3, %v1889_v62  ;;  %v6691_v62 = vpack.c.bf16 %v2159_v61, %v2157_v55 }
 0xd95   :  { %v5662_v35 = vpop.eup %5661 }
 0xd96   :  { %v1666_v11 = vmul.f32 %v5662_v35, %v5660_v19  ;;  %v1891_v19 = vld [vmem:[#allocation13 + $0x168] sm:$0xff]  ;;  %v5030_v35 = vpack.c.bf16 %v1851_v32, %v1848_v27 }
 0xd97   :  { %v5028_v24 = vpack.c.bf16 %v1891_v19, %v1888_v14  ;;  %v2165_v19 = vld [vmem:[#allocation15 + $0x60] sm:$0xff]  ;;  %v2170_v32 = vld [vmem:[#allocation15 + $0x88] sm:$0xff] }
 0xd98   :  { %v6653_v59 = vadd.f32 %v1666_v11, %v1665_v9  ;;  %5031 = vmatprep.subr.bf16.mxu1 %v5030_v35  ;;  %v2153_v9 = vld [vmem:[#allocation15] sm:$0xff]  ;;  %v6671_v11 = vpack.c.bf16 %v2156_v8, %v2154_v56 }
 0xd99   :  { %v2169_v8 = vld [vmem:[#allocation15 + $0x80] sm:$0xff] }
 0xd9a   :  { %1739 = vmatmul.mubr.f32.vlgmr.msra.gmra.mrb[14].mxu0 %v6653_v59 }
 0xd9b   :  { %5001 = vmatpush1.bf16.msra.mxu0 %v5000_v13  ;;  %1975 = vmatprep.mubr.f32.mxu0 %v6001_v0  ;;  %v2155_v13 = vld [vmem:[#allocation15 + $0x10] sm:$0xff] }
 0xd9c   :  { %5003 = vmatprep.subr.bf16.mxu0 %v5002_v18  ;;  %v6673_v18 = vpack.c.bf16 %v2155_v13, %v2153_v9  ;;  %v2171_v9 = vld [vmem:[#allocation15 + $0x90] sm:$0xff] }
 0xd9d   :  { %v6709_v13 = vpack.c.bf16 %v2171_v9, %v2169_v8  ;;  %v2191_v9 = vld [vmem:[#allocation16 + $0x30] sm:$0xff] }
 0xd9f   :  { %5005 = vmatpush1.bf16.msra.mxu0 %v5004_v31 }
 0xda0   :  { %5007 = vmatprep.subr.bf16.mxu0 %v5006_v33 }
 0xda3   :  { %5009 = vmatpush1.bf16.msra.mxu0 %v5008_v48  ;;  %v5034_v48 = vpack.c.bf16 %v1857_v12, %v1854_v34  ;;  %v2178_v12 = vld [vmem:[#allocation15 + $0xc8] sm:$0xff] }
 0xda4   :  { %5011 = vmatprep.subr.bf16.mxu0 %v5010_v51  ;;  %v1860_v51 = vld [vmem:[#allocation13 + $0x70] sm:$0xff] }
 0xda7   :  { %5013 = vmatpush1.bf16.msra.mxu0 %v5012_v4  ;;  %v1872_v4 = vld [vmem:[#allocation13 + $0xd0] sm:$0xff] }
 0xda8   :  { %5015 = vmatprep.subr.bf16.mxu0 %v5014_v42  ;;  %v1875_v42 = vld [vmem:[#allocation13 + $0xe8] sm:$0xff] }
 0xda9   :  { %v5046_v45 = vpack.c.bf16 %v1875_v42, %v1872_v4  ;;  %v2183_v4 = vld [vmem:[#allocation15 + $0xf0] sm:$0xff] }
 0xdab   :  { %5017 = vmatpush1.bf16.msra.mxu0 %v5016_v23  ;;  %v1884_v23 = vld [vmem:[#allocation13 + $0x130] sm:$0xff] }
 0xdac   :  { %5019 = vmatprep.subr.bf16.mxu0 %v5018_v29  ;;  %v1887_v29 = vld [vmem:[#allocation13 + $0x148] sm:$0xff] }
 0xdaf   :  { %5021 = vmatpush1.bf16.msra.mxu0 %v5020_v47  ;;  %v2160_v47 = vld [vmem:[#allocation15 + $0x38] sm:$0xff] }
 0xdb0   :  { %5023 = vmatprep.subr.bf16.mxu0 %v5022_v54  ;;  %v6689_v54 = vpack.c.bf16 %v2160_v47, %v2158_v46 }
 0xdb3   :  { %5025 = vmatpush1.bf16.msra.mxu0 %v5024_v7  ;;  %v2166_v7 = vld [vmem:[#allocation15 + $0x68] sm:$0xff] }
 0xdb4   :  { %5027 = vmatprep.subr.bf16.mxu0 %v5026_v10  ;;  %v2168_v10 = vld [vmem:[#allocation15 + $0x78] sm:$0xff] }
 0xdb5   :  { %v6701_v14 = vpack.c.bf16 %v2168_v10, %v2166_v7  ;;  %v2187_v10 = vld [vmem:[#allocation16 + $0x10] sm:$0xff] }
 0xdb7   :  { %5029 = vmatpush1.bf16.msra.mxu0 %v5028_v24  ;;  %v2167_v24 = vld [vmem:[#allocation15 + $0x70] sm:$0xff] }
 0xdb8   :  { %5063 = vmatprep.subr.bf16.mxu0 %v6671_v11  ;;  %v6703_v27 = vpack.c.bf16 %v2167_v24, %v2165_v19  ;;  %v2188_v19 = vld [vmem:[#allocation16 + $0x18] sm:$0xff] }
 0xdb9   :  { %v6775_v24 = vpack.c.bf16 %v2188_v19, %v2187_v10 }
 0xdba   :  { %1976 = vmatmul.mubr.f32.vlgmr.msra.gmra.mrb[16].mxu0 %v6397_v41 }
 0xdbb   :  { %1981 = vmatprep.mubr.f32.mxu0 %v6001_v0  ;;  %5065 = vmatpush1.bf16.msra.mxu0 %v6673_v18 }
 0xdbc   :  { %5067 = vmatprep.subr.bf16.mxu0 %v6689_v54 }
 0xdbe   :  { %1982 = vmatmul.mubr.f32.gmra.mrb[18].mxu0 %v6440_v53 }
 0xdbf   :  { %1987 = vmatprep.mubr.f32.mxu0 %v6001_v0  ;;  %5069 = vmatpush1.bf16.msra.mxu0 %v6691_v62 }
 0xdc2   :  { %1988 = vmatmul.mubr.f32.gmra.mrb[20].mxu0 %v6483_v36 }
 0xdc3   :  { %1993 = vmatprep.mubr.f32.mxu0 %v6001_v0 }
 0xdc6   :  { %1994 = vmatmul.mubr.f32.gmra.mrb[22].mxu0 %v6526_v28 }
 0xdc7   :  { %1999 = vmatprep.mubr.f32.mxu0 %v6001_v0 }
 0xdca   :  { %2000 = vmatmul.mubr.f32.gmra.mrb[24].mxu0 %v6569_v17 }
 0xdcb   :  { %2005 = vmatprep.mubr.f32.mxu0 %v6001_v0 }
 0xdce   :  { %2006 = vmatmul.mubr.f32.gmra.mrb[26].mxu0 %v6612_v6 }
 0xdcf   :  { %2011 = vmatprep.mubr.f32.mxu0 %v6001_v0 }
 0xdd2   :  { %2012 = vmatmul.mubr.f32.gmra.mrb[28].mxu0 %v6653_v59 }
 0xdd3   :  { %2017 = vmatprep.mubr.f32.mxu0 %v6001_v0 }
 0xe6d   :  { %v1740_v20 = vpop.f32.mrb[14].mxu0 }
 0xe6e   :  { %v5524_v26 = vadd.f32 %v1740_v20, %v6366_v2  ;;  %v6678_v49 = vpop.f32.mrb[15].mxu0  ;;  %v5038_v2 = vpack.c.bf16 %v1863_v44, %v1860_v51  ;;  %v2174_v20 = vld [vmem:[#allocation15 + $0xa8] sm:$0xff]  ;;  %v2179_v51 = vld [vmem:[#allocation15 + $0xd0] sm:$0xff] }
 0xe70   :  { %v3598_v5 = vmul.f32 -1.442695, %v5524_v26  ;;  %v2176_v26 = vld [vmem:[#allocation15 + $0xb8] sm:$0xff] }
 0xe72   :  { %5663 = vpow2.f32 %v3598_v5  ;;  %v6713_v5 = vpack.c.bf16 %v2176_v26, %v2174_v20  ;;  %v2192_v20 = vld [vmem:[#allocation16 + $0x38] sm:$0xff] }
 0xe73   :  { %v6783_v26 = vpack.c.bf16 %v2192_v20, %v2191_v9 }
 0xe7c   :  { %v5664_v31 = vpop.eup %5663 }
 0xe7d   :  { %v1753_v33 = vadd.f32 1.0, %v5664_v31  ;;  %v2173_v31 = vld [vmem:[#allocation15 + $0xa0] sm:$0xff] }
 0xe7f   :  { %5665 = vrcp.f32 %v1753_v33  ;;  %v2175_v33 = vld [vmem:[#allocation15 + $0xb0] sm:$0xff] }
 0xe80   :  { %v6715_v34 = vpack.c.bf16 %v2175_v33, %v2173_v31  ;;  %v2193_v31 = vld [vmem:[#allocation16 + $0x40] sm:$0xff]  ;;  %v2194_v33 = vld [vmem:[#allocation16 + $0x48] sm:$0xff] }
 0xe89   :  { %v5666_v52 = vpop.eup %5665 }
 0xe8a   :  { %v1759_v43 = vmul.f32 %v5666_v52, %v6653_v59  ;;  %v2180_v52 = vld [vmem:[#allocation15 + $0xd8] sm:$0xff] }
 0xe8c   :  { %4216 = vmatmul.mubr.f32.vlgmr.msra.gmra.mrb[22].mxu1 %v1759_v43  ;;  %v6719_v43 = vpack.c.bf16 %v2180_v52, %v2178_v12  ;;  %v6787_v12 = vpack.c.bf16 %v2194_v33, %v2193_v31  ;;  %v2195_v52 = vld [vmem:[#allocation16 + $0x50] sm:$0xff] }
 0xe8d   :  { %5033 = vmatpush3.bf16.msra.mxu1 %v5030_v35  ;;  %4250 = vmatprep.mubr.f32.mxu1 %v6397_v41  ;;  %v5054_v41 = vpack.c.bf16 %v1887_v29, %v1884_v23  ;;  %v2172_v35 = vld [vmem:[#allocation15 + $0x98] sm:$0xff] }
 0xe8e   :  { %5035 = vmatprep.subr.bf16.mxu1 %v5034_v48  ;;  %v6707_v56 = vpack.c.bf16 %v2172_v35, %v2170_v32  ;;  %v2189_v32 = vld [vmem:[#allocation16 + $0x20] sm:$0xff]  ;;  %v2190_v35 = vld [vmem:[#allocation16 + $0x28] sm:$0xff] }
 0xe8f   :  { %v6779_v8 = vpack.c.bf16 %v2190_v35, %v2189_v32 }
 0xe91   :  { %5037 = vmatpush3.bf16.msra.mxu1 %v5034_v48  ;;  %v2177_v48 = vld [vmem:[#allocation15 + $0xc0] sm:$0xff] }
 0xe92   :  { %5039 = vmatprep.subr.bf16.mxu1 %v5038_v2  ;;  %v6721_v44 = vpack.c.bf16 %v2179_v51, %v2177_v48  ;;  %v2196_v48 = vld [vmem:[#allocation16 + $0x58] sm:$0xff] }
 0xe93   :  { %v6791_v51 = vpack.c.bf16 %v2196_v48, %v2195_v52 }
 0xe95   :  { %5041 = vmatpush3.bf16.msra.mxu1 %v5038_v2  ;;  %v2182_v2 = vld [vmem:[#allocation15 + $0xe8] sm:$0xff] }
 0xe96   :  { %5043 = vmatprep.subr.bf16.mxu1 %v5042_v1  ;;  %v6725_v60 = vpack.c.bf16 %v2184_v57, %v2182_v2  ;;  %v2197_v2 = vld [vmem:[#allocation16 + $0x60] sm:$0xff]  ;;  %v2198_v57 = vld [vmem:[#allocation16 + $0x68] sm:$0xff] }
 0xe99   :  { %5045 = vmatpush3.bf16.msra.mxu1 %v5042_v1  ;;  %v2181_v1 = vld [vmem:[#allocation15 + $0xe0] sm:$0xff] }
 0xe9a   :  { %5047 = vmatprep.subr.bf16.mxu1 %v5046_v45  ;;  %v6727_v42 = vpack.c.bf16 %v2183_v4, %v2181_v1  ;;  %v6794_v1 = vpack.c.bf16 %v2198_v57, %v2197_v2  ;;  %v2199_v4 = vld [vmem:[#allocation16 + $0x70] sm:$0xff] }
 0xe9d   :  { %5049 = vmatpush3.bf16.msra.mxu1 %v5046_v45  ;;  %v5525_v45 = vadd.f32 %v6678_v49, %v6393_v25  ;;  %v6737_v25 = vld [vmem:[#allocation7 + $0x8] sm:$0xff] }
 0xe9e   :  { %5051 = vmatprep.subr.bf16.mxu1 %v5050_v22 }
 0xe9f   :  { %v3599_v15 = vmul.f32 -1.442695, %v5525_v45  ;;  %v2200_v45 = vld [vmem:[#allocation16 + $0x78] sm:$0xff] }
 0xea1   :  { %5053 = vmatpush3.bf16.msra.mxu1 %v5050_v22  ;;  %5667 = vpow2.f32 %v3599_v15  ;;  %v6798_v15 = vpack.c.bf16 %v2200_v45, %v2199_v4 }
 0xea2   :  { %5055 = vmatprep.subr.bf16.mxu1 %v5054_v41 }
 0xea5   :  { %5057 = vmatpush3.bf16.msra.mxu1 %v5054_v41 }
 0xea6   :  { %5059 = vmatprep.subr.bf16.mxu1 %v5058_v40 }
 0xea9   :  { %5061 = vmatpush3.bf16.msra.mxu1 %v5058_v40 }
 0xeaa   :  { %5094 = vmatprep.subr.bf16.mxu1 %v6002_v50 }
 0xeab   :  { %v5668_v16 = vpop.eup %5667 }
 0xeac   :  { %4251 = vmatmul.mubr.f32.vlgmr.msra.gmra.mrb[24].mxu1 %v6440_v53  ;;  %v2162_v53 = vld [vmem:[#allocation15 + $0x48] sm:$0xff]  ;;  %v1754_v22 = vadd.f32 1.0, %v5668_v16  ;;  %v1894_v16 = vld [vmem:[%s7128_s9] sm:$0x7]  ;;  %s6004_s9 = smov [#allocation18]  }
 0xead   :  { %4253 = vmatprep.mubr.f32.mxu1 %v6483_v36  ;;  %v2164_v36 = vld [vmem:[#allocation15 + $0x58] sm:$0xff]  ;;  %v6841_v35 = vrot.slane %v1894_v16, %v182_v39  ;;  %s3536_s28 = sshll.u32 %s6004_s9, 4  ;;  %s3537_s28 = int_to_ptr.vmem [resolvable:$true] %s3536_s28 }
 0xeae   :  { %5669 = vrcp.f32 %v1754_v22  ;;  %s5929_s15 = scalar_lea.vmem %s3537_s28, 1024  ;;  %p5934_p9 = scmp.lt.s32.totalorder %s3537_s28, %s3537_s28 }
 0xeaf   :  { %p5930_p8 = scmp.ne.s32.totalorder %s3537_s28, %s5929_s15  ;;  %p5935_p10 = scmp.lt.s32.totalorder %s5929_s15, %s5929_s15 }
 0xeb0   :  { %4254 = vmatmul.mubr.f32.gmra.mrb[26].mxu1 %v6526_v28  ;;  %v6695_v28 = vpack.c.bf16 %v2164_v36, %v2162_v53 }
 0xeb1   :  { %4256 = vmatprep.mubr.f32.mxu1 %v6569_v17  ;;  %v2161_v17 = vld [vmem:[#allocation15 + $0x40] sm:$0xff]  ;;  %p5936_p11 = por %p5935_p10, %p5934_p9 }
 0xeb2   :  { %5071 = vmatprep.subr.bf16.mxu0 %v6695_v28 }
 0xeb3   :  { %p5937_p12 = pnand %p5936_p11, %p5930_p8 }
 0xeb4   :  { %4257 = vmatmul.mubr.f32.gmra.mrb[28].mxu1 %v6612_v6  ;;  %v2163_v6 = vld [vmem:[#allocation15 + $0x50] sm:$0xff] }
 0xeb5   :  { %4259 = vmatprep.mubr.f32.mxu1 %v6653_v59  ;;  %v6697_v3 = vpack.c.bf16 %v2163_v6, %v2161_v17  ;;  %v2185_v17 = vld [vmem:[#allocation16] sm:$0xff]  ;;  %v2186_v6 = vld [vmem:[#allocation16 + $0x8] sm:$0xff] }
 0xeb6   :  { %v6771_v7 = vpack.c.bf16 %v2186_v6, %v2185_v17 }
 0xeb7   :  { %5073 = vmatpush1.bf16.msra.mxu0 %v6697_v3 }
 0xeb8   :  { %5075 = vmatprep.subr.bf16.mxu0 %v6701_v14  ;;  %v5670_v30 = vpop.eup %5669  ;;  %5096 = vmatpush3.bf16.msra.mxu1 %v6771_v7 }
 0xeb9   :  { %v1831_v38 = vsub.f32 1.0, %v5670_v30  ;;  %5097 = vmatprep.subr.bf16.mxu1 %v6002_v50 }
 0xebb   :  { %5077 = vmatpush1.bf16.msra.mxu0 %v6703_v27  ;;  %v1832_v46 = vmul.f32 %v1831_v38, %v6653_v59 }
 0xebc   :  { %5079 = vmatprep.subr.bf16.mxu0 %v6707_v56  ;;  %5099 = vmatpush3.bf16.msra.mxu1 %v6775_v24 }
 0xebd   :  { %5100 = vmatprep.subr.bf16.mxu1 %v6002_v50 }
 0xebf   :  { %5081 = vmatpush1.bf16.msra.mxu0 %v6709_v13 }
 0xec0   :  { %5083 = vmatprep.subr.bf16.mxu0 %v6713_v5  ;;  %5102 = vmatpush3.bf16.msra.mxu1 %v6779_v8 }
 0xec1   :  { %5103 = vmatprep.subr.bf16.mxu1 %v6002_v50 }
 0xec3   :  { %5085 = vmatpush1.bf16.msra.mxu0 %v6715_v34 }
 0xec4   :  { %5087 = vmatprep.subr.bf16.mxu0 %v6719_v43  ;;  %5105 = vmatpush3.bf16.msra.mxu1 %v6783_v26 }
 0xec5   :  { %5106 = vmatprep.subr.bf16.mxu1 %v6002_v50 }
 0xec7   :  { %5089 = vmatpush1.bf16.msra.mxu0 %v6721_v44 }
 0xec8   :  { %5091 = vmatprep.subr.bf16.mxu0 %v6725_v60  ;;  %5108 = vmatpush3.bf16.msra.mxu1 %v6787_v12 }
 0xec9   :  { %5109 = vmatprep.subr.bf16.mxu1 %v6002_v50 }
 0xecb   :  { %5093 = vmatpush1.bf16.msra.mxu0 %v6727_v42 }
 0xecc   :  { %5119 = vmatprep.subr.bf16.mxu0 %v6671_v11  ;;  %5111 = vmatpush3.bf16.msra.mxu1 %v6791_v51 }
 0xecd   :  { %5112 = vmatprep.subr.bf16.mxu1 %v6002_v50 }
 0xed0   :  { %5114 = vmatpush3.bf16.msra.mxu1 %v6794_v1 }
 0xed1   :  { %5115 = vmatprep.subr.bf16.mxu1 %v6002_v50 }
 0xed4   :  { %5117 = vmatpush3.bf16.msra.mxu1 %v6798_v15 }
 0xed5   :  { %5150 = vmatprep.subr.bf16.mxu1 %v6002_v50 }
 0xf5f   :  { %v1826_v23 = vpop.f32.mrb[22].mxu1 }
 0xf60   :  { %v1827_v29 = vadd.f32 %v1826_v23, %v6362_v63  ;;  %v4217_v41 = vpop.f32.mrb[23].mxu1 }
 0xf62   :  { %5671 = vtanh.f32 %v1827_v29  ;;  %v6812_v29 = vrot.slane %v1894_v16, %v174_v58  ;;  %v6836_v58 = vrot.slane %v1894_v16, %v178_v21 }
 0xf6c   :  { %v5672_v40 = vpop.eup %5671 }
 0xf6d   :  { %v1833_v47 = vmul.f32 %v5672_v40, %v5670_v30 }
 0xf6f   :  { %v1834_v55 = vadd.f32 %v1833_v47, %v1832_v46 }
 0xf71   :  { %3529 = vst [vmem:[#allocation19] sm:$0xff] %v1834_v55  ;;  %2018 = vmatmul.mubr.f32.gmra.mrb[30].mxu0 %v1834_v55  ;;  %4260 = vmatmul.mubr.f32.gmra.mrb[30].mxu1 %v1834_v55 }
 0xf72   :  { %2270 = vmatprep.mubr.f32.mxu0 %v6001_v0  ;;  %4294 = vmatprep.mubr.msk.f32.mxu1 %vm6003_vm1, %v6001_v0 }
 0xf75   :  { %2271 = vmatmul.mubr.f32.vlgmr.msra.gmra.mrb[16].mxu0 %v6737_v25 }
 0xf76   :  { %5121 = vmatpush1.bf16.msra.mxu0 %v6673_v18  ;;  %2435 = vmatprep.mubr.f32.mxu0 %v6001_v0 }
 0xf77   :  { %5123 = vmatprep.subr.bf16.mxu0 %v6689_v54 }
 0xf7a   :  { %5125 = vmatpush1.bf16.msra.mxu0 %v6691_v62 }
 0xf7b   :  { %5127 = vmatprep.subr.bf16.mxu0 %v6695_v28 }
 0xf7e   :  { %5129 = vmatpush1.bf16.msra.mxu0 %v6697_v3 }
 0xf7f   :  { %v6748_v63 = vpop.f32.mrb[24].mxu1  ;;  %5131 = vmatprep.subr.bf16.mxu0 %v6701_v14 }
 0xf80   :  { %v6751_v59 = vpop.f32.mrb[25].mxu1 }
 0xf81   :  { %v2091_v9 = vadd.f32 %v6751_v59, %v6841_v35 }
 0xf82   :  { %5133 = vmatpush1.bf16.msra.mxu0 %v6703_v27 }
 0xf83   :  { %v6754_v49 = vpop.f32.mrb[26].mxu1  ;;  %5135 = vmatprep.subr.bf16.mxu0 %v6707_v56 }
 0xf84   :  { %v6757_v61 = vpop.f32.mrb[27].mxu1 }
 0xf86   :  { %5137 = vmatpush1.bf16.msra.mxu0 %v6709_v13 }
 0xf87   :  { %v6760_v53 = vpop.f32.mrb[28].mxu1  ;;  %5139 = vmatprep.subr.bf16.mxu0 %v6713_v5 }
 0xf88   :  { %v6763_v36 = vpop.f32.mrb[29].mxu1 }
 0xf8a   :  { %5141 = vmatpush1.bf16.msra.mxu0 %v6715_v34 }
 0xf8b   :  { %5143 = vmatprep.subr.bf16.mxu0 %v6719_v43 }
 0xf8e   :  { %5145 = vmatpush1.bf16.msra.mxu0 %v6721_v44 }
 0xf8f   :  { %5147 = vmatprep.subr.bf16.mxu0 %v6725_v60 }
 0xf92   :  { %5149 = vmatpush1.bf16.msra.mxu0 %v6727_v42 }
 0xf93   :  { %5175 = vmatprep.subr.bf16.mxu0 %v6671_v11 }
0x1044   :  { %v6806_v22 = vpop.f32.mrb[30].mxu1 }
0x1045   :  { %v6808_v23 = vpop.f32.mrb[31].mxu1 }
0x1048   :  { %v2272_v41 = vpop.f32.mrb[16].mxu0 }
0x1049   :  { %v5526_v30 = vadd.f32 %v2272_v41, %v6812_v29  ;;  %v2274_v38 = vpop.f32.mrb[17].mxu0 }
0x104a   :  { %v5527_v6 = vadd.f32 %v2274_v38, %v6836_v58 }
0x104b   :  { %v3600_v40 = vmul.f32 -1.442695, %v5526_v30 }
0x104c   :  { %v3601_v10 = vmul.f32 -1.442695, %v5527_v6 }
0x104d   :  { %5673 = vpow2.f32 %v3600_v40 }
0x1057   :  { %v5674_v46 = vpop.eup %5673 }
0x1058   :  { %v2285_v47 = vadd.f32 1.0, %v5674_v46 }
0x105a   :  { %5675 = vrcp.f32 %v2285_v47 }
0x105b   :  { %5677 = vpow2.f32 %v3601_v10 }
0x1064   :  { %v5676_v55 = vpop.eup %5675 }
0x1065   :  { %v2291_v17 = vmul.f32 %v5676_v55, %v6737_v25  ;;  %v5678_v19 = vpop.eup %5677  ;;  %v2096_v55 = vadd.f32 %v6748_v63, %v6841_v35 }
0x1066   :  { %v2286_v32 = vadd.f32 1.0, %v5678_v19 }
0x1067   :  { %4295 = vmatmul.mubr.f32.vlgmr.msra.gmra.mrb[32].mxu1 %v2291_v17 }
0x1068   :  { %5152 = vmatpush3.bf16.msra.mxu1 %v6771_v7  ;;  %4329 = vmatprep.mubr.msk.f32.mxu1 %vm6003_vm1, %v6001_v0  ;;  %5679 = vrcp.f32 %v2286_v32 }
0x1069   :  { %5153 = vmatprep.subr.bf16.mxu1 %v6002_v50 }
0x106c   :  { %5155 = vmatpush3.bf16.msra.mxu1 %v6775_v24 }
0x106d   :  { %5156 = vmatprep.subr.bf16.mxu1 %v6002_v50 }
0x1070   :  { %5158 = vmatpush3.bf16.msra.mxu1 %v6779_v8 }
0x1071   :  { %5159 = vmatprep.subr.bf16.mxu1 %v6002_v50 }
0x1072   :  { %v5680_v21 = vpop.eup %5679 }
0x1073   :  { %v2363_v52 = vsub.f32 1.0, %v5680_v21 }
0x1074   :  { %5161 = vmatpush3.bf16.msra.mxu1 %v6783_v26 }
0x1075   :  { %5162 = vmatprep.subr.bf16.mxu1 %v6002_v50  ;;  %v2364_v2 = vmul.f32 %v2363_v52, %v6737_v25 }
0x1078   :  { %5164 = vmatpush3.bf16.msra.mxu1 %v6787_v12 }
0x1079   :  { %5165 = vmatprep.subr.bf16.mxu1 %v6002_v50 }
0x107c   :  { %5167 = vmatpush3.bf16.msra.mxu1 %v6791_v51 }
0x107d   :  { %5168 = vmatprep.subr.bf16.mxu1 %v6002_v50 }
0x1080   :  { %5170 = vmatpush3.bf16.msra.mxu1 %v6794_v1 }
0x1081   :  { %5171 = vmatprep.subr.bf16.mxu1 %v6002_v50 }
0x1084   :  { %5173 = vmatpush3.bf16.msra.mxu1 %v6798_v15 }
0x1085   :  { %5206 = vmatprep.subr.bf16.mxu1 %v6002_v50 }
0x113a   :  { %v2358_v20 = vpop.f32.mrb[32].mxu1 }
0x113b   :  { %v2359_v31 = vadd.f32 %v2358_v20, %v2091_v9  ;;  %v4296_v33 = vpop.f32.mrb[33].mxu1 }
0x113d   :  { %5681 = vtanh.f32 %v2359_v31 }
0x1147   :  { %v5682_v48 = vpop.eup %5681 }
0x1148   :  { %v2365_v57 = vmul.f32 %v5682_v48, %v5680_v21 }
0x114a   :  { %v2366_v4 = vadd.f32 %v2365_v57, %v2364_v2 }
0x114c   :  { %2367 = vst [vmem:[#allocation18] sm:$0xff] %v2366_v4  ;;  %2436 = vmatmul.mubr.f32.vlgmr.msra.gmra.mrb[18].mxu0 %v2366_v4 }
0x114d   :  { %5177 = vmatpush1.bf16.msra.mxu0 %v6673_v18  ;;  %2600 = vmatprep.mubr.f32.mxu0 %v6001_v0 }
0x114e   :  { %5179 = vmatprep.subr.bf16.mxu0 %v6689_v54 }
0x1151   :  { %5181 = vmatpush1.bf16.msra.mxu0 %v6691_v62 }
0x1152   :  { %5183 = vmatprep.subr.bf16.mxu0 %v6695_v28 }
0x1155   :  { %5185 = vmatpush1.bf16.msra.mxu0 %v6697_v3 }
0x1156   :  { %5187 = vmatprep.subr.bf16.mxu0 %v6701_v14 }
0x1159   :  { %5189 = vmatpush1.bf16.msra.mxu0 %v6703_v27 }
0x115a   :  { %5191 = vmatprep.subr.bf16.mxu0 %v6707_v56 }
0x115d   :  { %5193 = vmatpush1.bf16.msra.mxu0 %v6709_v13 }
0x115e   :  { %5195 = vmatprep.subr.bf16.mxu0 %v6713_v5 }
0x1161   :  { %5197 = vmatpush1.bf16.msra.mxu0 %v6715_v34 }
0x1162   :  { %5199 = vmatprep.subr.bf16.mxu0 %v6719_v43 }
0x1165   :  { %5201 = vmatpush1.bf16.msra.mxu0 %v6721_v44 }
0x1166   :  { %5203 = vmatprep.subr.bf16.mxu0 %v6725_v60 }
0x1169   :  { %5205 = vmatpush1.bf16.msra.mxu0 %v6727_v42 }
0x116a   :  { %5231 = vmatprep.subr.bf16.mxu0 %v6671_v11 }
0x121f   :  { %v2437_v37 = vpop.f32.mrb[18].mxu0 }
0x1220   :  { %v5528_v39 = vadd.f32 %v2437_v37, %v6812_v29  ;;  %v2439_v25 = vpop.f32.mrb[19].mxu0 }
0x1221   :  { %v5529_v38 = vadd.f32 %v2439_v25, %v6836_v58 }
0x1222   :  { %v3602_v59 = vmul.f32 -1.442695, %v5528_v39 }
0x1223   :  { %v3603_v40 = vmul.f32 -1.442695, %v5529_v38 }
0x1224   :  { %5683 = vpow2.f32 %v3602_v59 }
0x122e   :  { %v5684_v45 = vpop.eup %5683 }
0x122f   :  { %v2450_v16 = vadd.f32 1.0, %v5684_v45 }
0x1231   :  { %5685 = vrcp.f32 %v2450_v16  ;;  %v2101_v16 = vadd.f32 %v6757_v61, %v6841_v35 }
0x1232   :  { %5687 = vpow2.f32 %v3603_v40 }
0x123b   :  { %v5686_v41 = vpop.eup %5685 }
0x123c   :  { %v2456_v30 = vmul.f32 %v5686_v41, %v2366_v4  ;;  %v5688_v46 = vpop.eup %5687 }
0x123d   :  { %v2451_v47 = vadd.f32 1.0, %v5688_v46 }
0x123e   :  { %4330 = vmatmul.mubr.f32.vlgmr.msra.gmra.mrb[34].mxu1 %v2456_v30 }
0x123f   :  { %5208 = vmatpush3.bf16.msra.mxu1 %v6771_v7  ;;  %4364 = vmatprep.mubr.msk.f32.mxu1 %vm6003_vm1, %v6001_v0  ;;  %5689 = vrcp.f32 %v2451_v47 }
0x1240   :  { %5209 = vmatprep.subr.bf16.mxu1 %v6002_v50 }
0x1243   :  { %5211 = vmatpush3.bf16.msra.mxu1 %v6775_v24 }
0x1244   :  { %5212 = vmatprep.subr.bf16.mxu1 %v6002_v50 }
0x1247   :  { %5214 = vmatpush3.bf16.msra.mxu1 %v6779_v8 }
0x1248   :  { %5215 = vmatprep.subr.bf16.mxu1 %v6002_v50 }
0x1249   :  { %v5690_v19 = vpop.eup %5689 }
0x124a   :  { %v2528_v32 = vsub.f32 1.0, %v5690_v19 }
0x124b   :  { %5217 = vmatpush3.bf16.msra.mxu1 %v6783_v26 }
0x124c   :  { %5218 = vmatprep.subr.bf16.mxu1 %v6002_v50  ;;  %v2529_v20 = vmul.f32 %v2528_v32, %v2366_v4 }
0x124f   :  { %5220 = vmatpush3.bf16.msra.mxu1 %v6787_v12 }
0x1250   :  { %5221 = vmatprep.subr.bf16.mxu1 %v6002_v50 }
0x1253   :  { %5223 = vmatpush3.bf16.msra.mxu1 %v6791_v51 }
0x1254   :  { %5224 = vmatprep.subr.bf16.mxu1 %v6002_v50 }
0x1257   :  { %5226 = vmatpush3.bf16.msra.mxu1 %v6794_v1 }
0x1258   :  { %5227 = vmatprep.subr.bf16.mxu1 %v6002_v50 }
0x125b   :  { %5229 = vmatpush3.bf16.msra.mxu1 %v6798_v15 }
0x125c   :  { %5262 = vmatprep.subr.bf16.mxu1 %v6002_v50 }
0x1311   :  { %v2523_v17 = vpop.f32.mrb[34].mxu1 }
0x1312   :  { %v2524_v6 = vadd.f32 %v2523_v17, %v2096_v55  ;;  %v4331_v10 = vpop.f32.mrb[35].mxu1 }
0x1314   :  { %5691 = vtanh.f32 %v2524_v6 }
0x131e   :  { %v5692_v9 = vpop.eup %5691 }
0x131f   :  { %v2530_v31 = vmul.f32 %v5692_v9, %v5690_v19 }
0x1321   :  { %v2531_v33 = vadd.f32 %v2530_v31, %v2529_v20 }
0x1323   :  { %2532 = vst [vmem:[#allocation18 + $0x8] sm:$0xff] %v2531_v33  ;;  %2601 = vmatmul.mubr.f32.vlgmr.msra.gmra.mrb[20].mxu0 %v2531_v33 }
0x1324   :  { %5233 = vmatpush1.bf16.msra.mxu0 %v6673_v18  ;;  %2765 = vmatprep.mubr.f32.mxu0 %v6001_v0 }
0x1325   :  { %5235 = vmatprep.subr.bf16.mxu0 %v6689_v54 }
0x1328   :  { %5237 = vmatpush1.bf16.msra.mxu0 %v6691_v62 }
0x1329   :  { %5239 = vmatprep.subr.bf16.mxu0 %v6695_v28 }
0x132c   :  { %5241 = vmatpush1.bf16.msra.mxu0 %v6697_v3 }
0x132d   :  { %5243 = vmatprep.subr.bf16.mxu0 %v6701_v14 }
0x1330   :  { %5245 = vmatpush1.bf16.msra.mxu0 %v6703_v27 }
0x1331   :  { %5247 = vmatprep.subr.bf16.mxu0 %v6707_v56 }
0x1334   :  { %5249 = vmatpush1.bf16.msra.mxu0 %v6709_v13 }
0x1335   :  { %5251 = vmatprep.subr.bf16.mxu0 %v6713_v5 }
0x1338   :  { %5253 = vmatpush1.bf16.msra.mxu0 %v6715_v34 }
0x1339   :  { %5255 = vmatprep.subr.bf16.mxu0 %v6719_v43 }
0x133c   :  { %5257 = vmatpush1.bf16.msra.mxu0 %v6721_v44 }
0x133d   :  { %5259 = vmatprep.subr.bf16.mxu0 %v6725_v60 }
0x1340   :  { %5261 = vmatpush1.bf16.msra.mxu0 %v6727_v42 }
0x1341   :  { %5287 = vmatprep.subr.bf16.mxu0 %v6671_v11 }
0x13f6   :  { %v2602_v63 = vpop.f32.mrb[20].mxu0 }
0x13f7   :  { %v5530_v21 = vadd.f32 %v2602_v63, %v6812_v29  ;;  %v2604_v52 = vpop.f32.mrb[21].mxu0 }
0x13f8   :  { %v5531_v39 = vadd.f32 %v2604_v52, %v6836_v58 }
0x13f9   :  { %v3604_v48 = vmul.f32 -1.442695, %v5530_v21 }
0x13fa   :  { %v3605_v25 = vmul.f32 -1.442695, %v5531_v39 }
0x13fb   :  { %5693 = vpow2.f32 %v3604_v48 }
0x1405   :  { %v5694_v2 = vpop.eup %5693 }
0x1406   :  { %v2615_v57 = vadd.f32 1.0, %v5694_v2  ;;  %v2106_v2 = vadd.f32 %v6754_v49, %v6841_v35 }
0x1408   :  { %5695 = vrcp.f32 %v2615_v57 }
0x1409   :  { %5697 = vpow2.f32 %v3605_v25 }
0x1412   :  { %v5696_v4 = vpop.eup %5695 }
0x1413   :  { %v2621_v37 = vmul.f32 %v5696_v4, %v2531_v33  ;;  %v5698_v59 = vpop.eup %5697 }
0x1414   :  { %v2616_v45 = vadd.f32 1.0, %v5698_v59 }
0x1415   :  { %4365 = vmatmul.mubr.f32.vlgmr.msra.gmra.mrb[36].mxu1 %v2621_v37 }
0x1416   :  { %5264 = vmatpush3.bf16.msra.mxu1 %v6771_v7  ;;  %4399 = vmatprep.mubr.msk.f32.mxu1 %vm6003_vm1, %v6001_v0  ;;  %5699 = vrcp.f32 %v2616_v45 }
0x1417   :  { %5265 = vmatprep.subr.bf16.mxu1 %v6002_v50 }
0x141a   :  { %5267 = vmatpush3.bf16.msra.mxu1 %v6775_v24 }
0x141b   :  { %5268 = vmatprep.subr.bf16.mxu1 %v6002_v50 }
0x141e   :  { %5270 = vmatpush3.bf16.msra.mxu1 %v6779_v8 }
0x141f   :  { %5271 = vmatprep.subr.bf16.mxu1 %v6002_v50 }
0x1420   :  { %v5700_v40 = vpop.eup %5699 }
0x1421   :  { %v2693_v46 = vsub.f32 1.0, %v5700_v40 }
0x1422   :  { %5273 = vmatpush3.bf16.msra.mxu1 %v6783_v26 }
0x1423   :  { %5274 = vmatprep.subr.bf16.mxu1 %v6002_v50  ;;  %v2694_v55 = vmul.f32 %v2693_v46, %v2531_v33 }
0x1426   :  { %5276 = vmatpush3.bf16.msra.mxu1 %v6787_v12 }
0x1427   :  { %5277 = vmatprep.subr.bf16.mxu1 %v6002_v50 }
0x142a   :  { %5279 = vmatpush3.bf16.msra.mxu1 %v6791_v51 }
0x142b   :  { %5280 = vmatprep.subr.bf16.mxu1 %v6002_v50 }
0x142e   :  { %5282 = vmatpush3.bf16.msra.mxu1 %v6794_v1 }
0x142f   :  { %5283 = vmatprep.subr.bf16.mxu1 %v6002_v50 }
0x1432   :  { %5285 = vmatpush3.bf16.msra.mxu1 %v6798_v15 }
0x1433   :  { %5318 = vmatprep.subr.bf16.mxu1 %v6002_v50 }
0x14e8   :  { %v2688_v41 = vpop.f32.mrb[36].mxu1 }
0x14e9   :  { %v2689_v30 = vadd.f32 %v2688_v41, %v2101_v16  ;;  %v4366_v38 = vpop.f32.mrb[37].mxu1 }
0x14eb   :  { %5701 = vtanh.f32 %v2689_v30 }
0x14f5   :  { %v5702_v47 = vpop.eup %5701 }
0x14f6   :  { %v2695_v17 = vmul.f32 %v5702_v47, %v5700_v40 }
0x14f8   :  { %v2696_v6 = vadd.f32 %v2695_v17, %v2694_v55 }
0x14fa   :  { %2697 = vst [vmem:[#allocation18 + $0x10] sm:$0xff] %v2696_v6  ;;  %2766 = vmatmul.mubr.f32.vlgmr.msra.gmra.mrb[22].mxu0 %v2696_v6 }
0x14fb   :  { %5289 = vmatpush1.bf16.msra.mxu0 %v6673_v18  ;;  %2930 = vmatprep.mubr.f32.mxu0 %v6001_v0 }
0x14fc   :  { %5291 = vmatprep.subr.bf16.mxu0 %v6689_v54 }
0x14ff   :  { %5293 = vmatpush1.bf16.msra.mxu0 %v6691_v62 }
0x1500   :  { %5295 = vmatprep.subr.bf16.mxu0 %v6695_v28 }
0x1503   :  { %5297 = vmatpush1.bf16.msra.mxu0 %v6697_v3 }
0x1504   :  { %5299 = vmatprep.subr.bf16.mxu0 %v6701_v14 }
0x1507   :  { %5301 = vmatpush1.bf16.msra.mxu0 %v6703_v27 }
0x1508   :  { %5303 = vmatprep.subr.bf16.mxu0 %v6707_v56 }
0x150b   :  { %5305 = vmatpush1.bf16.msra.mxu0 %v6709_v13 }
0x150c   :  { %5307 = vmatprep.subr.bf16.mxu0 %v6713_v5 }
0x150f   :  { %5309 = vmatpush1.bf16.msra.mxu0 %v6715_v34 }
0x1510   :  { %5311 = vmatprep.subr.bf16.mxu0 %v6719_v43 }
0x1513   :  { %5313 = vmatpush1.bf16.msra.mxu0 %v6721_v44 }
0x1514   :  { %5315 = vmatprep.subr.bf16.mxu0 %v6725_v60 }
0x1517   :  { %5317 = vmatpush1.bf16.msra.mxu0 %v6727_v42 }
0x1518   :  { %5343 = vmatprep.subr.bf16.mxu0 %v6671_v11 }
0x15cd   :  { %v2767_v61 = vpop.f32.mrb[22].mxu0 }
0x15ce   :  { %v5532_v10 = vadd.f32 %v2767_v61, %v6812_v29  ;;  %v2769_v19 = vpop.f32.mrb[23].mxu0 }
0x15cf   :  { %v5533_v63 = vadd.f32 %v2769_v19, %v6836_v58 }
0x15d0   :  { %v3606_v32 = vmul.f32 -1.442695, %v5532_v10 }
0x15d1   :  { %v3607_v21 = vmul.f32 -1.442695, %v5533_v63 }
0x15d2   :  { %5703 = vpow2.f32 %v3606_v32  ;;  %v2111_v32 = vadd.f32 %v6763_v36, %v6841_v35 }
0x15dc   :  { %v5704_v9 = vpop.eup %5703 }
0x15dd   :  { %v2780_v20 = vadd.f32 1.0, %v5704_v9 }
0x15df   :  { %5705 = vrcp.f32 %v2780_v20 }
0x15e0   :  { %5707 = vpow2.f32 %v3607_v21 }
0x15e9   :  { %v5706_v31 = vpop.eup %5705 }
0x15ea   :  { %v2786_v33 = vmul.f32 %v5706_v31, %v2696_v6  ;;  %v5708_v52 = vpop.eup %5707 }
0x15eb   :  { %v2781_v48 = vadd.f32 1.0, %v5708_v52 }
0x15ec   :  { %4400 = vmatmul.mubr.f32.vlgmr.msra.gmra.mrb[38].mxu1 %v2786_v33 }
0x15ed   :  { %5320 = vmatpush3.bf16.msra.mxu1 %v6771_v7  ;;  %4434 = vmatprep.mubr.msk.f32.mxu1 %vm6003_vm1, %v6001_v0  ;;  %5709 = vrcp.f32 %v2781_v48 }
0x15ee   :  { %5321 = vmatprep.subr.bf16.mxu1 %v6002_v50 }
0x15f1   :  { %5323 = vmatpush3.bf16.msra.mxu1 %v6775_v24 }
0x15f2   :  { %5324 = vmatprep.subr.bf16.mxu1 %v6002_v50 }
0x15f5   :  { %5326 = vmatpush3.bf16.msra.mxu1 %v6779_v8 }
0x15f6   :  { %5327 = vmatprep.subr.bf16.mxu1 %v6002_v50 }
0x15f7   :  { %v5710_v39 = vpop.eup %5709 }
0x15f8   :  { %v2858_v25 = vsub.f32 1.0, %v5710_v39 }
0x15f9   :  { %5329 = vmatpush3.bf16.msra.mxu1 %v6783_v26 }
0x15fa   :  { %5330 = vmatprep.subr.bf16.mxu1 %v6002_v50  ;;  %v2859_v45 = vmul.f32 %v2858_v25, %v2696_v6 }
0x15fd   :  { %5332 = vmatpush3.bf16.msra.mxu1 %v6787_v12 }
0x15fe   :  { %5333 = vmatprep.subr.bf16.mxu1 %v6002_v50 }
0x1601   :  { %5335 = vmatpush3.bf16.msra.mxu1 %v6791_v51 }
0x1602   :  { %5336 = vmatprep.subr.bf16.mxu1 %v6002_v50 }
0x1605   :  { %5338 = vmatpush3.bf16.msra.mxu1 %v6794_v1 }
0x1606   :  { %5339 = vmatprep.subr.bf16.mxu1 %v6002_v50 }
0x1609   :  { %5341 = vmatpush3.bf16.msra.mxu1 %v6798_v15 }
0x160a   :  { %5374 = vmatprep.subr.bf16.mxu1 %v6002_v50 }
0x16bf   :  { %v2853_v57 = vpop.f32.mrb[38].mxu1 }
0x16c0   :  { %v2854_v4 = vadd.f32 %v2853_v57, %v2106_v2  ;;  %v4401_v37 = vpop.f32.mrb[39].mxu1 }
0x16c2   :  { %5711 = vtanh.f32 %v2854_v4 }
0x16cc   :  { %v5712_v59 = vpop.eup %5711 }
0x16cd   :  { %v2860_v16 = vmul.f32 %v5712_v59, %v5710_v39 }
0x16cf   :  { %v2861_v41 = vadd.f32 %v2860_v16, %v2859_v45 }
0x16d1   :  { %2862 = vst [vmem:[#allocation18 + $0x18] sm:$0xff] %v2861_v41  ;;  %2931 = vmatmul.mubr.f32.vlgmr.msra.gmra.mrb[24].mxu0 %v2861_v41 }
0x16d2   :  { %5345 = vmatpush1.bf16.msra.mxu0 %v6673_v18  ;;  %3095 = vmatprep.mubr.f32.mxu0 %v6001_v0 }
0x16d3   :  { %5347 = vmatprep.subr.bf16.mxu0 %v6689_v54 }
0x16d6   :  { %5349 = vmatpush1.bf16.msra.mxu0 %v6691_v62 }
0x16d7   :  { %5351 = vmatprep.subr.bf16.mxu0 %v6695_v28 }
0x16da   :  { %5353 = vmatpush1.bf16.msra.mxu0 %v6697_v3 }
0x16db   :  { %5355 = vmatprep.subr.bf16.mxu0 %v6701_v14 }
0x16de   :  { %5357 = vmatpush1.bf16.msra.mxu0 %v6703_v27 }
0x16df   :  { %5359 = vmatprep.subr.bf16.mxu0 %v6707_v56 }
0x16e2   :  { %5361 = vmatpush1.bf16.msra.mxu0 %v6709_v13 }
0x16e3   :  { %5363 = vmatprep.subr.bf16.mxu0 %v6713_v5 }
0x16e6   :  { %5365 = vmatpush1.bf16.msra.mxu0 %v6715_v34 }
0x16e7   :  { %5367 = vmatprep.subr.bf16.mxu0 %v6719_v43 }
0x16ea   :  { %5369 = vmatpush1.bf16.msra.mxu0 %v6721_v44 }
0x16eb   :  { %5371 = vmatprep.subr.bf16.mxu0 %v6725_v60 }
0x16ee   :  { %5373 = vmatpush1.bf16.msra.mxu0 %v6727_v42 }
0x16ef   :  { %5399 = vmatprep.subr.bf16.mxu0 %v6671_v11 }
0x17a4   :  { %v2932_v49 = vpop.f32.mrb[24].mxu0 }
0x17a5   :  { %v5534_v30 = vadd.f32 %v2932_v49, %v6812_v29  ;;  %v2934_v38 = vpop.f32.mrb[25].mxu0 }
0x17a6   :  { %v5535_v6 = vadd.f32 %v2934_v38, %v6836_v58 }
0x17a7   :  { %v3608_v40 = vmul.f32 -1.442695, %v5534_v30  ;;  %v2116_v30 = vadd.f32 %v6760_v53, %v6841_v35 }
0x17a8   :  { %v3609_v61 = vmul.f32 -1.442695, %v5535_v6 }
0x17a9   :  { %5713 = vpow2.f32 %v3608_v40 }
0x17b3   :  { %v5714_v46 = vpop.eup %5713 }
0x17b4   :  { %v2945_v47 = vadd.f32 1.0, %v5714_v46 }
0x17b6   :  { %5715 = vrcp.f32 %v2945_v47 }
0x17b7   :  { %5717 = vpow2.f32 %v3609_v61 }
0x17c0   :  { %v5716_v55 = vpop.eup %5715 }
0x17c1   :  { %v2951_v17 = vmul.f32 %v5716_v55, %v2861_v41  ;;  %v5718_v10 = vpop.eup %5717 }
0x17c2   :  { %v2946_v19 = vadd.f32 1.0, %v5718_v10 }
0x17c3   :  { %4435 = vmatmul.mubr.f32.vlgmr.msra.gmra.mrb[40].mxu1 %v2951_v17 }
0x17c4   :  { %5376 = vmatpush3.bf16.msra.mxu1 %v6771_v7  ;;  %4469 = vmatprep.mubr.msk.f32.mxu1 %vm6003_vm1, %v6001_v0  ;;  %5719 = vrcp.f32 %v2946_v19 }
0x17c5   :  { %5377 = vmatprep.subr.bf16.mxu1 %v6002_v50 }
0x17c8   :  { %5379 = vmatpush3.bf16.msra.mxu1 %v6775_v24 }
0x17c9   :  { %5380 = vmatprep.subr.bf16.mxu1 %v6002_v50 }
0x17cc   :  { %5382 = vmatpush3.bf16.msra.mxu1 %v6779_v8 }
0x17cd   :  { %5383 = vmatprep.subr.bf16.mxu1 %v6002_v50 }
0x17ce   :  { %v5720_v33 = vpop.eup %5719 }
0x17cf   :  { %v3023_v63 = vsub.f32 1.0, %v5720_v33 }
0x17d0   :  { %5385 = vmatpush3.bf16.msra.mxu1 %v6783_v26 }
0x17d1   :  { %5386 = vmatprep.subr.bf16.mxu1 %v6002_v50  ;;  %v3024_v52 = vmul.f32 %v3023_v63, %v2861_v41 }
0x17d4   :  { %5388 = vmatpush3.bf16.msra.mxu1 %v6787_v12 }
0x17d5   :  { %5389 = vmatprep.subr.bf16.mxu1 %v6002_v50 }
0x17d8   :  { %5391 = vmatpush3.bf16.msra.mxu1 %v6791_v51 }
0x17d9   :  { %5392 = vmatprep.subr.bf16.mxu1 %v6002_v50 }
0x17dc   :  { %5394 = vmatpush3.bf16.msra.mxu1 %v6794_v1 }
0x17dd   :  { %5395 = vmatprep.subr.bf16.mxu1 %v6002_v50 }
0x17e0   :  { %5397 = vmatpush3.bf16.msra.mxu1 %v6798_v15 }
0x17e1   :  { %5430 = vmatprep.subr.bf16.mxu1 %v6002_v50 }
0x1896   :  { %v3018_v9 = vpop.f32.mrb[40].mxu1 }
0x1897   :  { %v3019_v20 = vadd.f32 %v3018_v9, %v2111_v32  ;;  %v4436_v31 = vpop.f32.mrb[41].mxu1 }
0x1899   :  { %5721 = vtanh.f32 %v3019_v20 }
0x18a3   :  { %v5722_v21 = vpop.eup %5721 }
0x18a4   :  { %v3025_v48 = vmul.f32 %v5722_v21, %v5720_v33  ;;  %v2126_v21 = vadd.f32 %v6806_v22, %v6841_v35 }
0x18a6   :  { %v3026_v2 = vadd.f32 %v3025_v48, %v3024_v52 }
0x18a8   :  { %3027 = vst [vmem:[#allocation18 + $0x20] sm:$0xff] %v3026_v2  ;;  %3096 = vmatmul.mubr.f32.vlgmr.msra.gmra.mrb[26].mxu0 %v3026_v2 }
0x18a9   :  { %5401 = vmatpush1.bf16.msra.mxu0 %v6673_v18  ;;  %3260 = vmatprep.mubr.f32.mxu0 %v6001_v0 }
0x18aa   :  { %5403 = vmatprep.subr.bf16.mxu0 %v6689_v54 }
0x18ad   :  { %5405 = vmatpush1.bf16.msra.mxu0 %v6691_v62 }
0x18ae   :  { %5407 = vmatprep.subr.bf16.mxu0 %v6695_v28 }
0x18b1   :  { %5409 = vmatpush1.bf16.msra.mxu0 %v6697_v3 }
0x18b2   :  { %5411 = vmatprep.subr.bf16.mxu0 %v6701_v14 }
0x18b5   :  { %5413 = vmatpush1.bf16.msra.mxu0 %v6703_v27 }
0x18b6   :  { %5415 = vmatprep.subr.bf16.mxu0 %v6707_v56 }
0x18b9   :  { %5417 = vmatpush1.bf16.msra.mxu0 %v6709_v13 }
0x18ba   :  { %5419 = vmatprep.subr.bf16.mxu0 %v6713_v5 }
0x18bd   :  { %5421 = vmatpush1.bf16.msra.mxu0 %v6715_v34 }
0x18be   :  { %5423 = vmatprep.subr.bf16.mxu0 %v6719_v43 }
0x18c1   :  { %5425 = vmatpush1.bf16.msra.mxu0 %v6721_v44 }
0x18c2   :  { %5427 = vmatprep.subr.bf16.mxu0 %v6725_v60 }
0x18c5   :  { %5429 = vmatpush1.bf16.msra.mxu0 %v6727_v42 }
0x18c6   :  { %5455 = vmatprep.subr.bf16.mxu0 %v6671_v11 }
0x197b   :  { %v3097_v36 = vpop.f32.mrb[26].mxu0 }
0x197c   :  { %v5536_v57 = vadd.f32 %v3097_v36, %v6812_v29  ;;  %v3099_v4 = vpop.f32.mrb[27].mxu0 }
0x197d   :  { %v5537_v11 = vadd.f32 %v3099_v4, %v6836_v58 }
0x197e   :  { %v3610_v37 = vmul.f32 -1.442695, %v5536_v57 }
0x197f   :  { %v3611_v16 = vmul.f32 -1.442695, %v5537_v11 }
0x1980   :  { %5723 = vpow2.f32 %v3610_v37 }
0x198a   :  { %v5724_v39 = vpop.eup %5723 }
0x198b   :  { %v3110_v25 = vadd.f32 1.0, %v5724_v39 }
0x198d   :  { %5725 = vrcp.f32 %v3110_v25 }
0x198e   :  { %5727 = vpow2.f32 %v3611_v16 }
0x1997   :  { %v5726_v59 = vpop.eup %5725 }
0x1998   :  { %v3116_v45 = vmul.f32 %v5726_v59, %v3026_v2  ;;  %v5728_v41 = vpop.eup %5727 }
0x1999   :  { %v3111_v49 = vadd.f32 1.0, %v5728_v41 }
0x199a   :  { %4470 = vmatmul.mubr.f32.vlgmr.msra.gmra.mrb[42].mxu1 %v3116_v45 }
0x199b   :  { %5432 = vmatpush3.bf16.msra.mxu1 %v6771_v7  ;;  %4504 = vmatprep.mubr.msk.f32.mxu1 %vm6003_vm1, %v6001_v0  ;;  %5729 = vrcp.f32 %v3111_v49 }
0x199c   :  { %5433 = vmatprep.subr.bf16.mxu1 %v6002_v50 }
0x199f   :  { %5435 = vmatpush3.bf16.msra.mxu1 %v6775_v24 }
0x19a0   :  { %5436 = vmatprep.subr.bf16.mxu1 %v6002_v50 }
0x19a3   :  { %5438 = vmatpush3.bf16.msra.mxu1 %v6779_v8 }
0x19a4   :  { %5439 = vmatprep.subr.bf16.mxu1 %v6002_v50 }
0x19a5   :  { %v5730_v47 = vpop.eup %5729 }
0x19a6   :  { %v3188_v55 = vsub.f32 1.0, %v5730_v47 }
0x19a7   :  { %5441 = vmatpush3.bf16.msra.mxu1 %v6783_v26 }
0x19a8   :  { %5442 = vmatprep.subr.bf16.mxu1 %v6002_v50  ;;  %v3189_v6 = vmul.f32 %v3188_v55, %v3026_v2 }
0x19ab   :  { %5444 = vmatpush3.bf16.msra.mxu1 %v6787_v12 }
0x19ac   :  { %5445 = vmatprep.subr.bf16.mxu1 %v6002_v50 }
0x19af   :  { %5447 = vmatpush3.bf16.msra.mxu1 %v6791_v51 }
0x19b0   :  { %5448 = vmatprep.subr.bf16.mxu1 %v6002_v50 }
0x19b3   :  { %5450 = vmatpush3.bf16.msra.mxu1 %v6794_v1 }
0x19b4   :  { %5451 = vmatprep.subr.bf16.mxu1 %v6002_v50 }
0x19b7   :  { %5453 = vmatpush3.bf16.msra.mxu1 %v6798_v15 }
0x19b8   :  { %5486 = vmatprep.subr.bf16.mxu1 %v6002_v50 }
0x1a6d   :  { %v3183_v38 = vpop.f32.mrb[42].mxu1 }
0x1a6e   :  { %v3184_v40 = vadd.f32 %v3183_v38, %v2116_v30  ;;  %v4471_v46 = vpop.f32.mrb[43].mxu1 }
0x1a70   :  { %5731 = vtanh.f32 %v3184_v40 }
0x1a7a   :  { %v5732_v17 = vpop.eup %5731 }
0x1a7b   :  { %v3190_v61 = vmul.f32 %v5732_v17, %v5730_v47 }
0x1a7d   :  { %v3191_v10 = vadd.f32 %v3190_v61, %v3189_v6 }
0x1a7f   :  { %3192 = vst [vmem:[#allocation18 + $0x28] sm:$0xff] %v3191_v10  ;;  %3261 = vmatmul.mubr.f32.vlgmr.msra.gmra.mrb[28].mxu0 %v3191_v10 }
0x1a80   :  { %5457 = vmatpush1.bf16.msra.mxu0 %v6673_v18  ;;  %3425 = vmatprep.mubr.f32.mxu0 %v6001_v0 }
0x1a81   :  { %5459 = vmatprep.subr.bf16.mxu0 %v6689_v54 }
0x1a84   :  { %5461 = vmatpush1.bf16.msra.mxu0 %v6691_v62 }
0x1a85   :  { %5463 = vmatprep.subr.bf16.mxu0 %v6695_v28 }
0x1a88   :  { %5465 = vmatpush1.bf16.msra.mxu0 %v6697_v3 }
0x1a89   :  { %5467 = vmatprep.subr.bf16.mxu0 %v6701_v14 }
0x1a8c   :  { %5469 = vmatpush1.bf16.msra.mxu0 %v6703_v27 }
0x1a8d   :  { %5471 = vmatprep.subr.bf16.mxu0 %v6707_v56 }
0x1a90   :  { %5473 = vmatpush1.bf16.msra.mxu0 %v6709_v13 }
0x1a91   :  { %5475 = vmatprep.subr.bf16.mxu0 %v6713_v5 }
0x1a94   :  { %5477 = vmatpush1.bf16.msra.mxu0 %v6715_v34 }
0x1a95   :  { %5479 = vmatprep.subr.bf16.mxu0 %v6719_v43  ;;  %v2121_v43 = vadd.f32 %v6808_v23, %v6841_v35 }
0x1a98   :  { %5481 = vmatpush1.bf16.msra.mxu0 %v6721_v44 }
0x1a99   :  { %5483 = vmatprep.subr.bf16.mxu0 %v6725_v60 }
0x1a9c   :  { %5485 = vmatpush1.bf16.msra.mxu0 %v6727_v42 }
0x1b52   :  { %v3262_v18 = vpop.f32.mrb[28].mxu0 }
0x1b53   :  { %v5538_v54 = vadd.f32 %v3262_v18, %v6812_v29  ;;  %v3264_v62 = vpop.f32.mrb[29].mxu0 }
0x1b55   :  { %v3612_v28 = vmul.f32 -1.442695, %v5538_v54 }
0x1b57   :  { %5733 = vpow2.f32 %v3612_v28 }
0x1b61   :  { %v5734_v3 = vpop.eup %5733 }
0x1b62   :  { %v3275_v14 = vadd.f32 1.0, %v5734_v3 }
0x1b64   :  { %5735 = vrcp.f32 %v3275_v14 }
0x1b6e   :  { %v5736_v27 = vpop.eup %5735 }
0x1b6f   :  { %v3281_v56 = vmul.f32 %v5736_v27, %v3191_v10 }
0x1b71   :  { %4505 = vmatmul.mubr.f32.vlgmr.msra.gmra.mrb[44].mxu1 %v3281_v56 }
0x1b72   :  { %5488 = vmatpush3.bf16.msra.mxu1 %v6771_v7  ;;  %4539 = vmatprep.mubr.msk.f32.mxu1 %vm6003_vm1, %v6001_v0  ;;  %v5539_v0 = vadd.f32 %v3264_v62, %v6836_v58 }
0x1b73   :  { %5489 = vmatprep.subr.bf16.mxu1 %v6002_v50 }
0x1b74   :  { %v3613_v13 = vmul.f32 -1.442695, %v5539_v0 }
0x1b76   :  { %5491 = vmatpush3.bf16.msra.mxu1 %v6775_v24  ;;  %5737 = vpow2.f32 %v3613_v13 }
0x1b77   :  { %5492 = vmatprep.subr.bf16.mxu1 %v6002_v50 }
0x1b7a   :  { %5494 = vmatpush3.bf16.msra.mxu1 %v6779_v8 }
0x1b7b   :  { %5495 = vmatprep.subr.bf16.mxu1 %v6002_v50 }
0x1b7e   :  { %5497 = vmatpush3.bf16.msra.mxu1 %v6783_v26 }
0x1b7f   :  { %5498 = vmatprep.subr.bf16.mxu1 %v6002_v50 }
0x1b80   :  { %v5738_v5 = vpop.eup %5737 }
0x1b81   :  { %v3276_v34 = vadd.f32 1.0, %v5738_v5 }
0x1b82   :  { %5500 = vmatpush3.bf16.msra.mxu1 %v6787_v12 }
0x1b83   :  { %5501 = vmatprep.subr.bf16.mxu1 %v6002_v50  ;;  %5739 = vrcp.f32 %v3276_v34 }
0x1b86   :  { %5503 = vmatpush3.bf16.msra.mxu1 %v6791_v51 }
0x1b87   :  { %5504 = vmatprep.subr.bf16.mxu1 %v6002_v50 }
0x1b8a   :  { %5506 = vmatpush3.bf16.msra.mxu1 %v6794_v1 }
0x1b8b   :  { %5507 = vmatprep.subr.bf16.mxu1 %v6002_v50 }
0x1b8d   :  { %v5740_v53 = vpop.eup %5739 }
0x1b8e   :  { %5509 = vmatpush3.bf16.msra.mxu1 %v6798_v15  ;;  %v3353_v7 = vsub.f32 1.0, %v5740_v53 }
0x1b90   :  { %v3354_v50 = vmul.f32 %v3353_v7, %v3191_v10 }
0x1c44   :  { %v3348_v44 = vpop.f32.mrb[44].mxu1 }
0x1c45   :  { %v3349_v60 = vadd.f32 %v3348_v44, %v2121_v43  ;;  %v4506_v42 = vpop.f32.mrb[45].mxu1 }
0x1c47   :  { %5741 = vtanh.f32 %v3349_v60 }
0x1c51   :  { %v5742_v24 = vpop.eup %5741 }
0x1c52   :  { %v3355_v8 = vmul.f32 %v5742_v24, %v5740_v53 }
0x1c54   :  { %v3356_v26 = vadd.f32 %v3355_v8, %v3354_v50 }
0x1c56   :  { %3357 = vst [vmem:[#allocation18 + $0x30] sm:$0xff] %v3356_v26  ;;  %3426 = vmatmul.mubr.f32.vlgmr.msra.gmra.mrb[30].mxu0 %v3356_v26 }
0x1d29   :  { %v3427_v12 = vpop.f32.mrb[30].mxu0 }
0x1d2a   :  { %v5540_v51 = vadd.f32 %v3427_v12, %v6812_v29  ;;  %v3429_v1 = vpop.f32.mrb[31].mxu0 }
0x1d2b   :  { %v5541_v20 = vadd.f32 %v3429_v1, %v6836_v58 }
0x1d2c   :  { %v3614_v15 = vmul.f32 -1.442695, %v5540_v51 }
0x1d2d   :  { %v3615_v31 = vmul.f32 -1.442695, %v5541_v20 }
0x1d2e   :  { %5743 = vpow2.f32 %v3614_v15 }
0x1d38   :  { %v5744_v19 = vpop.eup %5743 }
0x1d39   :  { %v3440_v23 = vadd.f32 1.0, %v5744_v19 }
0x1d3b   :  { %5745 = vrcp.f32 %v3440_v23 }
0x1d3c   :  { %5747 = vpow2.f32 %v3615_v31 }
0x1d45   :  { %v5746_v32 = vpop.eup %5745 }
0x1d46   :  { %v3446_v9 = vmul.f32 %v5746_v32, %v3356_v26  ;;  %v5748_v33 = vpop.eup %5747 }
0x1d47   :  { %v3441_v63 = vadd.f32 1.0, %v5748_v33 }
0x1d48   :  { %4540 = vmatmul.mubr.f32.vlgmr.msra.gmra.mrb[46].mxu1 %v3446_v9 }
0x1d49   :  { %5749 = vrcp.f32 %v3441_v63 }
0x1d53   :  { %v5750_v2 = vpop.eup %5749 }
0x1d54   :  { %v3518_v36 = vsub.f32 1.0, %v5750_v2 }
0x1d56   :  { %v3519_v4 = vmul.f32 %v3518_v36, %v3356_v26 }
0x1e1b   :  { %v3513_v29 = vpop.f32.mrb[46].mxu1 }
0x1e1c   :  { %v3514_v52 = vadd.f32 %v3513_v29, %v2126_v21  ;;  %v4541_v48 = vpop.f32.mrb[47].mxu1 }
0x1e1e   :  { %5751 = vtanh.f32 %v3514_v52 }
0x1e28   :  { %v5752_v57 = vpop.eup %5751 }
0x1e29   :  { %v3520_v37 = vmul.f32 %v5752_v57, %v5750_v2 }
0x1e2b   :  { %v3521_v58 = vadd.f32 %v3520_v37, %v3519_v4 }
0x1e2d   :  { %3522 = vst [vmem:[#allocation18 + $0x38] sm:$0xff] %v3521_v58  ;;  %3530 = vst [vmem:[#allocation19 + $0x8] sm:$0xff] %v3521_v58 }
0x1e2e   :  { %5940 = shalt.err (!%p5937_p12)
}
0x1e2f   :  { %s5941_s16 = scalar_lea.hbm %s7129_s10, 1024 }
0x1e30   :  { %p5942_p13 = scmp.ne.s32.totalorder %s7129_s10, %s5941_s16  ;;  %p5945_p0 = scmp.lt.u32.totalorder %s5941_s16, %s7129_s10 }
0x1e32   :  { %p5947_p1 = pnand %p5945_p0, %p5942_p13 }
0x1e34   :  { %5950 = shalt.err (!%p5947_p1)
}
0x1e35   :  { %3542 = dma.vmem_to_hbm [thread:$0]  %s3537_s28, 1024, %s7129_s10, [#allocation6], %s5989_s29, %s5989_s29, %s5990_s30  }
0x1e36   :  { %s5951_s3 = scalar_lea.vmem %s7082_s14, 256  ;;  %p5956_p3 = scmp.lt.s32.totalorder %s7082_s14, %s7082_s14 }
0x1e37   :  { %p5952_p2 = scmp.ne.s32.totalorder %s7082_s14, %s5951_s3  ;;  %p5957_p4 = scmp.lt.s32.totalorder %s5951_s3, %s5951_s3 }
0x1e39   :  { %p5958_p5 = por %p5957_p4, %p5956_p3 }
0x1e3b   :  { %p5959_p6 = pnand %p5958_p5, %p5952_p2 }
0x1e3d   :  { %5962 = shalt.err (!%p5959_p6)
}
0x1e3e   :  { %s5963_s26 = scalar_lea.hbm %s7130_s11, 256 }
0x1e3f   :  { %p5964_p7 = scmp.ne.s32.totalorder %s7130_s11, %s5963_s26  ;;  %p5967_p8 = scmp.lt.u32.totalorder %s5963_s26, %s7130_s11 }
0x1e41   :  { %p5969_p9 = pnand %p5967_p8, %p5964_p7 }
0x1e43   :  { %5972 = shalt.err (!%p5969_p9)
}
0x1e44   :  { %3554 = dma.vmem_to_hbm [thread:$0]  %s7082_s14, 256, %s7130_s11, [#allocation20], %s5989_s29, %s5989_s29, %s5990_s30  }
0x1e45   :  { %5983 = dma.done.wait [#allocation6], 1024  }
0x1e46   :  { %5984 = vsyncadd [#allocation6], 4294966272 }
0x1e47   :  { %5985 = dma.done.wait [#allocation20], 256  }
0x1e48   :  { %5986 = vsyncadd [#allocation20], 4294967040 }
0x1e49   :  { %3561 = vsyncpa [#allocation5], 1 }
0x1e4a   :  { %3562 = vsyncpa [#allocation8], 1 }
0x1e4b   :  { %3563 = vsyncpa [#allocation11], 1 }
0x1e4c   :  { %3564 = vsyncpa [#allocation14], 1 }
0x1e4d   :  { %3565 = vsyncpa [#allocation17], 1 }
0x1e4e   :  { %3566 = vsyncpa [#allocation6], 1 }
0x1e4f   :  { %3567 = vsyncpa [#allocation20], 1 }

</bundles_post_ra>
